<compile_context>
chip_gen: v6e
topology: v6e:2x2x1
jax: 0.10.0
libtpu: 0.0.40
codegen_flags: <defaults>
</compile_context>

<pallas_src>
import functools

import jax
import jax.numpy as jnp
from jax import lax
from jax.experimental import pallas as pl
from jax.experimental.pallas import tpu as pltpu

C_PAD = 128      # lane-dense channel padding
M_CHUNK = 256    # row chunk for in-register 9-tap accumulation (<= 256 rows)


def _ceil_to(x, m):
    return ((x + m - 1) // m) * m


def _geom(H, W):
    Hp, Wp = H + 2, W + 2
    L = Hp * Wp                       # padded-flat spatial length
    A_ROWS = _ceil_to(L, 8)           # rows processed / stored per layer
    DATA_OFF = _ceil_to(Wp + 1, 32)   # guard rows before data (>= max tap shift)
    ROWS_BUF = _ceil_to(DATA_OFF + Wp + 1 + A_ROWS, 32)
    return Hp, Wp, L, A_ROWS, DATA_OFF, ROWS_BUF


def dncnn_stack_pallas(xb, w_stack, b_stack, H, W, slope,
                       out_dtype=jnp.float32):
    """Runs the full conv stack.

    xb:      (N, ROWS_BUF, 128) padded-flat input (guard rows already zero).
    w_stack: (DEP, 3, 3, 128, 128) HWIO, zero-padded channels.
    b_stack: (DEP, 1, 128) f32.
    Returns  (N, A_ROWS, 128) f32: conv_last output (bias added, no
             activation) in padded-flat layout.
    """
    N, ROWS_BUF, _ = xb.shape
    DEP = w_stack.shape[0]
    Hp, Wp, L, A_ROWS, DATA_OFF, rows_buf = _geom(H, W)
    assert rows_buf == ROWS_BUF
    cdt = xb.dtype
    taps = [(dy, dx) for dy in range(3) for dx in range(3)]

    def kernel(x_hbm, w_ref, b_ref, o_ref, buf_ref, dma_sem):
        n = pl.program_id(0)
        l = pl.program_id(1)
        last = pl.num_programs(1) - 1
        dst = lax.rem(l, 2)           # ping-pong slot written by this layer
        src = 1 - dst                 # ping-pong slot read by this layer

        @pl.when(l == 0)
        def _init():
            # Zero only the guard strips of slot 0; its data region is fully
            # overwritten by the masked store of every mid layer.
            buf_ref[0, :DATA_OFF, :] = jnp.zeros((DATA_OFF, C_PAD), cdt)
            buf_ref[0, DATA_OFF + A_ROWS:, :] = jnp.zeros(
                (ROWS_BUF - DATA_OFF - A_ROWS, C_PAD), cdt)
            # One manual DMA per image: packed input (incl. its zero guard
            # rows) HBM -> ping-pong slot 1.
            cp = pltpu.make_async_copy(x_hbm.at[n], buf_ref.at[1], dma_sem)
            cp.start()
            cp.wait()

        # One layer: 3x3 conv = 9 sublane-shifted [chunk,128]@[128,128] MXU
        # matmuls, accumulated in registers per <=M_CHUNK-row chunk (single
        # store per chunk; no f32 accumulator round-trips through VMEM).
        for m0 in range(0, A_ROWS, M_CHUNK):
            mlen = min(M_CHUNK, A_ROWS - m0)
            acc = None
            for dy, dx in taps:
                off = DATA_OFF + m0 + (dy - 1) * Wp + (dx - 1)
                patch = buf_ref[src, off:off + mlen, :]
                part = jnp.dot(patch, w_ref[l, dy, dx],
                               preferred_element_type=jnp.float32)
                acc = part if acc is None else acc + part
            z = acc + b_ref[l]                              # f32 bias epilogue

            @pl.when(l != last)
            def _mid():
                # In-kernel validity mask for padded-flat rows of this chunk:
                # interior pixels have Wp <= p < (H+1)*Wp and 1 <= p%Wp <= W.
                p = m0 + lax.broadcasted_iota(jnp.int32, (mlen, 1), 0)
                wp = lax.rem(p, Wp)
                valid = ((p >= Wp) & (p < (H + 1) * Wp)
                         & (wp >= 1) & (wp <= W))
                act = jnp.where(z > 0, z, slope * z)        # LeakyReLU (f32)
                act = jnp.where(valid, act, 0.0).astype(cdt)
                buf_ref[dst, DATA_OFF + m0:DATA_OFF + m0 + mlen, :] = act

            @pl.when(l == last)
            def _last():
                o_ref[0, m0:m0 + mlen, :] = z.astype(o_ref.dtype)

        # TODO(synk): spatial (H) tiling with halo rows so large images fit
        #             the v7x 64 MiB VMEM budget; not needed at demo sizes.

    # Explicit VMEM budget: double-buffered pipelined blocks + scratch,
    # plus headroom, capped at the v7x physical budget.
    itemsize = jnp.dtype(cdt).itemsize
    vmem_bytes = (2 * DEP * 3 * 3 * C_PAD * C_PAD * itemsize    # weights
                  + 2 * DEP * 1 * C_PAD * 4                     # biases
                  + 2 * A_ROWS * C_PAD * 4                      # output block
                  + 2 * ROWS_BUF * C_PAD * itemsize)            # ping-pong
    vmem_limit = min(max(vmem_bytes + (8 << 20), 32 << 20), 64 << 20)

    return pl.pallas_call(
        kernel,
        out_shape=jax.ShapeDtypeStruct((N, A_ROWS, C_PAD), out_dtype),
        grid=(N, DEP),
        in_specs=[
            pl.BlockSpec(memory_space=pl.ANY),                     # xb in HBM
            pl.BlockSpec((DEP, 3, 3, C_PAD, C_PAD),                # resident W
                         lambda n, l: (0, 0, 0, 0, 0)),
            pl.BlockSpec((DEP, 1, C_PAD),                          # resident b
                         lambda n, l: (0, 0, 0)),
        ],
        out_specs=pl.BlockSpec((1, A_ROWS, C_PAD), lambda n, l: (n, 0, 0)),
        scratch_shapes=[
            pltpu.VMEM((2, ROWS_BUF, C_PAD), cdt),   # activation ping-pong
            pltpu.SemaphoreType.DMA,                 # input-image DMA sem
        ],
        compiler_params=pltpu.CompilerParams(
            dimension_semantics=("parallel", "arbitrary"),
            vmem_limit_bytes=vmem_limit),
    )(xb, w_stack, b_stack)


# ---------------- parameter / input packing (one-time XLA glue) --------------
def init_params(key, in_channels, out_channels, dep, num_filters):
    """Deterministic synthetic parameters, per-layer HWIO weights (spec form)."""
    params = {}
    k = key

    def nxt():
        nonlocal k
        k, sub = jax.random.split(k)
        return sub

    def conv_init(cin, cout):
        w = jax.random.normal(nxt(), (3, 3, cin, cout), jnp.float32) * 0.05
        b = jax.random.normal(nxt(), (cout,), jnp.float32) * 0.01
        return w, b

    params["conv1"] = conv_init(in_channels, num_filters)
    params["mid"] = [conv_init(num_filters, num_filters) for _ in range(dep - 2)]
    params["conv_last"] = conv_init(num_filters, out_channels)
    return params


def pack_params(params, compute_dtype):
    layers = [params["conv1"]] + list(params["mid"]) + [params["conv_last"]]
    dep = len(layers)
    w_stack = jnp.zeros((dep, 3, 3, C_PAD, C_PAD), jnp.float32)
    b_stack = jnp.zeros((dep, 1, C_PAD), jnp.float32)
    for i, (w, b) in enumerate(layers):
        cin, cout = w.shape[2], w.shape[3]
        assert cin <= C_PAD and cout <= C_PAD
        w_stack = w_stack.at[i, :, :, :cin, :cout].set(w)
        b_stack = b_stack.at[i, 0, :cout].set(b)
    return w_stack.astype(compute_dtype), b_stack          # bias stays f32


def pack_input(x_nchw, compute_dtype):
    N, Cin, H, W = x_nchw.shape
    Hp, Wp, L, A_ROWS, DATA_OFF, ROWS_BUF = _geom(H, W)
    x = jnp.transpose(x_nchw, (0, 2, 3, 1))                        # NHWC
    x = jnp.pad(x, ((0, 0), (1, 1), (1, 1), (0, C_PAD - Cin)))     # spatial+chan
    x = x.reshape(N, L, C_PAD)                                     # padded-flat
    x = jnp.pad(x, ((0, 0), (DATA_OFF, ROWS_BUF - DATA_OFF - L), (0, 0)))
    return x.astype(compute_dtype)


def dncnn_r_forward(x_nchw, params, slope=0.2, compute_dtype=jnp.bfloat16):
    """DnCNN_R forward, NCHW in / NCHW out, matching the PyTorch module."""
    N, Cin, H, W = x_nchw.shape
    out_ch = params["conv_last"][0].shape[-1]
    Hp, Wp, L, A_ROWS, DATA_OFF, ROWS_BUF = _geom(H, W)

    w_stack, b_stack = pack_params(params, compute_dtype)
    xb = pack_input(x_nchw, compute_dtype)

    out = dncnn_stack_pallas(xb, w_stack, b_stack, H, W, slope)

    # Unpack conv_last result: padded-flat -> (N, out_ch, H, W) (tiny tensors).
    conv = out[:, :L, :out_ch].reshape(N, Hp, Wp, out_ch)[:, 1:H + 1, 1:W + 1, :]
    conv = jnp.transpose(conv, (0, 3, 1, 2))
    # Residual epilogue: torch.cat((y - out[:, :1], out[:, 1:]), dim=1)
    return jnp.concatenate([x_nchw - conv[:, :1], conv[:, 1:]], axis=1)


# ---------------- pure-JAX reference (correctness check) ---------------------
def conv3x3_ref(x, w, b, slope=None):
    y = lax.conv_general_dilated(
        x, w, window_strides=(1, 1), padding=((1, 1), (1, 1)),
        dimension_numbers=("NCHW", "HWIO", "NCHW"))
    y = y + b[None, :, None, None]
    if slope is not None:
        y = jnp.where(y > 0, y, slope * y)
    return y


def dncnn_r_forward_ref(x, params, slope=0.2):
    w, b = params["conv1"]
    h = conv3x3_ref(x, w, b, slope=slope)
    for w, b in params["mid"]:
        h = conv3x3_ref(h, w, b, slope=slope)
    w, b = params["conv_last"]
    out = conv3x3_ref(h, w, b, slope=None)
    return jnp.concatenate([x - out[:, :1], out[:, 1:]], axis=1)


if __name__ == "__main__":
    # Small, deterministic configuration (module defaults scaled down).
    N, IN_CH, OUT_CH, H, W = 2, 3, 3, 16, 16
    DEP, NUM_FILTERS, SLOPE = 5, 64, 0.2

    key = jax.random.PRNGKey(0)
    key, xkey = jax.random.split(key)
    x = jax.random.normal(xkey, (N, IN_CH, H, W), jnp.float32)

    params = init_params(key, IN_CH, OUT_CH, DEP, NUM_FILTERS)

    fwd = jax.jit(functools.partial(dncnn_r_forward, slope=SLOPE))
    out = jax.block_until_ready(fwd(x, params))

    expected_channels = IN_CH + OUT_CH - 1
    assert out.shape == (N, expected_channels, H, W), out.shape

    ref = dncnn_r_forward_ref(x, params, slope=SLOPE)
    max_err = float(jnp.max(jnp.abs(out - ref)))
    # bf16 activations/weights with f32 accumulation: loose-but-meaningful tol.
    assert jnp.allclose(out, ref, atol=5e-2, rtol=5e-2), max_err

    print("KERNEL_OK")
</pallas_src>

<mosaic_0001>
module attributes {stable_mosaic.version = 11 : i64} {
  func.func @kernel(%arg0: i32, %arg1: i32, %arg2: memref<2x384x128xbf16, #tpu.memory_space<any>>, %arg3: memref<5x3x3x128x128xbf16, #tpu.memory_space<vmem>>, %arg4: memref<5x1x128xf32, #tpu.memory_space<vmem>>, %arg5: memref<1x328x128xf32, #tpu.memory_space<vmem>>, %arg6: memref<2x384x128xbf16, #tpu.memory_space<vmem>>, %arg7: memref<!tpu.dma_semaphore, #tpu.memory_space<semaphore_mem>>) attributes {dimension_semantics = [#tpu.dimension_semantics<parallel>, #tpu.dimension_semantics<arbitrary>], iteration_bounds = array<i64: 2, 5>, scalar_prefetch = 0 : i64, scratch_operands = 2 : i64, tpu.core_type = #tpu.core_type<tc>, window_params = [{}, {pipeline_mode = #tpu.pipeline_mode<synchronous>, transform_indices = @transform_1, window_bounds = array<i64: 5, 3, 3, 128, 128>}, {pipeline_mode = #tpu.pipeline_mode<synchronous>, transform_indices = @transform_2, window_bounds = array<i64: 5, 1, 128>}, {transform_indices = @transform_3, window_bounds = array<i64: 1, 328, 128>}]} {
    %c2_i32 = arith.constant 2 : i32
    %0 = arith.remsi %arg1, %c2_i32 : i32
    %c1_i32 = arith.constant 1 : i32
    %1 = arith.subi %c1_i32, %0 : i32
    %c0_i32 = arith.constant 0 : i32
    %2 = arith.cmpi eq, %arg1, %c0_i32 : i32
    %3 = arith.extui %2 : i1 to i32
    %c0_i32_0 = arith.constant 0 : i32
    %4 = arith.cmpi ne, %3, %c0_i32_0 : i32
    scf.if %4 {
      %cst_116 = arith.constant 0.000000e+00 : bf16
      %169 = vector.broadcast %cst_116 : bf16 to vector<32x128xbf16>
      %c0_117 = arith.constant 0 : index
      %c0_118 = arith.constant 0 : index
      %c0_119 = arith.constant 0 : index
      %170 = vector.load %arg6[%c0_117, %c0_118, %c0_119] : memref<2x384x128xbf16, #tpu.memory_space<vmem>>, vector<1x32x128xbf16>
      %171 = vector.shape_cast %170 : vector<1x32x128xbf16> to vector<32x128xbf16>
      %172 = vector.shape_cast %169 : vector<32x128xbf16> to vector<1x32x128xbf16>
      tpu.vector_store %arg6[%c0_117, %c0_118, %c0_119], %172 {strides = array<i32>} : memref<2x384x128xbf16, #tpu.memory_space<vmem>>, vector<1x32x128xbf16>,
      %cst_120 = arith.constant 0.000000e+00 : bf16
      %173 = vector.broadcast %cst_120 : bf16 to vector<24x128xbf16>
      %c0_121 = arith.constant 0 : index
      %c360 = arith.constant 360 : index
      %c0_122 = arith.constant 0 : index
      %174 = vector.load %arg6[%c0_121, %c360, %c0_122] : memref<2x384x128xbf16, #tpu.memory_space<vmem>>, vector<1x24x128xbf16>
      %175 = vector.shape_cast %174 : vector<1x24x128xbf16> to vector<24x128xbf16>
      %176 = vector.shape_cast %173 : vector<24x128xbf16> to vector<1x24x128xbf16>
      tpu.vector_store %arg6[%c0_121, %c360, %c0_122], %176 {strides = array<i32>} : memref<2x384x128xbf16, #tpu.memory_space<vmem>>, vector<1x24x128xbf16>,
      %c1_i32_123 = arith.constant 1 : i32
      %c0_i32_124 = arith.constant 0 : i32
      %c0_i32_125 = arith.constant 0 : i32
      %177 = tpu.memref_slice %arg2[%arg0, %c0_i32_124, %c0_i32_125] : memref<2x384x128xbf16, #tpu.memory_space<any>> -> memref<1x384x128xbf16, #tpu.memory_space<any>>
      %178 = tpu.memref_squeeze %177 : memref<1x384x128xbf16, #tpu.memory_space<any>> -> memref<384x128xbf16, #tpu.memory_space<any>>
      %c0_i32_126 = arith.constant 0 : i32
      %c0_i32_127 = arith.constant 0 : i32
      %179 = tpu.memref_slice %arg6[%c1_i32_123, %c0_i32_126, %c0_i32_127] : memref<2x384x128xbf16, #tpu.memory_space<vmem>> -> memref<1x384x128xbf16, #tpu.memory_space<vmem>>
      %180 = tpu.memref_squeeze %179 : memref<1x384x128xbf16, #tpu.memory_space<vmem>> -> memref<384x128xbf16, #tpu.memory_space<vmem>>
      tpu.enqueue_dma source(%178 : memref<384x128xbf16, #tpu.memory_space<any>>) target(%180 : memref<384x128xbf16, #tpu.memory_space<vmem>>) target_semaphore(%arg7 : memref<!tpu.dma_semaphore, #tpu.memory_space<semaphore_mem>>)
      %c1_i32_128 = arith.constant 1 : i32
      %c0_i32_129 = arith.constant 0 : i32
      %c0_i32_130 = arith.constant 0 : i32
      %181 = tpu.memref_slice %arg2[%arg0, %c0_i32_129, %c0_i32_130] : memref<2x384x128xbf16, #tpu.memory_space<any>> -> memref<1x384x128xbf16, #tpu.memory_space<any>>
      %182 = tpu.memref_squeeze %181 : memref<1x384x128xbf16, #tpu.memory_space<any>> -> memref<384x128xbf16, #tpu.memory_space<any>>
      %c0_i32_131 = arith.constant 0 : i32
      %c0_i32_132 = arith.constant 0 : i32
      %183 = tpu.memref_slice %arg6[%c1_i32_128, %c0_i32_131, %c0_i32_132] : memref<2x384x128xbf16, #tpu.memory_space<vmem>> -> memref<1x384x128xbf16, #tpu.memory_space<vmem>>
      %184 = tpu.memref_squeeze %183 : memref<1x384x128xbf16, #tpu.memory_space<vmem>> -> memref<384x128xbf16, #tpu.memory_space<vmem>>
      tpu.wait_dma2 semaphore(%arg7 : memref<!tpu.dma_semaphore, #tpu.memory_space<semaphore_mem>>) src(%182 : memref<384x128xbf16, #tpu.memory_space<any>>) dst(%184 : memref<384x128xbf16, #tpu.memory_space<vmem>>)
    } else {
    }
    %5 = arith.index_cast %1 : i32 to index
    %c13 = arith.constant 13 : index
    %c0 = arith.constant 0 : index
    %6 = vector.load %arg6[%5, %c13, %c0] : memref<2x384x128xbf16, #tpu.memory_space<vmem>>, vector<1x256x128xbf16>
    %7 = vector.shape_cast %6 : vector<1x256x128xbf16> to vector<256x128xbf16>
    %8 = arith.index_cast %arg1 : i32 to index
    %c0_1 = arith.constant 0 : index
    %c0_2 = arith.constant 0 : index
    %c0_3 = arith.constant 0 : index
    %c0_4 = arith.constant 0 : index
    %9 = vector.load %arg3[%8, %c0_1, %c0_2, %c0_3, %c0_4] : memref<5x3x3x128x128xbf16, #tpu.memory_space<vmem>>, vector<1x1x1x128x128xbf16>
    %10 = vector.shape_cast %9 : vector<1x1x1x128x128xbf16> to vector<128x128xbf16>
    %cst = arith.constant dense<0.000000e+00> : vector<256x128xf32>
    %11 = tpu.matmul %7, %10, %cst {dimension_numbers = #tpu.dot_dimension_numbers<[1], [0], [0], [1], [0, 0, 1, 1], [], []>} : vector<256x128xbf16>, vector<128x128xbf16>, vector<256x128xf32> -> vector<256x128xf32>
    %12 = arith.index_cast %1 : i32 to index
    %c14 = arith.constant 14 : index
    %c0_5 = arith.constant 0 : index
    %13 = vector.load %arg6[%12, %c14, %c0_5] : memref<2x384x128xbf16, #tpu.memory_space<vmem>>, vector<1x256x128xbf16>
    %14 = vector.shape_cast %13 : vector<1x256x128xbf16> to vector<256x128xbf16>
    %15 = arith.index_cast %arg1 : i32 to index
    %c0_6 = arith.constant 0 : index
    %c1 = arith.constant 1 : index
    %c0_7 = arith.constant 0 : index
    %c0_8 = arith.constant 0 : index
    %16 = vector.load %arg3[%15, %c0_6, %c1, %c0_7, %c0_8] : memref<5x3x3x128x128xbf16, #tpu.memory_space<vmem>>, vector<1x1x1x128x128xbf16>
    %17 = vector.shape_cast %16 : vector<1x1x1x128x128xbf16> to vector<128x128xbf16>
    %cst_9 = arith.constant dense<0.000000e+00> : vector<256x128xf32>
    %18 = tpu.matmul %14, %17, %cst_9 {dimension_numbers = #tpu.dot_dimension_numbers<[1], [0], [0], [1], [0, 0, 1, 1], [], []>} : vector<256x128xbf16>, vector<128x128xbf16>, vector<256x128xf32> -> vector<256x128xf32>
    %19 = arith.addf %11, %18 : vector<256x128xf32>
    %20 = arith.index_cast %1 : i32 to index
    %c15 = arith.constant 15 : index
    %c0_10 = arith.constant 0 : index
    %21 = vector.load %arg6[%20, %c15, %c0_10] : memref<2x384x128xbf16, #tpu.memory_space<vmem>>, vector<1x256x128xbf16>
    %22 = vector.shape_cast %21 : vector<1x256x128xbf16> to vector<256x128xbf16>
    %23 = arith.index_cast %arg1 : i32 to index
    %c0_11 = arith.constant 0 : index
    %c2 = arith.constant 2 : index
    %c0_12 = arith.constant 0 : index
    %c0_13 = arith.constant 0 : index
    %24 = vector.load %arg3[%23, %c0_11, %c2, %c0_12, %c0_13] : memref<5x3x3x128x128xbf16, #tpu.memory_space<vmem>>, vector<1x1x1x128x128xbf16>
    %25 = vector.shape_cast %24 : vector<1x1x1x128x128xbf16> to vector<128x128xbf16>
    %cst_14 = arith.constant dense<0.000000e+00> : vector<256x128xf32>
    %26 = tpu.matmul %22, %25, %cst_14 {dimension_numbers = #tpu.dot_dimension_numbers<[1], [0], [0], [1], [0, 0, 1, 1], [], []>} : vector<256x128xbf16>, vector<128x128xbf16>, vector<256x128xf32> -> vector<256x128xf32>
    %27 = arith.addf %19, %26 : vector<256x128xf32>
    %28 = arith.index_cast %1 : i32 to index
    %c31 = arith.constant 31 : index
    %c0_15 = arith.constant 0 : index
    %29 = vector.load %arg6[%28, %c31, %c0_15] : memref<2x384x128xbf16, #tpu.memory_space<vmem>>, vector<1x256x128xbf16>
    %30 = vector.shape_cast %29 : vector<1x256x128xbf16> to vector<256x128xbf16>
    %31 = arith.index_cast %arg1 : i32 to index
    %c1_16 = arith.constant 1 : index
    %c0_17 = arith.constant 0 : index
    %c0_18 = arith.constant 0 : index
    %c0_19 = arith.constant 0 : index
    %32 = vector.load %arg3[%31, %c1_16, %c0_17, %c0_18, %c0_19] : memref<5x3x3x128x128xbf16, #tpu.memory_space<vmem>>, vector<1x1x1x128x128xbf16>
    %33 = vector.shape_cast %32 : vector<1x1x1x128x128xbf16> to vector<128x128xbf16>
    %cst_20 = arith.constant dense<0.000000e+00> : vector<256x128xf32>
    %34 = tpu.matmul %30, %33, %cst_20 {dimension_numbers = #tpu.dot_dimension_numbers<[1], [0], [0], [1], [0, 0, 1, 1], [], []>} : vector<256x128xbf16>, vector<128x128xbf16>, vector<256x128xf32> -> vector<256x128xf32>
    %35 = arith.addf %27, %34 : vector<256x128xf32>
    %36 = arith.index_cast %1 : i32 to index
    %c32 = arith.constant 32 : index
    %c0_21 = arith.constant 0 : index
    %37 = vector.load %arg6[%36, %c32, %c0_21] : memref<2x384x128xbf16, #tpu.memory_space<vmem>>, vector<1x256x128xbf16>
    %38 = vector.shape_cast %37 : vector<1x256x128xbf16> to vector<256x128xbf16>
    %39 = arith.index_cast %arg1 : i32 to index
    %c1_22 = arith.constant 1 : index
    %c1_23 = arith.constant 1 : index
    %c0_24 = arith.constant 0 : index
    %c0_25 = arith.constant 0 : index
    %40 = vector.load %arg3[%39, %c1_22, %c1_23, %c0_24, %c0_25] : memref<5x3x3x128x128xbf16, #tpu.memory_space<vmem>>, vector<1x1x1x128x128xbf16>
    %41 = vector.shape_cast %40 : vector<1x1x1x128x128xbf16> to vector<128x128xbf16>
    %cst_26 = arith.constant dense<0.000000e+00> : vector<256x128xf32>
    %42 = tpu.matmul %38, %41, %cst_26 {dimension_numbers = #tpu.dot_dimension_numbers<[1], [0], [0], [1], [0, 0, 1, 1], [], []>} : vector<256x128xbf16>, vector<128x128xbf16>, vector<256x128xf32> -> vector<256x128xf32>
    %43 = arith.addf %35, %42 : vector<256x128xf32>
    %44 = arith.index_cast %1 : i32 to index
    %c33 = arith.constant 33 : index
    %c0_27 = arith.constant 0 : index
    %45 = vector.load %arg6[%44, %c33, %c0_27] : memref<2x384x128xbf16, #tpu.memory_space<vmem>>, vector<1x256x128xbf16>
    %46 = vector.shape_cast %45 : vector<1x256x128xbf16> to vector<256x128xbf16>
    %47 = arith.index_cast %arg1 : i32 to index
    %c1_28 = arith.constant 1 : index
    %c2_29 = arith.constant 2 : index
    %c0_30 = arith.constant 0 : index
    %c0_31 = arith.constant 0 : index
    %48 = vector.load %arg3[%47, %c1_28, %c2_29, %c0_30, %c0_31] : memref<5x3x3x128x128xbf16, #tpu.memory_space<vmem>>, vector<1x1x1x128x128xbf16>
    %49 = vector.shape_cast %48 : vector<1x1x1x128x128xbf16> to vector<128x128xbf16>
    %cst_32 = arith.constant dense<0.000000e+00> : vector<256x128xf32>
    %50 = tpu.matmul %46, %49, %cst_32 {dimension_numbers = #tpu.dot_dimension_numbers<[1], [0], [0], [1], [0, 0, 1, 1], [], []>} : vector<256x128xbf16>, vector<128x128xbf16>, vector<256x128xf32> -> vector<256x128xf32>
    %51 = arith.addf %43, %50 : vector<256x128xf32>
    %52 = arith.index_cast %1 : i32 to index
    %c49 = arith.constant 49 : index
    %c0_33 = arith.constant 0 : index
    %53 = vector.load %arg6[%52, %c49, %c0_33] : memref<2x384x128xbf16, #tpu.memory_space<vmem>>, vector<1x256x128xbf16>
    %54 = vector.shape_cast %53 : vector<1x256x128xbf16> to vector<256x128xbf16>
    %55 = arith.index_cast %arg1 : i32 to index
    %c2_34 = arith.constant 2 : index
    %c0_35 = arith.constant 0 : index
    %c0_36 = arith.constant 0 : index
    %c0_37 = arith.constant 0 : index
    %56 = vector.load %arg3[%55, %c2_34, %c0_35, %c0_36, %c0_37] : memref<5x3x3x128x128xbf16, #tpu.memory_space<vmem>>, vector<1x1x1x128x128xbf16>
    %57 = vector.shape_cast %56 : vector<1x1x1x128x128xbf16> to vector<128x128xbf16>
    %cst_38 = arith.constant dense<0.000000e+00> : vector<256x128xf32>
    %58 = tpu.matmul %54, %57, %cst_38 {dimension_numbers = #tpu.dot_dimension_numbers<[1], [0], [0], [1], [0, 0, 1, 1], [], []>} : vector<256x128xbf16>, vector<128x128xbf16>, vector<256x128xf32> -> vector<256x128xf32>
    %59 = arith.addf %51, %58 : vector<256x128xf32>
    %60 = arith.index_cast %1 : i32 to index
    %c50 = arith.constant 50 : index
    %c0_39 = arith.constant 0 : index
    %61 = vector.load %arg6[%60, %c50, %c0_39] : memref<2x384x128xbf16, #tpu.memory_space<vmem>>, vector<1x256x128xbf16>
    %62 = vector.shape_cast %61 : vector<1x256x128xbf16> to vector<256x128xbf16>
    %63 = arith.index_cast %arg1 : i32 to index
    %c2_40 = arith.constant 2 : index
    %c1_41 = arith.constant 1 : index
    %c0_42 = arith.constant 0 : index
    %c0_43 = arith.constant 0 : index
    %64 = vector.load %arg3[%63, %c2_40, %c1_41, %c0_42, %c0_43] : memref<5x3x3x128x128xbf16, #tpu.memory_space<vmem>>, vector<1x1x1x128x128xbf16>
    %65 = vector.shape_cast %64 : vector<1x1x1x128x128xbf16> to vector<128x128xbf16>
    %cst_44 = arith.constant dense<0.000000e+00> : vector<256x128xf32>
    %66 = tpu.matmul %62, %65, %cst_44 {dimension_numbers = #tpu.dot_dimension_numbers<[1], [0], [0], [1], [0, 0, 1, 1], [], []>} : vector<256x128xbf16>, vector<128x128xbf16>, vector<256x128xf32> -> vector<256x128xf32>
    %67 = arith.addf %59, %66 : vector<256x128xf32>
    %68 = arith.index_cast %1 : i32 to index
    %c51 = arith.constant 51 : index
    %c0_45 = arith.constant 0 : index
    %69 = vector.load %arg6[%68, %c51, %c0_45] : memref<2x384x128xbf16, #tpu.memory_space<vmem>>, vector<1x256x128xbf16>
    %70 = vector.shape_cast %69 : vector<1x256x128xbf16> to vector<256x128xbf16>
    %71 = arith.index_cast %arg1 : i32 to index
    %c2_46 = arith.constant 2 : index
    %c2_47 = arith.constant 2 : index
    %c0_48 = arith.constant 0 : index
    %c0_49 = arith.constant 0 : index
    %72 = vector.load %arg3[%71, %c2_46, %c2_47, %c0_48, %c0_49] : memref<5x3x3x128x128xbf16, #tpu.memory_space<vmem>>, vector<1x1x1x128x128xbf16>
    %73 = vector.shape_cast %72 : vector<1x1x1x128x128xbf16> to vector<128x128xbf16>
    %cst_50 = arith.constant dense<0.000000e+00> : vector<256x128xf32>
    %74 = tpu.matmul %70, %73, %cst_50 {dimension_numbers = #tpu.dot_dimension_numbers<[1], [0], [0], [1], [0, 0, 1, 1], [], []>} : vector<256x128xbf16>, vector<128x128xbf16>, vector<256x128xf32> -> vector<256x128xf32>
    %75 = arith.addf %67, %74 : vector<256x128xf32>
    %76 = arith.index_cast %arg1 : i32 to index
    %c0_51 = arith.constant 0 : index
    %c0_52 = arith.constant 0 : index
    %77 = vector.load %arg4[%76, %c0_51, %c0_52] : memref<5x1x128xf32, #tpu.memory_space<vmem>>, vector<1x1x128xf32>
    %78 = vector.shape_cast %77 : vector<1x1x128xf32> to vector<1x128xf32>
    %79 = vector.broadcast %78 : vector<1x128xf32> to vector<256x128xf32>
    %80 = arith.addf %75, %79 : vector<256x128xf32>
    %c4_i32 = arith.constant 4 : i32
    %81 = arith.cmpi ne, %arg1, %c4_i32 : i32
    %82 = arith.extui %81 : i1 to i32
    %c0_i32_53 = arith.constant 0 : i32
    %83 = arith.cmpi ne, %82, %c0_i32_53 : i32
    scf.if %83 {
      %169 = tpu.iota {dimensions = array<i32: 0>} : vector<256x1xi32>
      %c0_i32_116 = arith.constant 0 : i32
      %170 = vector.broadcast %c0_i32_116 : i32 to vector<256x1xi32>
      %171 = arith.addi %170, %169 : vector<256x1xi32>
      %c18_i32 = arith.constant 18 : i32
      %172 = vector.broadcast %c18_i32 : i32 to vector<256x1xi32>
      %173 = arith.remsi %171, %172 : vector<256x1xi32>
      %c18_i32_117 = arith.constant 18 : i32
      %174 = vector.broadcast %c18_i32_117 : i32 to vector<256x1xi32>
      %175 = arith.cmpi sge, %171, %174 : vector<256x1xi32>
      %c306_i32 = arith.constant 306 : i32
      %176 = vector.broadcast %c306_i32 : i32 to vector<256x1xi32>
      %177 = arith.cmpi slt, %171, %176 : vector<256x1xi32>
      %178 = arith.andi %175, %177 : vector<256x1xi1>
      %c1_i32_118 = arith.constant 1 : i32
      %179 = vector.broadcast %c1_i32_118 : i32 to vector<256x1xi32>
      %180 = arith.cmpi sge, %173, %179 : vector<256x1xi32>
      %181 = arith.andi %178, %180 : vector<256x1xi1>
      %c16_i32 = arith.constant 16 : i32
      %182 = vector.broadcast %c16_i32 : i32 to vector<256x1xi32>
      %183 = arith.cmpi sle, %173, %182 : vector<256x1xi32>
      %184 = arith.andi %181, %183 : vector<256x1xi1>
      %cst_119 = arith.constant 0.000000e+00 : f32
      %185 = vector.broadcast %cst_119 : f32 to vector<256x128xf32>
      %186 = arith.cmpf ogt, %80, %185 : vector<256x128xf32>
      %cst_120 = arith.constant 2.000000e-01 : f32
      %187 = vector.broadcast %cst_120 : f32 to vector<256x128xf32>
      %188 = arith.mulf %187, %80 : vector<256x128xf32>
      %189 = arith.select %186, %80, %188 : vector<256x128xi1>, vector<256x128xf32>
      %cst_121 = arith.constant 0.000000e+00 : f32
      %190 = vector.shape_cast %184 : vector<256x1xi1> to vector<256x1xi1>
      %191 = vector.broadcast %190 : vector<256x1xi1> to vector<256x128xi1>
      %192 = vector.broadcast %cst_121 : f32 to vector<256x128xf32>
      %193 = arith.select %191, %189, %192 : vector<256x128xi1>, vector<256x128xf32>
      %194 = arith.truncf %193 : vector<256x128xf32> to vector<256x128xbf16>
      %195 = arith.index_cast %0 : i32 to index
      %c32_122 = arith.constant 32 : index
      %c0_123 = arith.constant 0 : index
      %196 = vector.load %arg6[%195, %c32_122, %c0_123] : memref<2x384x128xbf16, #tpu.memory_space<vmem>>, vector<1x256x128xbf16>
      %197 = vector.shape_cast %196 : vector<1x256x128xbf16> to vector<256x128xbf16>
      %198 = vector.shape_cast %194 : vector<256x128xbf16> to vector<1x256x128xbf16>
      tpu.vector_store %arg6[%195, %c32_122, %c0_123], %198 {strides = array<i32>} : memref<2x384x128xbf16, #tpu.memory_space<vmem>>, vector<1x256x128xbf16>,
    } else {
    }
    %c4_i32_54 = arith.constant 4 : i32
    %84 = arith.cmpi eq, %arg1, %c4_i32_54 : i32
    %85 = arith.extui %84 : i1 to i32
    %c0_i32_55 = arith.constant 0 : i32
    %86 = arith.cmpi ne, %85, %c0_i32_55 : i32
    scf.if %86 {
      %c0_116 = arith.constant 0 : index
      %c0_117 = arith.constant 0 : index
      %c0_118 = arith.constant 0 : index
      %169 = vector.load %arg5[%c0_116, %c0_117, %c0_118] : memref<1x328x128xf32, #tpu.memory_space<vmem>>, vector<1x256x128xf32>
      %170 = vector.shape_cast %169 : vector<1x256x128xf32> to vector<256x128xf32>
      %171 = vector.shape_cast %80 : vector<256x128xf32> to vector<1x256x128xf32>
      tpu.vector_store %arg5[%c0_116, %c0_117, %c0_118], %171 {strides = array<i32>} : memref<1x328x128xf32, #tpu.memory_space<vmem>>, vector<1x256x128xf32>,
    } else {
    }
    %87 = arith.index_cast %1 : i32 to index
    %c269 = arith.constant 269 : index
    %c0_56 = arith.constant 0 : index
    %88 = vector.load %arg6[%87, %c269, %c0_56] : memref<2x384x128xbf16, #tpu.memory_space<vmem>>, vector<1x72x128xbf16>
    %89 = vector.shape_cast %88 : vector<1x72x128xbf16> to vector<72x128xbf16>
    %90 = arith.index_cast %arg1 : i32 to index
    %c0_57 = arith.constant 0 : index
    %c0_58 = arith.constant 0 : index
    %c0_59 = arith.constant 0 : index
    %c0_60 = arith.constant 0 : index
    %91 = vector.load %arg3[%90, %c0_57, %c0_58, %c0_59, %c0_60] : memref<5x3x3x128x128xbf16, #tpu.memory_space<vmem>>, vector<1x1x1x128x128xbf16>
    %92 = vector.shape_cast %91 : vector<1x1x1x128x128xbf16> to vector<128x128xbf16>
    %cst_61 = arith.constant dense<0.000000e+00> : vector<72x128xf32>
    %93 = tpu.matmul %89, %92, %cst_61 {dimension_numbers = #tpu.dot_dimension_numbers<[1], [0], [0], [1], [0, 0, 1, 1], [], []>} : vector<72x128xbf16>, vector<128x128xbf16>, vector<72x128xf32> -> vector<72x128xf32>
    %94 = arith.index_cast %1 : i32 to index
    %c270 = arith.constant 270 : index
    %c0_62 = arith.constant 0 : index
    %95 = vector.load %arg6[%94, %c270, %c0_62] : memref<2x384x128xbf16, #tpu.memory_space<vmem>>, vector<1x72x128xbf16>
    %96 = vector.shape_cast %95 : vector<1x72x128xbf16> to vector<72x128xbf16>
    %97 = arith.index_cast %arg1 : i32 to index
    %c0_63 = arith.constant 0 : index
    %c1_64 = arith.constant 1 : index
    %c0_65 = arith.constant 0 : index
    %c0_66 = arith.constant 0 : index
    %98 = vector.load %arg3[%97, %c0_63, %c1_64, %c0_65, %c0_66] : memref<5x3x3x128x128xbf16, #tpu.memory_space<vmem>>, vector<1x1x1x128x128xbf16>
    %99 = vector.shape_cast %98 : vector<1x1x1x128x128xbf16> to vector<128x128xbf16>
    %cst_67 = arith.constant dense<0.000000e+00> : vector<72x128xf32>
    %100 = tpu.matmul %96, %99, %cst_67 {dimension_numbers = #tpu.dot_dimension_numbers<[1], [0], [0], [1], [0, 0, 1, 1], [], []>} : vector<72x128xbf16>, vector<128x128xbf16>, vector<72x128xf32> -> vector<72x128xf32>
    %101 = arith.addf %93, %100 : vector<72x128xf32>
    %102 = arith.index_cast %1 : i32 to index
    %c271 = arith.constant 271 : index
    %c0_68 = arith.constant 0 : index
    %103 = vector.load %arg6[%102, %c271, %c0_68] : memref<2x384x128xbf16, #tpu.memory_space<vmem>>, vector<1x72x128xbf16>
    %104 = vector.shape_cast %103 : vector<1x72x128xbf16> to vector<72x128xbf16>
    %105 = arith.index_cast %arg1 : i32 to index
    %c0_69 = arith.constant 0 : index
    %c2_70 = arith.constant 2 : index
    %c0_71 = arith.constant 0 : index
    %c0_72 = arith.constant 0 : index
    %106 = vector.load %arg3[%105, %c0_69, %c2_70, %c0_71, %c0_72] : memref<5x3x3x128x128xbf16, #tpu.memory_space<vmem>>, vector<1x1x1x128x128xbf16>
    %107 = vector.shape_cast %106 : vector<1x1x1x128x128xbf16> to vector<128x128xbf16>
    %cst_73 = arith.constant dense<0.000000e+00> : vector<72x128xf32>
    %108 = tpu.matmul %104, %107, %cst_73 {dimension_numbers = #tpu.dot_dimension_numbers<[1], [0], [0], [1], [0, 0, 1, 1], [], []>} : vector<72x128xbf16>, vector<128x128xbf16>, vector<72x128xf32> -> vector<72x128xf32>
    %109 = arith.addf %101, %108 : vector<72x128xf32>
    %110 = arith.index_cast %1 : i32 to index
    %c287 = arith.constant 287 : index
    %c0_74 = arith.constant 0 : index
    %111 = vector.load %arg6[%110, %c287, %c0_74] : memref<2x384x128xbf16, #tpu.memory_space<vmem>>, vector<1x72x128xbf16>
    %112 = vector.shape_cast %111 : vector<1x72x128xbf16> to vector<72x128xbf16>
    %113 = arith.index_cast %arg1 : i32 to index
    %c1_75 = arith.constant 1 : index
    %c0_76 = arith.constant 0 : index
    %c0_77 = arith.constant 0 : index
    %c0_78 = arith.constant 0 : index
    %114 = vector.load %arg3[%113, %c1_75, %c0_76, %c0_77, %c0_78] : memref<5x3x3x128x128xbf16, #tpu.memory_space<vmem>>, vector<1x1x1x128x128xbf16>
    %115 = vector.shape_cast %114 : vector<1x1x1x128x128xbf16> to vector<128x128xbf16>
    %cst_79 = arith.constant dense<0.000000e+00> : vector<72x128xf32>
    %116 = tpu.matmul %112, %115, %cst_79 {dimension_numbers = #tpu.dot_dimension_numbers<[1], [0], [0], [1], [0, 0, 1, 1], [], []>} : vector<72x128xbf16>, vector<128x128xbf16>, vector<72x128xf32> -> vector<72x128xf32>
    %117 = arith.addf %109, %116 : vector<72x128xf32>
    %118 = arith.index_cast %1 : i32 to index
    %c288 = arith.constant 288 : index
    %c0_80 = arith.constant 0 : index
    %119 = vector.load %arg6[%118, %c288, %c0_80] : memref<2x384x128xbf16, #tpu.memory_space<vmem>>, vector<1x72x128xbf16>
    %120 = vector.shape_cast %119 : vector<1x72x128xbf16> to vector<72x128xbf16>
    %121 = arith.index_cast %arg1 : i32 to index
    %c1_81 = arith.constant 1 : index
    %c1_82 = arith.constant 1 : index
    %c0_83 = arith.constant 0 : index
    %c0_84 = arith.constant 0 : index
    %122 = vector.load %arg3[%121, %c1_81, %c1_82, %c0_83, %c0_84] : memref<5x3x3x128x128xbf16, #tpu.memory_space<vmem>>, vector<1x1x1x128x128xbf16>
    %123 = vector.shape_cast %122 : vector<1x1x1x128x128xbf16> to vector<128x128xbf16>
    %cst_85 = arith.constant dense<0.000000e+00> : vector<72x128xf32>
    %124 = tpu.matmul %120, %123, %cst_85 {dimension_numbers = #tpu.dot_dimension_numbers<[1], [0], [0], [1], [0, 0, 1, 1], [], []>} : vector<72x128xbf16>, vector<128x128xbf16>, vector<72x128xf32> -> vector<72x128xf32>
    %125 = arith.addf %117, %124 : vector<72x128xf32>
    %126 = arith.index_cast %1 : i32 to index
    %c289 = arith.constant 289 : index
    %c0_86 = arith.constant 0 : index
    %127 = vector.load %arg6[%126, %c289, %c0_86] : memref<2x384x128xbf16, #tpu.memory_space<vmem>>, vector<1x72x128xbf16>
    %128 = vector.shape_cast %127 : vector<1x72x128xbf16> to vector<72x128xbf16>
    %129 = arith.index_cast %arg1 : i32 to index
    %c1_87 = arith.constant 1 : index
    %c2_88 = arith.constant 2 : index
    %c0_89 = arith.constant 0 : index
    %c0_90 = arith.constant 0 : index
    %130 = vector.load %arg3[%129, %c1_87, %c2_88, %c0_89, %c0_90] : memref<5x3x3x128x128xbf16, #tpu.memory_space<vmem>>, vector<1x1x1x128x128xbf16>
    %131 = vector.shape_cast %130 : vector<1x1x1x128x128xbf16> to vector<128x128xbf16>
    %cst_91 = arith.constant dense<0.000000e+00> : vector<72x128xf32>
    %132 = tpu.matmul %128, %131, %cst_91 {dimension_numbers = #tpu.dot_dimension_numbers<[1], [0], [0], [1], [0, 0, 1, 1], [], []>} : vector<72x128xbf16>, vector<128x128xbf16>, vector<72x128xf32> -> vector<72x128xf32>
    %133 = arith.addf %125, %132 : vector<72x128xf32>
    %134 = arith.index_cast %1 : i32 to index
    %c305 = arith.constant 305 : index
    %c0_92 = arith.constant 0 : index
    %135 = vector.load %arg6[%134, %c305, %c0_92] : memref<2x384x128xbf16, #tpu.memory_space<vmem>>, vector<1x72x128xbf16>
    %136 = vector.shape_cast %135 : vector<1x72x128xbf16> to vector<72x128xbf16>
    %137 = arith.index_cast %arg1 : i32 to index
    %c2_93 = arith.constant 2 : index
    %c0_94 = arith.constant 0 : index
    %c0_95 = arith.constant 0 : index
    %c0_96 = arith.constant 0 : index
    %138 = vector.load %arg3[%137, %c2_93, %c0_94, %c0_95, %c0_96] : memref<5x3x3x128x128xbf16, #tpu.memory_space<vmem>>, vector<1x1x1x128x128xbf16>
    %139 = vector.shape_cast %138 : vector<1x1x1x128x128xbf16> to vector<128x128xbf16>
    %cst_97 = arith.constant dense<0.000000e+00> : vector<72x128xf32>
    %140 = tpu.matmul %136, %139, %cst_97 {dimension_numbers = #tpu.dot_dimension_numbers<[1], [0], [0], [1], [0, 0, 1, 1], [], []>} : vector<72x128xbf16>, vector<128x128xbf16>, vector<72x128xf32> -> vector<72x128xf32>
    %141 = arith.addf %133, %140 : vector<72x128xf32>
    %142 = arith.index_cast %1 : i32 to index
    %c306 = arith.constant 306 : index
    %c0_98 = arith.constant 0 : index
    %143 = vector.load %arg6[%142, %c306, %c0_98] : memref<2x384x128xbf16, #tpu.memory_space<vmem>>, vector<1x72x128xbf16>
    %144 = vector.shape_cast %143 : vector<1x72x128xbf16> to vector<72x128xbf16>
    %145 = arith.index_cast %arg1 : i32 to index
    %c2_99 = arith.constant 2 : index
    %c1_100 = arith.constant 1 : index
    %c0_101 = arith.constant 0 : index
    %c0_102 = arith.constant 0 : index
    %146 = vector.load %arg3[%145, %c2_99, %c1_100, %c0_101, %c0_102] : memref<5x3x3x128x128xbf16, #tpu.memory_space<vmem>>, vector<1x1x1x128x128xbf16>
    %147 = vector.shape_cast %146 : vector<1x1x1x128x128xbf16> to vector<128x128xbf16>
    %cst_103 = arith.constant dense<0.000000e+00> : vector<72x128xf32>
    %148 = tpu.matmul %144, %147, %cst_103 {dimension_numbers = #tpu.dot_dimension_numbers<[1], [0], [0], [1], [0, 0, 1, 1], [], []>} : vector<72x128xbf16>, vector<128x128xbf16>, vector<72x128xf32> -> vector<72x128xf32>
    %149 = arith.addf %141, %148 : vector<72x128xf32>
    %150 = arith.index_cast %1 : i32 to index
    %c307 = arith.constant 307 : index
    %c0_104 = arith.constant 0 : index
    %151 = vector.load %arg6[%150, %c307, %c0_104] : memref<2x384x128xbf16, #tpu.memory_space<vmem>>, vector<1x72x128xbf16>
    %152 = vector.shape_cast %151 : vector<1x72x128xbf16> to vector<72x128xbf16>
    %153 = arith.index_cast %arg1 : i32 to index
    %c2_105 = arith.constant 2 : index
    %c2_106 = arith.constant 2 : index
    %c0_107 = arith.constant 0 : index
    %c0_108 = arith.constant 0 : index
    %154 = vector.load %arg3[%153, %c2_105, %c2_106, %c0_107, %c0_108] : memref<5x3x3x128x128xbf16, #tpu.memory_space<vmem>>, vector<1x1x1x128x128xbf16>
    %155 = vector.shape_cast %154 : vector<1x1x1x128x128xbf16> to vector<128x128xbf16>
    %cst_109 = arith.constant dense<0.000000e+00> : vector<72x128xf32>
    %156 = tpu.matmul %152, %155, %cst_109 {dimension_numbers = #tpu.dot_dimension_numbers<[1], [0], [0], [1], [0, 0, 1, 1], [], []>} : vector<72x128xbf16>, vector<128x128xbf16>, vector<72x128xf32> -> vector<72x128xf32>
    %157 = arith.addf %149, %156 : vector<72x128xf32>
    %158 = arith.index_cast %arg1 : i32 to index
    %c0_110 = arith.constant 0 : index
    %c0_111 = arith.constant 0 : index
    %159 = vector.load %arg4[%158, %c0_110, %c0_111] : memref<5x1x128xf32, #tpu.memory_space<vmem>>, vector<1x1x128xf32>
    %160 = vector.shape_cast %159 : vector<1x1x128xf32> to vector<1x128xf32>
    %161 = vector.broadcast %160 : vector<1x128xf32> to vector<72x128xf32>
    %162 = arith.addf %157, %161 : vector<72x128xf32>
    %c4_i32_112 = arith.constant 4 : i32
    %163 = arith.cmpi ne, %arg1, %c4_i32_112 : i32
    %164 = arith.extui %163 : i1 to i32
    %c0_i32_113 = arith.constant 0 : i32
    %165 = arith.cmpi ne, %164, %c0_i32_113 : i32
    scf.if %165 {
      %169 = tpu.iota {dimensions = array<i32: 0>} : vector<72x1xi32>
      %c256_i32 = arith.constant 256 : i32
      %170 = vector.broadcast %c256_i32 : i32 to vector<72x1xi32>
      %171 = arith.addi %170, %169 : vector<72x1xi32>
      %c18_i32 = arith.constant 18 : i32
      %172 = vector.broadcast %c18_i32 : i32 to vector<72x1xi32>
      %173 = arith.remsi %171, %172 : vector<72x1xi32>
      %c18_i32_116 = arith.constant 18 : i32
      %174 = vector.broadcast %c18_i32_116 : i32 to vector<72x1xi32>
      %175 = arith.cmpi sge, %171, %174 : vector<72x1xi32>
      %c306_i32 = arith.constant 306 : i32
      %176 = vector.broadcast %c306_i32 : i32 to vector<72x1xi32>
      %177 = arith.cmpi slt, %171, %176 : vector<72x1xi32>
      %178 = arith.andi %175, %177 : vector<72x1xi1>
      %c1_i32_117 = arith.constant 1 : i32
      %179 = vector.broadcast %c1_i32_117 : i32 to vector<72x1xi32>
      %180 = arith.cmpi sge, %173, %179 : vector<72x1xi32>
      %181 = arith.andi %178, %180 : vector<72x1xi1>
      %c16_i32 = arith.constant 16 : i32
      %182 = vector.broadcast %c16_i32 : i32 to vector<72x1xi32>
      %183 = arith.cmpi sle, %173, %182 : vector<72x1xi32>
      %184 = arith.andi %181, %183 : vector<72x1xi1>
      %cst_118 = arith.constant 0.000000e+00 : f32
      %185 = vector.broadcast %cst_118 : f32 to vector<72x128xf32>
      %186 = arith.cmpf ogt, %162, %185 : vector<72x128xf32>
      %cst_119 = arith.constant 2.000000e-01 : f32
      %187 = vector.broadcast %cst_119 : f32 to vector<72x128xf32>
      %188 = arith.mulf %187, %162 : vector<72x128xf32>
      %189 = arith.select %186, %162, %188 : vector<72x128xi1>, vector<72x128xf32>
      %cst_120 = arith.constant 0.000000e+00 : f32
      %190 = vector.shape_cast %184 : vector<72x1xi1> to vector<72x1xi1>
      %191 = vector.broadcast %190 : vector<72x1xi1> to vector<72x128xi1>
      %192 = vector.broadcast %cst_120 : f32 to vector<72x128xf32>
      %193 = arith.select %191, %189, %192 : vector<72x128xi1>, vector<72x128xf32>
      %194 = arith.truncf %193 : vector<72x128xf32> to vector<72x128xbf16>
      %195 = arith.index_cast %0 : i32 to index
      %c288_121 = arith.constant 288 : index
      %c0_122 = arith.constant 0 : index
      %196 = vector.load %arg6[%195, %c288_121, %c0_122] : memref<2x384x128xbf16, #tpu.memory_space<vmem>>, vector<1x72x128xbf16>
      %197 = vector.shape_cast %196 : vector<1x72x128xbf16> to vector<72x128xbf16>
      %198 = vector.shape_cast %194 : vector<72x128xbf16> to vector<1x72x128xbf16>
      tpu.vector_store %arg6[%195, %c288_121, %c0_122], %198 {strides = array<i32>} : memref<2x384x128xbf16, #tpu.memory_space<vmem>>, vector<1x72x128xbf16>,
    } else {
    }
    %c4_i32_114 = arith.constant 4 : i32
    %166 = arith.cmpi eq, %arg1, %c4_i32_114 : i32
    %167 = arith.extui %166 : i1 to i32
    %c0_i32_115 = arith.constant 0 : i32
    %168 = arith.cmpi ne, %167, %c0_i32_115 : i32
    scf.if %168 {
      %c0_116 = arith.constant 0 : index
      %c256 = arith.constant 256 : index
      %c0_117 = arith.constant 0 : index
      %169 = vector.load %arg5[%c0_116, %c256, %c0_117] : memref<1x328x128xf32, #tpu.memory_space<vmem>>, vector<1x72x128xf32>
      %170 = vector.shape_cast %169 : vector<1x72x128xf32> to vector<72x128xf32>
      %171 = vector.shape_cast %162 : vector<72x128xf32> to vector<1x72x128xf32>
      tpu.vector_store %arg5[%c0_116, %c256, %c0_117], %171 {strides = array<i32>} : memref<1x328x128xf32, #tpu.memory_space<vmem>>, vector<1x72x128xf32>,
    } else {
    }
    return
  }
  func.func @transform_1(%arg0: i32, %arg1: i32) -> (i32, i32, i32, i32, i32) {
    %c0_i32 = arith.constant 0 : i32
    %c0_i32_0 = arith.constant 0 : i32
    %c0_i32_1 = arith.constant 0 : i32
    %c0_i32_2 = arith.constant 0 : i32
    %c0_i32_3 = arith.constant 0 : i32
    %c0_i32_4 = arith.constant 0 : i32
    return %c0_i32, %c0_i32_0, %c0_i32_1, %c0_i32_2, %c0_i32_3 : i32, i32, i32, i32, i32
  }
  func.func @transform_2(%arg0: i32, %arg1: i32) -> (i32, i32, i32) {
    %c0_i32 = arith.constant 0 : i32
    %c0_i32_0 = arith.constant 0 : i32
    %c0_i32_1 = arith.constant 0 : i32
    %c0_i32_2 = arith.constant 0 : i32
    return %c0_i32, %c0_i32_0, %c0_i32_1 : i32, i32, i32
  }
  func.func @transform_3(%arg0: i32, %arg1: i32) -> (i32, i32, i32) {
    %c0_i32 = arith.constant 0 : i32
    %c0_i32_0 = arith.constant 0 : i32
    %c0_i32_1 = arith.constant 0 : i32
    return %arg0, %c0_i32, %c0_i32_0 : i32, i32, i32
  }
}

</mosaic_0001>

<bundles_post_ra>
// kernel: dncnn_r_forward.1
= control target key start
LH: loop header
LB: loop body
LE: loop exit
PB: predicated region body
PF: predicated region fallthrough
CT: control target
= control target key end

     0   :  { %s9469_s12 = smov 0   ;;  %s9471_s13 = smov 0   ;;  %s12070_s0 = inlined_call_operand.vmem [shape: bf16[2,384,128], index: 0, kind: input, shape index: {}]   ;;  %s12071_s1 = inlined_call_operand.vmem [shape: bf16[5,3,3,128,128], index: 1, kind: input, shape index: {}]   ;;  %s12072_s2 = inlined_call_operand.vmem [shape: f32[5,1,128], index: 2, kind: input, shape index: {}]   ;;  %s12073_s3 = inlined_call_operand.vmem [shape: f32[2,328,128], index: 3, kind: output, shape index: {}]  }
   0x1   :  { %s9473_s14 = smov 0   ;;  %s9475_s15 = smov 0  }
   0x2   :  { %s9477_s16 = smov 0  }
   0x3 LB: > { %s22_s17 = sadd.s32 1, %s9433_s14  ;;  %s25_s18 = sadd.s32 1, %s9437_s15  ;;  %s9441_s16 = sphi %s9477_s16, %s13_s16   ;;  %s9437_s15 = sphi %s9475_s15, %s12215_s15   ;;  %s9433_s14 = sphi %s9473_s14, %s12214_s14   ;;  %s9429_s13 = sphi %s9471_s13, %s12213_s13   ;;  %s9425_s12 = sphi %s9469_s12, %s12212_s12  }
   0x4   : > { %p23_p0 = scmp.ge.s32.totalorder %s22_s17, 5  ;;  %p7174_p1 = scmp.ge.s32.totalorder %s9441_s16, 1 }
   0x5   : > { %p115_p2 = scmp.lt.s32.totalorder %s9441_s16, 11 }
   0x6   : > { %s12217_s17 = smov (%p23_p0, %s22_s17), 0  ;;  %s12219_s18 = smov (!%p23_p0, %s25_s18), %s9437_s15 }
   0x7   : > { %p116_p3 = pnand %p7174_p1, %p115_p2  ;;  %p27_p4 = scmp.ge.s32.totalorder %s12219_s18, 2 }
   0x9   : > { %s12221_s18 = smov (%p27_p4, %s12219_s18), 0  ;;  %119 = sbr.rel (%p116_p3) target bundleno = 1195 (0x4ab), region = 28 }
   0xe   : > { %p132_p5 = scmp.lt.s32.totalorder %s9429_s13, 1  ;;  %s139_s19 = ssub.s32 0, %s9425_s12 }
   0xf   : > { %p138_p6 = scmp.lt.s32.totalorder %s9425_s12, 0  ;;  %s7176_s21 = smin.u32 %s9425_s12, %s139_s19 }
  0x10   : > { %s133_s20 = scalar_select %p132_p5, %s9429_s13, 1 }
  0x11   : > { %s141_s23 = sand.u32 1, %s7176_s21   ;;  %p7177_p7 = scmp.ne.s32.totalorder %s9425_s12, 0 }
  0x12   : > { %s9019_s22 = smul.u32 328, %s133_s20  ;;  %s142_s24 = ssub.s32 0, %s141_s23 }
  0x13   : > { %s12223_s24 = smov (!%p138_p6, %s142_s24), %s141_s23  ;;  %148 = sbr.rel (%p7177_p7) target bundleno = 44 (0x2c), region = 32 }
  0x14   : > { %s9511_s27 = scalar_lea.vmem %s12073_s3, %s9019_s22  ;;  %s144_s28 = ssub.s32 1, %s12223_s24 }
  0x15   : > { %s7758_s29 = smul.u32 (!%p7177_p7), 192, %s9429_s13 }
  0x17   : > { %s9521_s5 = scalar_lea.vmem (!%p7177_p7), %s12070_s0, %s7758_s29 }
  0x18   : > { %v9443_v0 = vmov 0   ;;  %v193_v1 = vld [vmem:[%s9521_s5] sm:$0xff]  ;;  %v195_v2 = vld [vmem:[%s9521_s5 + $0x8] sm:$0xff]  ;;  %v197_v3 = vld [vmem:[%s9521_s5 + $0x10] sm:$0xff] }
  0x19   : > { %149 = vst [vmem:[#allocation2] sm:$0xf] %v9443_v0  ;;  %150 = vst [vmem:[#allocation2 + $0x4] sm:$0xf] %v9443_v0  ;;  %v199_v4 = vld [vmem:[%s9521_s5 + $0x18] sm:$0xff]  ;;  %v201_v5 = vld [vmem:[%s9521_s5 + $0x20] sm:$0xff] }
  0x1a   : > { %151 = vst [vmem:[#allocation2 + $0x8] sm:$0xf] %v9443_v0  ;;  %152 = vst [vmem:[#allocation2 + $0xc] sm:$0xf] %v9443_v0  ;;  %v203_v6 = vld [vmem:[%s9521_s5 + $0x28] sm:$0xff]  ;;  %v205_v7 = vld [vmem:[%s9521_s5 + $0x30] sm:$0xff] }
  0x1b   : > { %153 = vst [vmem:[#allocation2 + $0xb4] sm:$0xf] %v9443_v0  ;;  %154 = vst [vmem:[#allocation2 + $0xb8] sm:$0xf] %v9443_v0  ;;  %v207_v8 = vld [vmem:[%s9521_s5 + $0x38] sm:$0xff]  ;;  %v209_v9 = vld [vmem:[%s9521_s5 + $0x40] sm:$0xff] }
  0x1c   : > { %155 = vst [vmem:[#allocation2 + $0xbc] sm:$0xf] %v9443_v0  ;;  %194 = vst [vmem:[#allocation2 + $0xc0] sm:$0xff] %v193_v1  ;;  %v211_v10 = vld [vmem:[%s9521_s5 + $0x48] sm:$0xff]  ;;  %v213_v11 = vld [vmem:[%s9521_s5 + $0x50] sm:$0xff] }
  0x1d   : > { %196 = vst [vmem:[#allocation2 + $0xc8] sm:$0xff] %v195_v2  ;;  %198 = vst [vmem:[#allocation2 + $0xd0] sm:$0xff] %v197_v3  ;;  %v215_v12 = vld [vmem:[%s9521_s5 + $0x58] sm:$0xff]  ;;  %v217_v13 = vld [vmem:[%s9521_s5 + $0x60] sm:$0xff] }
  0x1e   : > { %200 = vst [vmem:[#allocation2 + $0xd8] sm:$0xff] %v199_v4  ;;  %202 = vst [vmem:[#allocation2 + $0xe0] sm:$0xff] %v201_v5  ;;  %v219_v14 = vld [vmem:[%s9521_s5 + $0x68] sm:$0xff]  ;;  %v221_v15 = vld [vmem:[%s9521_s5 + $0x70] sm:$0xff] }
  0x1f   : > { %204 = vst [vmem:[#allocation2 + $0xe8] sm:$0xff] %v203_v6  ;;  %206 = vst [vmem:[#allocation2 + $0xf0] sm:$0xff] %v205_v7  ;;  %v223_v16 = vld [vmem:[%s9521_s5 + $0x78] sm:$0xff]  ;;  %v225_v17 = vld [vmem:[%s9521_s5 + $0x80] sm:$0xff] }
  0x20   : > { %208 = vst [vmem:[#allocation2 + $0xf8] sm:$0xff] %v207_v8  ;;  %210 = vst [vmem:[#allocation2 + $0x100] sm:$0xff] %v209_v9  ;;  %v227_v18 = vld [vmem:[%s9521_s5 + $0x88] sm:$0xff]  ;;  %v229_v19 = vld [vmem:[%s9521_s5 + $0x90] sm:$0xff] }
  0x21   : > { %212 = vst [vmem:[#allocation2 + $0x108] sm:$0xff] %v211_v10  ;;  %214 = vst [vmem:[#allocation2 + $0x110] sm:$0xff] %v213_v11  ;;  %v231_v20 = vld [vmem:[%s9521_s5 + $0x98] sm:$0xff]  ;;  %v233_v21 = vld [vmem:[%s9521_s5 + $0xa0] sm:$0xff] }
  0x22   : > { %216 = vst [vmem:[#allocation2 + $0x118] sm:$0xff] %v215_v12  ;;  %218 = vst [vmem:[#allocation2 + $0x120] sm:$0xff] %v217_v13  ;;  %v235_v22 = vld [vmem:[%s9521_s5 + $0xa8] sm:$0xff]  ;;  %v237_v23 = vld [vmem:[%s9521_s5 + $0xb0] sm:$0xff] }
  0x23   : > { %220 = vst [vmem:[#allocation2 + $0x128] sm:$0xff] %v219_v14  ;;  %222 = vst [vmem:[#allocation2 + $0x130] sm:$0xff] %v221_v15  ;;  %v239_v24 = vld [vmem:[%s9521_s5 + $0xb8] sm:$0xff] }
  0x24   : > { %224 = vst [vmem:[#allocation2 + $0x138] sm:$0xff] %v223_v16  ;;  %226 = vst [vmem:[#allocation2 + $0x140] sm:$0xff] %v225_v17 }
  0x25   : > { %228 = vst [vmem:[#allocation2 + $0x148] sm:$0xff] %v227_v18  ;;  %230 = vst [vmem:[#allocation2 + $0x150] sm:$0xff] %v229_v19 }
  0x26   : > { %232 = vst [vmem:[#allocation2 + $0x158] sm:$0xff] %v231_v20  ;;  %234 = vst [vmem:[#allocation2 + $0x160] sm:$0xff] %v233_v21 }
  0x27   : > { %236 = vst [vmem:[#allocation2 + $0x168] sm:$0xff] %v235_v22  ;;  %238 = vst [vmem:[#allocation2 + $0x170] sm:$0xff] %v237_v23 }
  0x28   : > { %240 = vst [vmem:[#allocation2 + $0x178] sm:$0xff] %v239_v24 }
  0x29   : > { %248 = vsyncadd [#allocation3], 3072 }
  0x2a   : > { %9421 = dma.done.wait [#allocation3], 3072 }
  0x2b   : > { %9422 = vsyncadd [#allocation3], 4294964224 }
  0x2c PF: > { %s7760_s6 = smul.u32 576, %s9425_s12  ;;  %vm12113_vm0 = vsmask.f32 5376  ;;  %vm12115_vm1 = vcmask 1044480   ;;  %vm12114_vm2 = vsmask.f32 4352  ;;  %s10898_s20 = scalar_lea.vmem %s12072_s2, %s9425_s12 }
  0x2d   : > { %s7759_s10 = smul.u32 192, %s144_s28  ;;  %vm12111_vm3 = vsmask.f32 7424  ;;  %vm12112_vm4 = vcmask 1046528   ;;  %vm12110_vm5 = vsmask.f32 6400 }
  0x2e   : > { %s9551_s9 = scalar_lea.vmem %s12071_s1, %s7760_s6  ;;  %p7478_p8 = scmp.eq.s32.totalorder %s9425_s12, 4 }
  0x2f   : > { %v9140_v25 = vld [vmem:[%s9551_s9 + $0x78] sm:$0xff]   ;;  %v9142_v27 = vld [vmem:[%s9551_s9 + $0x70] sm:$0xff]   ;;  %v9144_v29 = vld [vmem:[%s9551_s9 + $0x68] sm:$0xff]   ;;  %s9567_s11 = scalar_lea.vmem [#allocation2], %s7759_s10  ;;  %s7791_s21 = smul.u32 (!%p7478_p8), 192, %s12223_s24 }
  0x30   : > { %v9141_v26 = vld [vmem:[%s9551_s9 + $0x38] sm:$0xff]   ;;  %8247 = vmatprep.subr.bf16.mxu0 %v9140_v25  ;;  %v9143_v28 = vld [vmem:[%s9551_s9 + $0x30] sm:$0xff]   ;;  %v9145_v30 = vld [vmem:[%s9551_s9 + $0x28] sm:$0xff]  }
  0x31   : > { %8295 = vmatprep.subr.bf16.mxu1 %v9141_v26  ;;  %8248 = vmatpush3.bf16.msra.mxu0 %v9140_v25  ;;  %v9146_v31 = vld [vmem:[%s9551_s9 + $0x60] sm:$0xff]   ;;  %v9148_v33 = vld [vmem:[%s9551_s9 + $0x58] sm:$0xff]   ;;  %v9150_v35 = vld [vmem:[%s9551_s9 + $0x50] sm:$0xff]   ;;  %s11075_s22 = scalar_lea.vmem (!%p7478_p8), [#allocation2], %s7791_s21 }
  0x32   : > { %8296 = vmatpush3.bf16.msra.mxu1 %v9141_v26  ;;  %8249 = vmatprep.subr.bf16.mxu0 %v9142_v27  ;;  %v9147_v32 = vld [vmem:[%s9551_s9 + $0x20] sm:$0xff]   ;;  %v9149_v34 = vld [vmem:[%s9551_s9 + $0x18] sm:$0xff]   ;;  %v9151_v36 = vld [vmem:[%s9551_s9 + $0x10] sm:$0xff]  }
  0x33   : > { %8297 = vmatprep.subr.bf16.mxu1 %v9143_v28  ;;  %v257_v37 = vld [vmem:[%s9567_s11 + $0x8] sm:$0xf]  ;;  %v308_v38 = vld [vmem:[%s9567_s11 + $0x4] sm:$0x8]  ;;  %v9572_v39 = vld [vmem:[%s9567_s11 + $0xc] sm:$0xff]  }
  0x34   : > { %v256_v40 = vld [vmem:[%s9567_s11 + $0x4] sm:$0xc]  ;;  %v9575_v41 = vcombine.low %v308_v38, %v257_v37  ;;  %v9578_v43 = vld [vmem:[%s9567_s11 + $0x14] sm:$0xff]   ;;  %v9152_v44 = vld [vmem:[%s9551_s9 + $0x48] sm:$0xff]   ;;  %v413_v45 = vrot.slane %v9572_v39, 3  ;;  %v683_v46 = vshrl.u32 %v9572_v39, 16 }
  0x35   : > { %8250 = vmatpush3.bf16.msra.mxu0 %v9142_v27  ;;  %v7223_v42 = vcombine.low %v256_v40, %v257_v37  ;;  %v686_v47 = vshll.u32 %v9572_v39, 16  ;;  %v9153_v48 = vld [vmem:[%s9551_s9 + $0x8] sm:$0xff]   ;;  %v692_v54 = vshrl.u32 %v9578_v43, 16  ;;  %v695_v55 = vshll.u32 %v9578_v43, 16  ;;  %v9594_v59 = vld [vmem:[%s9567_s11 + $0x1c] sm:$0xff]   ;;  %v9625_v20 = vld [vmem:[%s9567_s11 + $0x34] sm:$0xff]  }
  0x36   : > { %8298 = vmatpush3.bf16.msra.mxu1 %v9143_v28  ;;  %8251 = vmatprep.subr.bf16.mxu0 %v9144_v29  ;;  %v412_v49 = vrot.slane %v9575_v41, 3  ;;  %v685_v52 = vrot.slane %v683_v46, 2  ;;  %v9154_v63 = vld [vmem:[%s9551_s9 + $0x40] sm:$0xff]   ;;  %v701_v1 = vshrl.u32 %v9594_v59, 16  ;;  %v704_v2 = vshll.u32 %v9594_v59, 16  ;;  %v9608_v5 = vld [vmem:[%s9567_s11 + $0x2c] sm:$0xff]  }
  0x37   : > { %8299 = vmatprep.subr.bf16.mxu1 %v9145_v30  ;;  %v675_v50 = vshrl.u32 %v7223_v42, 16  ;;  %v678_v51 = vshll.u32 %v7223_v42, 16  ;;  %v688_v53 = vrot.slane %v686_v47, 3  ;;  %v694_v61 = vrot.slane %v692_v54, 2  ;;  %v9604_v3 = vld [vmem:[%s9567_s11 + $0x24] sm:$0xff]   ;;  %v9160_v11 = vld [vmem:[%s9551_s9 + $0xb8] sm:$0xff]  }
  0x38   : > { %v414_v56 = vsel %vm12115_vm1, %v412_v49, %v413_v45  ;;  %v697_v62 = vrot.slane %v695_v55, 3  ;;  %v9155_v4 = vld [vmem:[%s9551_s9] sm:$0xff]   ;;  %v703_v7 = vrot.slane %v701_v1, 2  ;;  %v706_v8 = vrot.slane %v704_v2, 3  ;;  %v9163_v27 = vld [vmem:[%s9551_s9 + $0xb0] sm:$0xff]   ;;  %v9173_v40 = vld [vmem:[%s9551_s9 + $0xf8] sm:$0xff]  }
  0x39   : > { %8252 = vmatpush3.bf16.msra.mxu0 %v9144_v29  ;;  %v677_v57 = vrot.slane %v675_v50, 2  ;;  %v680_v58 = vrot.slane %v678_v51, 3  ;;  %8263 = vmatprep.mubr.bf16.mxu0 %v414_v56  ;;  %v689_v60 = vor.u32 %v688_v53, %v685_v52  ;;  %v415_v9 = vrot.slane %v9578_v43, 3  ;;  %v9639_v28 = vld [vmem:[%s9567_s11 + $0x3c] sm:$0xff]   ;;  %v9649_v38 = vld [vmem:[%s9567_s11 + $0x44] sm:$0xff]   ;;  %v9174_v53 = vld [vmem:[%s9551_s9 + $0xf0] sm:$0xff]  }
  0x3a   : > { %8300 = vmatpush3.bf16.msra.mxu1 %v9145_v30  ;;  %8253 = vmatprep.subr.bf16.mxu0 %v9146_v31  ;;  %v698_v10 = vor.u32 %v697_v62, %v694_v61  ;;  %v710_v12 = vshrl.u32 %v9604_v3, 16  ;;  %v713_v13 = vshll.u32 %v9604_v3, 16  ;;  %v719_v14 = vshrl.u32 %v9608_v5, 16 }
  0x3b   : > { %8301 = vmatprep.subr.bf16.mxu1 %v9147_v32  ;;  %v681_v0 = vor.u32 %v680_v58, %v677_v57  ;;  %v722_v15 = vshll.u32 %v9608_v5, 16  ;;  %v417_v16 = vrot.slane %v9594_v59, 3  ;;  %v707_v17 = vor.u32 %v706_v8, %v703_v7  ;;  %v9677_v7 = vld [vmem:[%s9567_s11 + $0x54] sm:$0xff]   ;;  %v9178_v8 = vld [vmem:[%s9551_s9 + $0xe8] sm:$0xff]  }
  0x3c   : > { %v416_v18 = vsel %vm12115_vm1, %v413_v45, %v415_v9  ;;  %v699_v19 = vsel %vm12113_vm0, %v689_v60, %v698_v10  ;;  %v712_v21 = vrot.slane %v710_v12, 2  ;;  %v715_v22 = vrot.slane %v713_v13, 3  ;;  %v9169_v45 = vld [vmem:[%s9551_s9 + $0xa0] sm:$0xff]  }
  0x3d   : > { %8254 = vmatpush3.bf16.msra.mxu0 %v9146_v31  ;;  %v690_v6 = vsel %vm12113_vm0, %v681_v0, %v689_v60  ;;  %v721_v23 = vrot.slane %v719_v14, 2  ;;  %v724_v24 = vrot.slane %v722_v15, 3  ;;  %v418_v25 = vsel %vm12115_vm1, %v415_v9, %v417_v16 }
  0x3e   : > { %8302 = vmatpush3.bf16.msra.mxu1 %v9147_v32  ;;  %8255 = vmatprep.subr.bf16.mxu0 %v9148_v33  ;;  %v708_v26 = vsel %vm12113_vm0, %v698_v10, %v707_v17  ;;  %v419_v29 = vrot.slane %v9604_v3, 3  ;;  %v728_v30 = vshrl.u32 %v9625_v20, 16  ;;  %v716_v31 = vor.u32 %v715_v22, %v712_v21 }
  0x3f   : > { %8303 = vmatprep.subr.bf16.mxu1 %v9149_v34  ;;  %8311 = vmatprep.mubr.bf16.mxu1 %v690_v6  ;;  %v421_v32 = vrot.slane %v9608_v5, 3  ;;  %v740_v37 = vshll.u32 %v9639_v28, 16  ;;  %v746_v58 = vshrl.u32 %v9649_v38, 16  ;;  %v749_v60 = vshll.u32 %v9649_v38, 16 }
  0x40   : > { %v420_v42 = vsel %vm12115_vm1, %v417_v16, %v419_v29  ;;  %v717_v49 = vsel %vm12113_vm0, %v707_v17, %v716_v31  ;;  %v423_v61 = vrot.slane %v9625_v20, 3  ;;  %v425_v62 = vrot.slane %v9639_v28, 3 }
  0x41   : > { %8256 = vmatpush3.bf16.msra.mxu0 %v9148_v33  ;;  %v725_v33 = vor.u32 %v724_v24, %v721_v23  ;;  %v422_v50 = vsel %vm12115_vm1, %v419_v29, %v421_v32  ;;  %v742_v57 = vrot.slane %v740_v37, 3  ;;  %v748_v16 = vrot.slane %v746_v58, 2  ;;  %v9177_v29 = vld [vmem:[%s9551_s9 + $0x90] sm:$0xff]  }
  0x42   : > { %8304 = vmatpush3.bf16.msra.mxu1 %v9149_v34  ;;  %8257 = vmatprep.subr.bf16.mxu0 %v9150_v35  ;;  %v731_v34 = vshll.u32 %v9625_v20, 16  ;;  %v751_v17 = vrot.slane %v749_v60, 3  ;;  %v424_v21 = vsel %vm12115_vm1, %v421_v32, %v423_v61  ;;  %v426_v23 = vsel %vm12115_vm1, %v423_v61, %v425_v62 }
  0x43   : > { %8305 = vmatprep.subr.bf16.mxu1 %v9151_v36  ;;  %v726_v51 = vsel %vm12113_vm0, %v716_v31, %v725_v33  ;;  %v764_v32 = vshrl.u32 %v9677_v7, 16  ;;  %v1095_v59 = vrot.slane %v710_v12, 3 }
  0x44   : > { %v733_v52 = vrot.slane %v731_v34, 3  ;;  %v752_v31 = vor.u32 %v751_v17, %v748_v16 }
  0x45   : > { %8258 = vmatpush3.bf16.msra.mxu0 %v9150_v35  ;;  %v9166_v35 = vld [vmem:[%s9551_s9 + $0xa8] sm:$0xff]  }
  0x46   : > { %8306 = vmatpush3.bf16.msra.mxu1 %v9151_v36  ;;  %8259 = vmatprep.subr.bf16.mxu0 %v9152_v44  ;;  %v737_v36 = vshrl.u32 %v9639_v28, 16 }
  0x47   : > { %8307 = vmatprep.subr.bf16.mxu1 %v9153_v48 }
  0x48   : > { %v739_v56 = vrot.slane %v737_v36, 2 }
  0x49   : > { %8260 = vmatpush3.bf16.msra.mxu0 %v9152_v44  ;;  %v730_v44 = vrot.slane %v728_v30, 2 }
  0x4a   : > { %8308 = vmatpush3.bf16.msra.mxu1 %v9153_v48  ;;  %8261 = vmatprep.subr.bf16.mxu0 %v9154_v63  ;;  %v9657_v48 = vld [vmem:[%s9567_s11 + $0x4c] sm:$0xff]   ;;  %v743_v9 = vor.u32 %v742_v57, %v739_v56 }
  0x4b   : > { %8309 = vmatprep.subr.bf16.mxu1 %v9155_v4  ;;  %v734_v0 = vor.u32 %v733_v52, %v730_v44  ;;  %v755_v6 = vshrl.u32 %v9657_v48, 16  ;;  %v758_v10 = vshll.u32 %v9657_v48, 16  ;;  %v429_v24 = vrot.slane %v9657_v48, 3  ;;  %v9182_v52 = vld [vmem:[%s9551_s9 + $0x88] sm:$0xff]   ;;  %v9184_v57 = vld [vmem:[%s9551_s9 + $0xd0] sm:$0xff]  }
  0x4c   : > { %v1079_v44 = vshll.u32 %v9575_v41, 16 }
  0x4d   : > { %8262 = vmatpush3.bf16.msra.mxu0 %v9154_v63  ;;  %v1076_v63 = vshrl.u32 %v9575_v41, 16  ;;  %v735_v22 = vsel %vm12113_vm0, %v725_v33, %v734_v0  ;;  %v767_v33 = vshll.u32 %v9677_v7, 16  ;;  %v431_v41 = vrot.slane %v9677_v7, 3  ;;  %v9914_v7 = vld [vmem:[%s9567_s11 + $0x38] sm:$0xf] }
  0x4e   : > { %8310 = vmatpush3.bf16.msra.mxu1 %v9155_v4  ;;  %8343 = vmatprep.subr.bf16.mxu0 %v9160_v11  ;;  %v427_v4 = vrot.slane %v9649_v38, 3  ;;  %v1119_v38 = vrot.slane %v764_v32, 3 }
  0x4f   : > { %8391 = vmatprep.subr.bf16.mxu1 %v9173_v40  ;;  %v1078_v61 = vrot.slane %v1076_v63, 3 }
  0x50   : > { %8264 = vmatmul.mubr.bf16.vlgmr.msra.gmra.mxu0 %v416_v18  ;;  %v9687_v18 = vld [vmem:[%s9567_s11 + $0x5c] sm:$0xff]   ;;  %v430_v56 = vsel %vm12115_vm1, %v427_v4, %v429_v24 }
  0x51   : > { %8312 = vmatmul.mubr.bf16.vlgmr.msra.gmra.mxu1 %v699_v19  ;;  %8344 = vmatpush3.bf16.msra.mxu0 %v9160_v11  ;;  %v9172_v11 = vld [vmem:[%s9551_s9 + $0x98] sm:$0xff]   ;;  %v9179_v19 = vld [vmem:[%s9551_s9 + $0xe0] sm:$0xff]  }
  0x52   : > { %8267 = vmatprep.mubr.bf16.mxu0 %v418_v25  ;;  %8315 = vmatprep.mubr.bf16.mxu1 %v708_v26  ;;  %v757_v25 = vrot.slane %v755_v6, 2  ;;  %v744_v26 = vsel %vm12113_vm0, %v734_v0, %v743_v9  ;;  %v769_v0 = vrot.slane %v767_v33, 3 }
  0x53   : > { %8345 = vmatprep.subr.bf16.mxu0 %v9163_v27  ;;  %8392 = vmatpush3.bf16.msra.mxu1 %v9173_v40  ;;  %v9704_v40 = vld [vmem:[%s9567_s11 + $0x64] sm:$0xff]  }
  0x54   : > { %8393 = vmatprep.subr.bf16.mxu1 %v9174_v53  ;;  %v785_v16 = vshll.u32 %v9704_v40, 16 }
  0x55   : > { %8346 = vmatpush3.bf16.msra.mxu0 %v9163_v27  ;;  %v760_v27 = vrot.slane %v758_v10, 3 }
  0x56   : > { %8347 = vmatprep.subr.bf16.mxu0 %v9166_v35 }
  0x57   : > { %8394 = vmatpush3.bf16.msra.mxu1 %v9174_v53  ;;  %v753_v53 = vsel %vm12113_vm0, %v743_v9, %v752_v31  ;;  %v1081_v9 = vrot.slane %v1079_v44, 4  ;;  %v787_v44 = vrot.slane %v785_v16, 3 }
  0x58   : > { %8268 = vmatmul.mubr.bf16.gmra.mxu0 %v420_v42  ;;  %8395 = vmatprep.subr.bf16.mxu1 %v9178_v8  ;;  %v9183_v42 = vld [vmem:[%s9551_s9 + $0xd8] sm:$0xff]  }
  0x59   : > { %8316 = vmatmul.mubr.bf16.gmra.mxu1 %v717_v49  ;;  %8271 = vmatprep.mubr.bf16.mxu0 %v422_v50  ;;  %v9710_v49 = vld [vmem:[%s9567_s11 + $0x6c] sm:$0xff]   ;;  %v428_v50 = vsel %vm12115_vm1, %v425_v62, %v427_v4  ;;  %v766_v62 = vrot.slane %v764_v32, 2 }
  0x5a   : > { %8319 = vmatprep.mubr.bf16.mxu1 %v726_v51  ;;  %8348 = vmatpush3.bf16.msra.mxu0 %v9166_v35  ;;  %v773_v35 = vshrl.u32 %v9687_v18, 16  ;;  %v761_v51 = vor.u32 %v760_v27, %v757_v25  ;;  %v791_v63 = vshrl.u32 %v9710_v49, 16  ;;  %v1082_v25 = vor.u32 %v1081_v9, %v1078_v61 }
  0x5b   : > { %8349 = vmatprep.subr.bf16.mxu0 %v9169_v45  ;;  %8396 = vmatpush3.bf16.msra.mxu1 %v9178_v8  ;;  %v782_v8 = vshrl.u32 %v9704_v40, 16  ;;  %v1087_v27 = vrot.slane %v692_v54, 3  ;;  %v435_v61 = vrot.slane %v9704_v40, 3  ;;  %v1092_v9 = vrot.slane %v704_v2, 4 }
  0x5c   : > { %8397 = vmatprep.subr.bf16.mxu1 %v9179_v19  ;;  %v762_v17 = vsel %vm12113_vm0, %v752_v31, %v761_v51  ;;  %v433_v31 = vrot.slane %v9687_v18, 3 }
  0x5e   : > { %8350 = vmatpush3.bf16.msra.mxu0 %v9169_v45  ;;  %v776_v45 = vshll.u32 %v9687_v18, 16  ;;  %v1127_v18 = vrot.slane %v782_v8, 3 }
  0x5f   : > { %8351 = vmatprep.subr.bf16.mxu0 %v9172_v11  ;;  %8398 = vmatpush3.bf16.msra.mxu1 %v9179_v19  ;;  %v9187_v19 = vld [vmem:[%s9551_s9 + $0x80] sm:$0xff]  }
  0x60   : > { %8272 = vmatmul.mubr.bf16.gmra.mxu0 %v424_v21  ;;  %8399 = vmatprep.subr.bf16.mxu1 %v9183_v42  ;;  %v778_v4 = vrot.slane %v776_v45, 3  ;;  %v1083_v21 = vrot.slane %v683_v46, 3  ;;  %v770_v46 = vor.u32 %v769_v0, %v766_v62  ;;  %v9766_v62 = vld [vmem:[%s9567_s11 + $0x7c] sm:$0xff]  }
  0x61   : > { %8320 = vmatmul.mubr.bf16.gmra.mxu1 %v735_v22  ;;  %8275 = vmatprep.mubr.bf16.mxu0 %v426_v23  ;;  %v12078_v22 = vshll.u32 %v9710_v49, 16  ;;  %v9188_v23 = vld [vmem:[%s9551_s9 + $0xc8] sm:$0xff]  }
  0x62   : > { %8323 = vmatprep.mubr.bf16.mxu1 %v744_v26  ;;  %8352 = vmatpush3.bf16.msra.mxu0 %v9172_v11  ;;  %v775_v11 = vrot.slane %v773_v35, 2  ;;  %v1084_v26 = vrot.slane %v686_v47, 4  ;;  %v9749_v47 = vld [vmem:[%s9567_s11 + $0x74] sm:$0xff]  }
  0x63   : > { %8353 = vmatprep.subr.bf16.mxu0 %v9177_v29  ;;  %8400 = vmatpush3.bf16.msra.mxu1 %v9183_v42  ;;  %v784_v42 = vrot.slane %v782_v8, 2  ;;  %v12116_v8 = vshll.u32 %v9710_v49, 16 }
  0x64   : > { %8401 = vmatprep.subr.bf16.mxu1 %v9184_v57  ;;  %v779_v39 = vor.u32 %v778_v4, %v775_v11  ;;  %v1085_v43 = vor.u32 %v1084_v26, %v1083_v21  ;;  %v771_v11 = vsel %vm12113_vm0, %v761_v51, %v770_v46  ;;  %v434_v4 = vsel %vm12115_vm1, %v431_v41, %v433_v31 }
  0x65   : > { %v12077_v51 = vshrl.u32 %v9749_v47, 16 }
  0x66   : > { %8354 = vmatpush3.bf16.msra.mxu0 %v9177_v29  ;;  %v1088_v29 = vrot.slane %v695_v55, 4  ;;  %v9752_v55 = vld [vmem:[%s9551_s9 + $0x138] sm:$0xff]   ;;  %v9769_v0 = vsel %vm12114_vm2, %v1082_v25, %v1085_v43  ;;  %v780_v21 = vsel %vm12113_vm0, %v770_v46, %v779_v39  ;;  %v9781_v25 = vld [vmem:[%s9567_s11 + $0x84] ss:$0 sps:$4 sm:$0x77]   ;;  %v1096_v46 = vrot.slane %v713_v13, 4 }
  0x67   : > { %8355 = vmatprep.subr.bf16.mxu0 %v9182_v52  ;;  %8402 = vmatpush3.bf16.msra.mxu1 %v9184_v57  ;;  %v1091_v57 = vrot.slane %v701_v1, 3  ;;  %v788_v1 = vor.u32 %v787_v44, %v784_v42  ;;  %v436_v42 = vsel %vm12115_vm1, %v433_v31, %v435_v61  ;;  %v1099_v13 = vrot.slane %v719_v14, 3 }
  0x68   : > { %8276 = vmatmul.mubr.bf16.gmra.mxu0 %v428_v50  ;;  %v1089_v54 = vor.u32 %v1088_v29, %v1087_v27  ;;  %v432_v50 = vsel %vm12115_vm1, %v429_v24, %v431_v41  ;;  %8403 = vmatprep.subr.bf16.mxu1 %v9188_v23  ;;  %v12076_v41 = vshll.u32 %v9749_v47, 16  ;;  %v9792_v27 = vld [vmem:[%s9567_s11 + $0x10] sm:$0xf]  ;;  %v12074_v29 = vshll.u32 %v9766_v62, 16 }
  0x69   : > { %8324 = vmatmul.mubr.bf16.gmra.mxu1 %v753_v53  ;;  %8279 = vmatprep.mubr.bf16.mxu0 %v430_v56  ;;  %v793_v53 = vrot.slane %v791_v63, 2  ;;  %v9189_v56 = vld [vmem:[%s9551_s9 + $0xc0] sm:$0xff]   ;;  %v1093_v26 = vor.u32 %v1092_v9, %v1091_v57  ;;  %v789_v44 = vsel %vm12113_vm0, %v779_v39, %v788_v1  ;;  %v1097_v3 = vor.u32 %v1096_v46, %v1095_v59 }
  0x6a   : > { %8327 = vmatprep.mubr.bf16.mxu1 %v762_v17  ;;  %8356 = vmatpush3.bf16.msra.mxu0 %v9182_v52  ;;  %v796_v52 = vrot.slane %v12078_v22, 3  ;;  %v9772_v24 = vsel %vm12114_vm2, %v1085_v43, %v1089_v54  ;;  %v437_v17 = vrot.slane %v9710_v49, 3  ;;  %v1100_v31 = vrot.slane %v722_v15, 4 }
  0x6b   : > { %8357 = vmatprep.subr.bf16.mxu0 %v9187_v19  ;;  %8404 = vmatpush3.bf16.msra.mxu1 %v9188_v23  ;;  %v12075_v23 = vshrl.u32 %v9766_v62, 16  ;;  %v9797_v12 = vsel %vm12114_vm2, %v1089_v54, %v1093_v26  ;;  %v802_v57 = vrot.slane %v12077_v51, 2  ;;  %v818_v9 = vshrl.u32 %v9781_v25, 16 }
  0x6c   : > { %v9786_v2 = vor.u32 %v796_v52, %v793_v53  ;;  %8405 = vmatprep.subr.bf16.mxu1 %v9189_v56  ;;  %v438_v43 = vsel %vm12115_vm1, %v435_v61, %v437_v17  ;;  %v9810_v53 = vld [vmem:[%s9567_s11 + $0x18] sm:$0xf]  ;;  %v439_v52 = vrot.slane %v9749_v47, 3  ;;  %v9831_v14 = vsel %vm12114_vm2, %v1093_v26, %v1097_v3  ;;  %v9845_v26 = vld [vmem:[%s9567_s11 + $0x20] sm:$0xf] }
  0x6d   : > { %v9825_v61 = vld [vmem:[%s9551_s9 + $0x178] sm:$0xff]   ;;  %v1101_v15 = vor.u32 %v1100_v31, %v1099_v13  ;;  %v1103_v59 = vrot.slane %v728_v30, 3  ;;  %v1104_v31 = vrot.slane %v731_v34, 4  ;;  %v1108_v30 = vrot.slane %v740_v37, 4  ;;  %v9858_v34 = vld [vmem:[%s9567_s11 + $0x24] sm:$0xf] }
  0x6e   : > { %8358 = vmatpush3.bf16.msra.mxu0 %v9187_v19  ;;  %v1409_v19 = vld [vmem:[%s9567_s11 + $0xc] sm:$0x8]  ;;  %v798_v39 = vsel %vm12113_vm0, %v788_v1, %v9786_v2  ;;  %v821_v1 = vshll.u32 %v9781_v25, 16  ;;  %v440_v28 = vsel %vm12115_vm1, %v437_v17, %v439_v52  ;;  %v12117_v49 = vshrl.u32 %v9749_v47, 16 }
  0x6f   : > { %8439 = vmatprep.subr.bf16.mxu0 %v9752_v55  ;;  %8406 = vmatpush3.bf16.msra.mxu1 %v9189_v56  ;;  %v7275_v54 = vcombine.low %v1409_v19, %v9792_v27  ;;  %v805_v56 = vrot.slane %v12076_v41, 3  ;;  %v9848_v13 = vsel %vm12114_vm2, %v1097_v3, %v1101_v15  ;;  %v1105_v51 = vor.u32 %v1104_v31, %v1103_v59  ;;  %v9889_v59 = vld [vmem:[%s9567_s11 + $0x2c] sm:$0xf] }
  0x70   : > { %8280 = vmatmul.mubr.bf16.gmra.mxu0 %v432_v50  ;;  %v9807_v50 = vld [vmem:[%s9567_s11 + $0x14] sm:$0xf]  ;;  %8487 = vmatprep.subr.bf16.mxu1 %v9825_v61  ;;  %v820_v3 = vrot.slane %v818_v9, 2  ;;  %v823_v22 = vrot.slane %v821_v1, 3  ;;  %v1116_v1 = vrot.slane %v758_v10, 4  ;;  %v1120_v31 = vrot.slane %v767_v33, 4 }
  0x71   : > { %8328 = vmatmul.mubr.bf16.gmra.mxu1 %v771_v11  ;;  %8283 = vmatprep.mubr.bf16.mxu0 %v434_v4  ;;  %v7276_v5 = vcombine.low %v9807_v50, %v9810_v53  ;;  %v811_v11 = vrot.slane %v12075_v23, 2  ;;  %v814_v4 = vrot.slane %v12074_v29, 3  ;;  %v1545_v19 = vshrl.u32 %v7275_v54, 16 }
  0x72   : > { %8331 = vmatprep.mubr.bf16.mxu1 %v780_v21  ;;  %v9839_v21 = vld [vmem:[%s9567_s11 + $0x1c] sm:$0xf]  ;;  %v1548_v46 = vshll.u32 %v7275_v54, 16  ;;  %v1107_v29 = vrot.slane %v737_v36, 3  ;;  %v806_v54 = vor.u32 %v805_v56, %v802_v57  ;;  %v441_v23 = vrot.slane %v9766_v62, 3 }
  0x73   : > { %v1553_v41 = vshrl.u32 %v7276_v5, 16  ;;  %v1556_v20 = vshll.u32 %v7276_v5, 16  ;;  %v815_v36 = vor.u32 %v814_v4, %v811_v11  ;;  %v7277_v37 = vcombine.low %v9839_v21, %v9845_v26 }
  0x74   : > { %v1550_v57 = vrot.slane %v1548_v46, 4  ;;  %v807_v17 = vsel %vm12113_vm0, %v9786_v2, %v806_v54  ;;  %v442_v9 = vsel %vm12115_vm1, %v439_v52, %v441_v23  ;;  %v1112_v11 = vrot.slane %v749_v60, 4  ;;  %v9892_v2 = vld [vmem:[%s9567_s11 + $0x30] sm:$0xf] }
  0x75   : > { %v1555_v5 = vrot.slane %v1553_v41, 3  ;;  %v1558_v4 = vrot.slane %v1556_v20, 4  ;;  %v443_v60 = vrot.slane %v9781_v25, 3  ;;  %v824_v52 = vor.u32 %v823_v22, %v820_v3  ;;  %v9905_v22 = vld [vmem:[%s9567_s11 + $0x34] sm:$0xf] }
  0x76   : > { %v1565_v10 = vshll.u32 %v7277_v37, 16  ;;  %v7279_v25 = vcombine.low %v9889_v59, %v9892_v2  ;;  %v1121_v20 = vor.u32 %v1120_v31, %v1119_v38  ;;  %v1124_v33 = vrot.slane %v776_v45, 4  ;;  %v9941_v38 = vld [vmem:[%s9567_s11 + $0x40] sm:$0xf] }
  0x77   : > { %v1559_v32 = vor.u32 %v1558_v4, %v1555_v5  ;;  %v1128_v45 = vrot.slane %v785_v16, 4  ;;  %v9938_v16 = vld [vmem:[%s9567_s11 + $0x3c] sm:$0xf] }
  0x78   : > { %8284 = vmatmul.mubr.bf16.gmra.mxu0 %v436_v42  ;;  %v1109_v42 = vor.u32 %v1108_v30, %v1107_v29  ;;  %v1111_v29 = vrot.slane %v746_v58, 3  ;;  %v816_v58 = vsel %vm12113_vm0, %v806_v54, %v815_v36  ;;  %v1580_v5 = vshrl.u32 %v7279_v25, 16 }
  0x79   : > { %8332 = vmatmul.mubr.bf16.gmra.mxu1 %v789_v44  ;;  %8287 = vmatprep.mubr.bf16.mxu0 %v438_v43  ;;  %v9866_v44 = vld [vmem:[%s9567_s11 + $0x28] sm:$0xf]  ;;  %v9869_v43 = vsel %vm12114_vm2, %v1101_v15, %v1105_v51  ;;  %v1583_v4 = vshll.u32 %v7279_v25, 16  ;;  %v12118_v25 = vshll.u32 %v9749_v47, 16 }
  0x7a   : > { %8335 = vmatprep.mubr.bf16.mxu1 %v798_v39  ;;  %v1547_v39 = vrot.slane %v1545_v19, 3  ;;  %v9872_v56 = vsel %vm12114_vm2, %v1105_v51, %v1109_v42  ;;  %v7278_v15 = vcombine.low %v9858_v34, %v9866_v44  ;;  %v1115_v51 = vrot.slane %v755_v6, 3 }
  0x7b   : > { %v1113_v41 = vor.u32 %v1112_v11, %v1111_v29  ;;  %v1562_v19 = vshrl.u32 %v7277_v37, 16  ;;  %v825_v37 = vsel %vm12113_vm0, %v815_v36, %v824_v52  ;;  %v1585_v31 = vrot.slane %v1583_v4, 4 }
  0x7c   : > { %v1117_v6 = vor.u32 %v1116_v1, %v1115_v51  ;;  %v1551_v48 = vor.u32 %v1550_v57, %v1547_v39  ;;  %v1571_v30 = vshrl.u32 %v7278_v15, 16  ;;  %v1574_v3 = vshll.u32 %v7278_v15, 16 }
  0x7d   : > { %v9898_v46 = vsel %vm12114_vm2, %v1109_v42, %v1113_v41  ;;  %v1123_v42 = vrot.slane %v773_v35, 3  ;;  %v1564_v39 = vrot.slane %v1562_v19, 3  ;;  %v1567_v57 = vrot.slane %v1565_v10, 4  ;;  %v9947_v19 = vld [vmem:[%s9567_s11 + $0x44] sm:$0xf] }
  0x7e   : > { %v9908_v54 = vsel %vm12114_vm2, %v1113_v41, %v1117_v6  ;;  %v9920_v29 = vsel %vm12114_vm2, %v1117_v6, %v1121_v20  ;;  %v1576_v11 = vrot.slane %v1574_v3, 4  ;;  %v1129_v15 = vor.u32 %v1128_v45, %v1127_v18 }
  0x7f   : > { %v1125_v35 = vor.u32 %v1124_v33, %v1123_v42  ;;  %v1131_v51 = vrot.slane %v791_v63, 3  ;;  %v1132_v1 = vrot.slane %v12116_v8, 4  ;;  %v1568_v40 = vor.u32 %v1567_v57, %v1564_v39  ;;  %v9950_v63 = vld [vmem:[%s9567_s11 + $0x48] sm:$0xf] }
  0x80   : > { %8288 = vmatmul.mubr.bf16.gmra.mxu0 %v440_v28  ;;  %v444_v28 = vsel %vm12115_vm1, %v441_v23, %v443_v60  ;;  %v7280_v23 = vcombine.low %v9905_v22, %v9914_v7  ;;  %v1135_v6 = vrot.slane %v12117_v49, 3  ;;  %v1582_v10 = vrot.slane %v1580_v5, 3  ;;  %v9207_v5 = vld [vmem:[%s9551_s9 + $0x170] sm:$0xff]  }
  0x81   : > { %8336 = vmatmul.mubr.bf16.gmra.mxu1 %v807_v17  ;;  %8291 = vmatprep.mubr.bf16.mxu0 %v442_v9  ;;  %v1560_v17 = vsel %vm12114_vm2, %v1551_v48, %v1559_v32  ;;  %v1573_v9 = vrot.slane %v1571_v30, 3  ;;  %v9930_v36 = vsel %vm12114_vm2, %v1121_v20, %v1125_v35  ;;  %v9944_v60 = vsel %vm12114_vm2, %v1125_v35, %v1129_v15  ;;  %v9194_v48 = vld [vmem:[%s9551_s9 + $0x130] sm:$0xff]   ;;  %v9197_v35 = vld [vmem:[%s9551_s9 + $0x128] sm:$0xff]  }
  0x82   : > { %8339 = vmatprep.mubr.bf16.mxu1 %v816_v58  ;;  %v1589_v58 = vshrl.u32 %v7280_v23, 16  ;;  %v1592_v41 = vshll.u32 %v7280_v23, 16  ;;  %v1136_v3 = vrot.slane %v12118_v25, 4  ;;  %v1569_v20 = vsel %vm12114_vm2, %v1559_v32, %v1568_v40 }
  0x83   : > { %v1577_v52 = vor.u32 %v1576_v11, %v1573_v9  ;;  %v7281_v42 = vcombine.low %v9938_v16, %v9941_v38  ;;  %v7282_v9 = vcombine.low %v9947_v19, %v9950_v63  ;;  %v9974_v11 = vld [vmem:[%s9567_s11 + $0x4c] sm:$0xf] }
  0x84   : > { %v1591_v57 = vrot.slane %v1589_v58, 3  ;;  %v1137_v47 = vor.u32 %v1136_v3, %v1135_v6  ;;  %v7317_v58 = vcombine.low %v9792_v27, %v9807_v50  ;;  %v9251_v50 = vld [vmem:[%s9551_s9 + $0x1f0] sm:$0xff]  }
  0x85   : > { %v1578_v32 = vsel %vm12114_vm2, %v1568_v40, %v1577_v52  ;;  %v1598_v45 = vshrl.u32 %v7281_v42, 16  ;;  %v1601_v4 = vshll.u32 %v7281_v42, 16  ;;  %v1610_v40 = vshll.u32 %v7282_v9, 16  ;;  %v9212_v42 = vld [vmem:[%s9551_s9 + $0x160] sm:$0xff]  }
  0x87   : > { %v1600_v6 = vrot.slane %v1598_v45, 3  ;;  %v1612_v3 = vrot.slane %v1610_v40, 4  ;;  %v9208_v40 = vld [vmem:[%s9551_s9 + $0x110] sm:$0xff]  }
  0x88   : > { %8292 = vmatmul.mubr.bf16.gmra.mxu0 %v444_v28  ;;  %v12119_v28 = vshrl.u32 %v9766_v62, 16 }
  0x89   : > { %8340 = vmatmul.mubr.bf16.gmra.mxu1 %v825_v37  ;;  %8359 = vmatprep.mubr.bf16.mxu0 %v9769_v0  ;;  %v1133_v0 = vor.u32 %v1132_v1, %v1131_v51  ;;  %v12120_v37 = vshll.u32 %v9766_v62, 16  ;;  %v9980_v62 = vld [vmem:[%s9567_s11 + $0x50] sm:$0xf]  ;;  %v9990_v51 = vld [vmem:[%s9567_s11 + $0x58] sm:$0xf]  ;;  %v1607_v1 = vshrl.u32 %v7282_v9, 16 }
  0x8a   : > { %8407 = vmatprep.mubr.bf16.mxu1 %v1560_v17  ;;  %v1139_v33 = vrot.slane %v12119_v28, 3  ;;  %v1594_v17 = vrot.slane %v1592_v41, 4  ;;  %v7318_v41 = vcombine.low %v9810_v53, %v9839_v21 }
  0x8b   : > { %v9956_v30 = vsel %vm12114_vm2, %v1129_v15, %v1133_v0  ;;  %v1140_v39 = vrot.slane %v12120_v37, 4  ;;  %v9983_v18 = vsel %vm12114_vm2, %v1133_v0, %v1137_v47  ;;  %v9987_v15 = vld [vmem:[%s9567_s11 + $0x54] sm:$0xf]  ;;  %v7283_v0 = vcombine.low %v9974_v11, %v9980_v62  ;;  %v9203_v37 = vld [vmem:[%s9551_s9 + $0x118] sm:$0xff]  }
  0x8c   : > { %v1595_v8 = vor.u32 %v1594_v17, %v1591_v57  ;;  %v1609_v25 = vrot.slane %v1607_v1, 3  ;;  %v10023_v17 = vld [vmem:[%s9567_s11 + $0x68] sm:$0xf] }
  0x8d   : > { %v9976_v23 = vor.u32 %v1140_v39, %v1139_v33  ;;  %v1616_v28 = vshrl.u32 %v7283_v0, 16  ;;  %v1619_v33 = vshll.u32 %v7283_v0, 16  ;;  %v10020_v39 = vld [vmem:[%s9567_s11 + $0x64] sm:$0xf] }
  0x8e   : > { %v1613_v9 = vor.u32 %v1612_v3, %v1609_v25  ;;  %v10045_v25 = vld [vmem:[%s9567_s11 + $0x70] sm:$0xf]  ;;  %v10079_v0 = vld [vmem:[%s9567_s11 + $0x84] sm:$0xf] }
  0x90   : > { %8360 = vmatmul.mubr.bf16.vlgmr.msra.gmra.mxu0 %v9772_v24  ;;  %v1586_v24 = vor.u32 %v1585_v31, %v1582_v10  ;;  %v9200_v31 = vld [vmem:[%s9551_s9 + $0x120] sm:$0xff]  }
  0x91   : > { %8440 = vmatpush3.bf16.msra.mxu0 %v9752_v55  ;;  %8408 = vmatmul.mubr.bf16.vlgmr.msra.gmra.mxu1 %v1569_v20  ;;  %v9994_v55 = vsel %vm12114_vm2, %v1137_v47, %v9976_v23  ;;  %v7284_v20 = vcombine.low %v9987_v15, %v9990_v51 }
  0x92   : > { %8363 = vmatprep.mubr.bf16.mxu0 %v9797_v12  ;;  %8441 = vmatprep.subr.bf16.mxu0 %v9194_v48  ;;  %v9211_v12 = vld [vmem:[%s9551_s9 + $0x168] sm:$0xff]   ;;  %v1587_v49 = vsel %vm12114_vm2, %v1577_v52, %v1586_v24  ;;  %v1596_v10 = vsel %vm12114_vm2, %v1586_v24, %v1595_v8  ;;  %v10014_v52 = vld [vmem:[%s9567_s11 + $0x60] sm:$0xf]  ;;  %v1621_v24 = vrot.slane %v1619_v33, 4 }
  0x93   : > { %8411 = vmatprep.mubr.bf16.mxu1 %v1578_v32  ;;  %8488 = vmatpush3.bf16.msra.mxu1 %v9825_v61  ;;  %v1603_v61 = vrot.slane %v1601_v4, 4  ;;  %v1628_v47 = vshll.u32 %v7284_v20, 16  ;;  %v9216_v32 = vld [vmem:[%s9551_s9 + $0x158] sm:$0xff]   ;;  %v9213_v33 = vld [vmem:[%s9551_s9 + $0x108] sm:$0xff]  }
  0x94   : > { %8489 = vmatprep.subr.bf16.mxu1 %v9207_v5 }
  0x95   : > { %8442 = vmatpush3.bf16.msra.mxu0 %v9194_v48  ;;  %v10011_v48 = vld [vmem:[%s9567_s11 + $0x5c] sm:$0xf]  ;;  %v1604_v57 = vor.u32 %v1603_v61, %v1600_v6  ;;  %v1630_v61 = vrot.slane %v1628_v47, 4 }
  0x96   : > { %8443 = vmatprep.subr.bf16.mxu0 %v9197_v35  ;;  %v7285_v45 = vcombine.low %v10011_v48, %v10014_v52 }
  0x97   : > { %8490 = vmatpush3.bf16.msra.mxu1 %v9207_v5  ;;  %v1625_v5 = vshrl.u32 %v7284_v20, 16  ;;  %v1605_v1 = vsel %vm12114_vm2, %v1595_v8, %v1604_v57  ;;  %v9217_v8 = vld [vmem:[%s9551_s9 + $0x150] sm:$0xff]  }
  0x98   : > { %8364 = vmatmul.mubr.bf16.gmra.mxu0 %v9831_v14  ;;  %8491 = vmatprep.subr.bf16.mxu1 %v9211_v12  ;;  %v1634_v20 = vshrl.u32 %v7285_v45, 16 }
  0x99   : > { %8412 = vmatmul.mubr.bf16.gmra.mxu1 %v1587_v49  ;;  %8367 = vmatprep.mubr.bf16.mxu0 %v9848_v13  ;;  %v1614_v49 = vsel %vm12114_vm2, %v1604_v57, %v1613_v9  ;;  %v1627_v6 = vrot.slane %v1625_v5, 3  ;;  %v10056_v5 = vld [vmem:[%s9567_s11 + $0x74] sm:$0xf] }
  0x9a   : > { %8415 = vmatprep.mubr.bf16.mxu1 %v1596_v10  ;;  %8444 = vmatpush3.bf16.msra.mxu0 %v9197_v35  ;;  %v1618_v35 = vrot.slane %v1616_v28, 3  ;;  %v10042_v10 = vld [vmem:[%s9567_s11 + $0x6c] sm:$0xf]  ;;  %v1637_v28 = vshll.u32 %v7285_v45, 16 }
  0x9b   : > { %8445 = vmatprep.subr.bf16.mxu0 %v9200_v31  ;;  %8492 = vmatpush3.bf16.msra.mxu1 %v9211_v12  ;;  %v7286_v12 = vcombine.low %v10020_v39, %v10023_v17  ;;  %v1631_v47 = vor.u32 %v1630_v61, %v1627_v6  ;;  %v10070_v6 = vld [vmem:[%s9567_s11 + $0x7c] sm:$0xf] }
  0x9c   : > { %8493 = vmatprep.subr.bf16.mxu1 %v9212_v42  ;;  %v1622_v3 = vor.u32 %v1621_v24, %v1618_v35  ;;  %v7287_v35 = vcombine.low %v10042_v10, %v10045_v25  ;;  %v9223_v24 = vld [vmem:[%s9551_s9 + $0x140] sm:$0xff]  }
  0x9d   : > { %v1646_v57 = vshll.u32 %v7286_v12, 16 }
  0x9e   : > { %8446 = vmatpush3.bf16.msra.mxu0 %v9200_v31  ;;  %v1623_v45 = vsel %vm12114_vm2, %v1613_v9, %v1622_v3  ;;  %v10076_v31 = vld [vmem:[%s9567_s11 + $0x80] sm:$0xf] }
  0x9f   : > { %8447 = vmatprep.subr.bf16.mxu0 %v9203_v37  ;;  %8494 = vmatpush3.bf16.msra.mxu1 %v9212_v42  ;;  %v1648_v42 = vrot.slane %v1646_v57, 4  ;;  %v1652_v57 = vshrl.u32 %v7287_v35, 16 }
  0xa0   : > { %8368 = vmatmul.mubr.bf16.gmra.mxu0 %v9869_v43  ;;  %8495 = vmatprep.subr.bf16.mxu1 %v9216_v32  ;;  %v1643_v43 = vshrl.u32 %v7286_v12, 16  ;;  %v1636_v12 = vrot.slane %v1634_v20, 3  ;;  %v1632_v20 = vsel %vm12114_vm2, %v1622_v3, %v1631_v47 }
  0xa1   : > { %8416 = vmatmul.mubr.bf16.gmra.mxu1 %v1605_v1  ;;  %8371 = vmatprep.mubr.bf16.mxu0 %v9872_v56  ;;  %v10059_v1 = vld [vmem:[%s9567_s11 + $0x78] sm:$0xf]  ;;  %v1654_v3 = vrot.slane %v1652_v57, 3 }
  0xa2   : > { %8419 = vmatprep.mubr.bf16.mxu1 %v1614_v49  ;;  %8448 = vmatpush3.bf16.msra.mxu0 %v9203_v37  ;;  %v9222_v37 = vld [vmem:[%s9551_s9 + $0x148] sm:$0xff]   ;;  %v1639_v49 = vrot.slane %v1637_v28, 4  ;;  %v1645_v61 = vrot.slane %v1643_v43, 3  ;;  %v7288_v56 = vcombine.low %v10056_v5, %v10059_v1 }
  0xa3   : > { %8449 = vmatprep.subr.bf16.mxu0 %v9208_v40  ;;  %8496 = vmatpush3.bf16.msra.mxu1 %v9216_v32  ;;  %v9219_v32 = vld [vmem:[%s9551_s9 + $0x100] sm:$0xff]   ;;  %v10085_v28 = vld [vmem:[%s9567_s11 + $0x88] sm:$0xf] }
  0xa4   : > { %8497 = vmatprep.subr.bf16.mxu1 %v9217_v8  ;;  %v1640_v43 = vor.u32 %v1639_v49, %v1636_v12  ;;  %v1649_v13 = vor.u32 %v1648_v42, %v1645_v61  ;;  %v1664_v14 = vshll.u32 %v7288_v56, 16 }
  0xa6   : > { %8450 = vmatpush3.bf16.msra.mxu0 %v9208_v40  ;;  %v1655_v40 = vshll.u32 %v7287_v35, 16  ;;  %v1641_v9 = vsel %vm12114_vm2, %v1631_v47, %v1640_v43  ;;  %v7289_v35 = vcombine.low %v10070_v6, %v10076_v31  ;;  %v1666_v42 = vrot.slane %v1664_v14, 4 }
  0xa7   : > { %8451 = vmatprep.subr.bf16.mxu0 %v9213_v33  ;;  %8498 = vmatpush3.bf16.msra.mxu1 %v9217_v8  ;;  %v10097_v8 = vld [vmem:[%s9567_s11 + $0x8c] sm:$0xf] }
  0xa8   : > { %8372 = vmatmul.mubr.bf16.gmra.mxu0 %v9898_v46  ;;  %8499 = vmatprep.subr.bf16.mxu1 %v9222_v37  ;;  %v1661_v46 = vshrl.u32 %v7288_v56, 16  ;;  %v7290_v56 = vcombine.low %v10079_v0, %v10085_v28  ;;  %v1673_v49 = vshll.u32 %v7289_v35, 16 }
  0xa9   : > { %8420 = vmatmul.mubr.bf16.gmra.mxu1 %v1623_v45  ;;  %8375 = vmatprep.mubr.bf16.mxu0 %v9908_v54  ;;  %v10104_v45 = vld [vmem:[%s9551_s9 + $0x1b8] sm:$0xff]  }
  0xaa   : > { %8423 = vmatprep.mubr.bf16.mxu1 %v1632_v20  ;;  %8452 = vmatpush3.bf16.msra.mxu0 %v9213_v33  ;;  %v10107_v54 = vld [vmem:[%s9551_s9 + $0x1f8] sm:$0xff]   ;;  %v1657_v20 = vrot.slane %v1655_v40, 4  ;;  %v1650_v33 = vsel %vm12114_vm2, %v1640_v43, %v1649_v13  ;;  %v1663_v12 = vrot.slane %v1661_v46, 3  ;;  %v1679_v14 = vshrl.u32 %v7290_v56, 16  ;;  %v9218_v40 = vld [vmem:[%s9567_s11 + $0x84] ss:$0 sps:$4 sm:$0xff]  }
  0xab   : > { %8453 = vmatprep.subr.bf16.mxu0 %v9219_v32  ;;  %8500 = vmatpush3.bf16.msra.mxu1 %v9222_v37  ;;  %v1670_v37 = vshrl.u32 %v7289_v35, 16  ;;  %v1682_v61 = vshll.u32 %v7290_v56, 16  ;;  %v1675_v57 = vrot.slane %v1673_v49, 4  ;;  %v9228_v56 = vld [vmem:[%s9567_s11 + $0x18] sm:$0xff]  }
  0xac   : > { %8501 = vmatprep.subr.bf16.mxu1 %v9223_v24  ;;  %v1658_v47 = vor.u32 %v1657_v20, %v1654_v3  ;;  %v1144_v3 = vshrl.u32 %v9218_v40, 16  ;;  %v1147_v20 = vshll.u32 %v9218_v40, 16  ;;  %v2389_v40 = vshll.u32 %v9228_v56, 16 }
  0xad   : > { %v1672_v43 = vrot.slane %v1670_v37, 3  ;;  %v1684_v46 = vrot.slane %v1682_v61, 4 }
  0xae   : > { %8454 = vmatpush3.bf16.msra.mxu0 %v9219_v32  ;;  %v1667_v32 = vor.u32 %v1666_v42, %v1663_v12  ;;  %v1146_v49 = vrot.slane %v1144_v3, 3  ;;  %v2393_v3 = vshrl.u32 %v9228_v56, 16 }
  0xaf   : > { %8502 = vmatpush3.bf16.msra.mxu1 %v9223_v24  ;;  %8535 = vmatprep.subr.bf16.mxu0 %v10104_v45  ;;  %v1659_v24 = vsel %vm12114_vm2, %v1649_v13, %v1658_v47  ;;  %v1676_v13 = vor.u32 %v1675_v57, %v1672_v43 }
  0xb0   : > { %8376 = vmatmul.mubr.bf16.gmra.mxu0 %v9920_v29  ;;  %8583 = vmatprep.subr.bf16.mxu1 %v10107_v54  ;;  %v7291_v29 = vcombine.low %v10097_v8, %v10097_v8 }
  0xb1   : > { %8424 = vmatmul.mubr.bf16.gmra.mxu1 %v1641_v9  ;;  %8379 = vmatprep.mubr.bf16.mxu0 %v9930_v36  ;;  %v1668_v9 = vsel %vm12114_vm2, %v1658_v47, %v1667_v32  ;;  %v1681_v36 = vrot.slane %v1679_v14, 3  ;;  %v1149_v47 = vrot.slane %v1147_v20, 4  ;;  %v1677_v14 = vsel %vm12114_vm2, %v1667_v32, %v1676_v13 }
  0xb2   : > { %8427 = vmatprep.mubr.bf16.mxu1 %v1650_v33  ;;  %v9227_v33 = vld [vmem:[%s9567_s11 + $0x10] sm:$0xff]   ;;  %v1688_v35 = vshrl.u32 %v7291_v29, 16  ;;  %v1691_v12 = vshll.u32 %v7291_v29, 16  ;;  %v9229_v29 = vld [vmem:[%s9567_s11 + $0x20] sm:$0xff]   ;;  %v2391_v32 = vrot.slane %v2389_v40, 1  ;;  %v12121_v40 = vcombine.low %v9845_v26, %v9858_v34 }
  0xb3   : > { %v1685_v42 = vor.u32 %v1684_v46, %v1681_v36  ;;  %v2384_v37 = vshll.u32 %v9227_v33, 16  ;;  %v1150_v43 = vor.u32 %v1149_v47, %v1146_v49  ;;  %v9233_v36 = vld [vmem:[%s9567_s11 + $0x28] sm:$0xff]   ;;  %v2401_v20 = vshrl.u32 %v9229_v29, 16  ;;  %v9232_v47 = vld [vmem:[%s9551_s9 + $0x1b0] sm:$0xff]   ;;  %v9242_v34 = vld [vmem:[%s9551_s9 + $0x1a0] sm:$0xff]  }
  0xb4   : > { %v1690_v61 = vrot.slane %v1688_v35, 3  ;;  %v2395_v35 = vor.u32 %v2393_v3, %v2391_v32 }
  0xb5   : > { %v2386_v4 = vrot.slane %v2384_v37, 1  ;;  %v1151_v46 = vsel %vm12114_vm2, %v9976_v23, %v1150_v43 }
  0xb8   : > { %8380 = vmatmul.mubr.bf16.gmra.mxu0 %v9944_v60  ;;  %v1693_v60 = vrot.slane %v1691_v12, 4  ;;  %v9238_v12 = vld [vmem:[%s9567_s11 + $0x38] sm:$0xff]  }
  0xb9   : > { %8428 = vmatmul.mubr.bf16.gmra.mxu1 %v1659_v24  ;;  %8383 = vmatprep.mubr.bf16.mxu0 %v9956_v30  ;;  %v1686_v24 = vsel %vm12114_vm2, %v1676_v13, %v1685_v42  ;;  %v2382_v30 = vshrl.u32 %v9227_v33, 16  ;;  %v2405_v13 = vshll.u32 %v9233_v36, 16  ;;  %v2425_v26 = vshrl.u32 %v9238_v12, 16 }
  0xba   : > { %8431 = vmatprep.mubr.bf16.mxu1 %v1668_v9  ;;  %v1694_v57 = vor.u32 %v1693_v60, %v1690_v61  ;;  %v2421_v60 = vshll.u32 %v9238_v12, 16 }
  0xbb   : > { %v2387_v9 = vor.u32 %v2386_v4, %v2382_v30  ;;  %v9234_v4 = vld [vmem:[%s9567_s11 + $0x30] sm:$0xff]   ;;  %v2407_v56 = vrot.slane %v2405_v13, 1  ;;  %v9239_v30 = vld [vmem:[%s9567_s11 + $0x40] sm:$0xff]  }
  0xbc   : > { %v1695_v33 = vsel %vm12114_vm2, %v1685_v42, %v1694_v57  ;;  %v2413_v37 = vshll.u32 %v9234_v4, 16  ;;  %v2417_v61 = vshrl.u32 %v9234_v4, 16  ;;  %v2423_v21 = vrot.slane %v2421_v60, 1  ;;  %v9247_v4 = vld [vmem:[%s9551_s9 + $0x198] sm:$0xff]  }
  0xbd   : > { %v2429_v57 = vshll.u32 %v9239_v30, 16 }
  0xbf   : > { %v2431_v3 = vrot.slane %v2429_v57, 1 }
  0xc0   : > { %8384 = vmatmul.mubr.bf16.gmra.mxu0 %v9983_v18  ;;  %v2397_v18 = vshll.u32 %v9229_v29, 16 }
  0xc1   : > { %8432 = vmatmul.mubr.bf16.gmra.mxu1 %v1677_v14  ;;  %8387 = vmatprep.mubr.bf16.mxu0 %v9994_v55  ;;  %v2392_v55 = vsel %vm12111_vm3, %v2387_v9, %v2391_v32  ;;  %v2409_v14 = vshrl.u32 %v9233_v36, 16  ;;  %v2433_v32 = vshrl.u32 %v9239_v30, 16 }
  0xc2   : > { %8435 = vmatprep.mubr.bf16.mxu1 %v1686_v24  ;;  %v2399_v23 = vrot.slane %v2397_v18, 1  ;;  %v9237_v24 = vld [vmem:[%s9551_s9 + $0x1a8] sm:$0xff]   ;;  %v9244_v18 = vld [vmem:[%s9567_s11 + $0x50] sm:$0xff]  }
  0xc3   : > { %v2411_v43 = vor.u32 %v2409_v14, %v2407_v56  ;;  %v2449_v12 = vshrl.u32 %v9244_v18, 16 }
  0xc4   : > { %v2403_v42 = vor.u32 %v2401_v20, %v2399_v23  ;;  %v2400_v49 = vsel %vm12111_vm3, %v2395_v35, %v2399_v23  ;;  %v2435_v20 = vor.u32 %v2433_v32, %v2431_v3  ;;  %v2445_v35 = vshll.u32 %v9244_v18, 16  ;;  %v9262_v32 = vld [vmem:[%s9567_s11 + $0x78] sm:$0xff]  }
  0xc6   : > { %v2408_v27 = vsel %vm12111_vm3, %v2403_v42, %v2407_v56  ;;  %v9254_v56 = vld [vmem:[%s9551_s9 + $0x190] sm:$0xff]   ;;  %v2447_v14 = vrot.slane %v2445_v35, 1  ;;  %v2771_v35 = vld [vmem:[%s9567_s11 + $0x1c] sm:$0xf] }
  0xc8   : > { %8388 = vmatmul.mubr.bf16.gmra.mxu0 %v1151_v46  ;;  %v9258_v46 = vld [vmem:[%s9551_s9 + $0x1e0] sm:$0xff]  }
  0xc9   : > { %8436 = vmatmul.mubr.bf16.gmra.mxu1 %v1695_v33  ;;  %8455 = vmatprep.mubr.bf16.mxu0 %v7317_v58  ;;  %v2415_v58 = vrot.slane %v2413_v37, 1  ;;  %v12123_v33 = vcombine.low %v9892_v2, %v9905_v22  ;;  %v12124_v37 = vcombine.low %v9914_v7, %v9938_v16  ;;  %v9261_v7 = vld [vmem:[%s9551_s9 + $0x188] sm:$0xff]  }
  0xca   : > { %8503 = vmatprep.mubr.bf16.mxu1 %v2392_v55  ;;  %v2427_v55 = vor.u32 %v2425_v26, %v2423_v21  ;;  %v9271_v16 = vld [vmem:[%s9551_s9 + $0x1c8] sm:$0xff]  }
  0xcb   : > { %v2419_v53 = vor.u32 %v2417_v61, %v2415_v58  ;;  %v2416_v29 = vsel %vm12111_vm3, %v2411_v43, %v2415_v58  ;;  %v9249_v61 = vld [vmem:[%s9567_s11 + $0x60] sm:$0xff]   ;;  %v9255_v58 = vld [vmem:[%s9567_s11 + $0x68] sm:$0xff]  }
  0xcc   : > { %v2432_v2 = vsel %vm12111_vm3, %v2427_v55, %v2431_v3  ;;  %v2469_v43 = vshll.u32 %v9255_v58, 16  ;;  %v12129_v3 = vcombine.low %v10014_v52, %v10020_v39  ;;  %v9263_v55 = vld [vmem:[%s9567_s11 + $0x80] sm:$0xff]  }
  0xcd   : > { %v2424_v9 = vsel %vm12111_vm3, %v2419_v53, %v2423_v21  ;;  %v9268_v53 = vld [vmem:[%s9551_s9 + $0x180] sm:$0xff]   ;;  %v12126_v21 = vcombine.low %v9950_v63, %v9974_v11  ;;  %v10200_v63 = vld [vmem:[%s9551_s9 + $0x238] sm:$0xff]   ;;  %v2497_v39 = vshrl.u32 %v9263_v55, 16 }
  0xd0   : > { %8456 = vmatmul.mubr.bf16.vlgmr.msra.gmra.mxu0 %v7318_v41  ;;  %v9243_v41 = vld [vmem:[%s9567_s11 + $0x48] sm:$0xff]  }
  0xd1   : > { %8536 = vmatpush3.bf16.msra.mxu0 %v10104_v45  ;;  %8504 = vmatmul.mubr.bf16.vlgmr.msra.gmra.mxu1 %v2400_v49  ;;  %v9257_v45 = vld [vmem:[%s9551_s9 + $0x1e8] sm:$0xff]   ;;  %v2437_v36 = vshll.u32 %v9243_v41, 16  ;;  %v2441_v22 = vshrl.u32 %v9243_v41, 16  ;;  %v9265_v49 = vld [vmem:[%s9551_s9 + $0x1d0] sm:$0xff]   ;;  %v9272_v41 = vld [vmem:[%s9551_s9 + $0x1c0] sm:$0xff]  }
  0xd2   : > { %8459 = vmatprep.mubr.bf16.mxu0 %v12121_v40  ;;  %8537 = vmatprep.subr.bf16.mxu0 %v9232_v47  ;;  %v2465_v40 = vshrl.u32 %v9249_v61, 16 }
  0xd3   : > { %8507 = vmatprep.mubr.bf16.mxu1 %v2408_v27  ;;  %8584 = vmatpush3.bf16.msra.mxu1 %v10107_v54  ;;  %v12122_v54 = vcombine.low %v9866_v44, %v9889_v59  ;;  %v2439_v13 = vrot.slane %v2437_v36, 1  ;;  %v9248_v44 = vld [vmem:[%s9567_s11 + $0x58] sm:$0xff]   ;;  %v2451_v27 = vor.u32 %v2449_v12, %v2447_v14  ;;  %v12130_v12 = vcombine.low %v10023_v17, %v10042_v10 }
  0xd4   : > { %8585 = vmatprep.subr.bf16.mxu1 %v9251_v50  ;;  %v9264_v59 = vld [vmem:[%s9551_s9 + $0x1d8] sm:$0xff]   ;;  %v2453_v42 = vshll.u32 %v9248_v44, 16 }
  0xd5   : > { %8538 = vmatpush3.bf16.msra.mxu0 %v9232_v47  ;;  %v2440_v23 = vsel %vm12111_vm3, %v2435_v20, %v2439_v13  ;;  %v12125_v47 = vcombine.low %v9941_v38, %v9947_v19  ;;  %v2443_v60 = vor.u32 %v2441_v22, %v2439_v13  ;;  %v2457_v19 = vshrl.u32 %v9248_v44, 16  ;;  %v9269_v44 = vld [vmem:[%s9567_s11 + $0x88] sm:$0xff]  }
  0xd6   : > { %8539 = vmatprep.subr.bf16.mxu0 %v9237_v24  ;;  %v2493_v22 = vshll.u32 %v9263_v55, 16  ;;  %v2505_v17 = vshrl.u32 %v9269_v44, 16 }
  0xd7   : > { %8586 = vmatpush3.bf16.msra.mxu1 %v9251_v50  ;;  %v2455_v50 = vrot.slane %v2453_v42, 1  ;;  %v2448_v38 = vsel %vm12111_vm3, %v2443_v60, %v2447_v14  ;;  %v12131_v42 = vcombine.low %v10045_v25, %v10056_v5 }
  0xd8   : > { %8460 = vmatmul.mubr.bf16.gmra.mxu0 %v12122_v54  ;;  %8587 = vmatprep.subr.bf16.mxu1 %v9257_v45  ;;  %v2473_v54 = vshrl.u32 %v9255_v58, 16 }
  0xd9   : > { %8508 = vmatmul.mubr.bf16.gmra.mxu1 %v2416_v29  ;;  %8463 = vmatprep.mubr.bf16.mxu0 %v12123_v33  ;;  %v2456_v30 = vsel %vm12111_vm3, %v2451_v27, %v2455_v50  ;;  %v9256_v29 = vld [vmem:[%s9567_s11 + $0x70] sm:$0xff]   ;;  %v2459_v26 = vor.u32 %v2457_v19, %v2455_v50  ;;  %v12128_v33 = vcombine.low %v9990_v51, %v10011_v48  ;;  %v3294_v27 = vld [vmem:[%s9567_s11 + $0x18] sm:$0xe]  ;;  %v10240_v19 = vld [vmem:[%s9567_s11 + $0x28] sm:$0xff]  }
  0xda   : > { %8511 = vmatprep.mubr.bf16.mxu1 %v2424_v9  ;;  %8540 = vmatpush3.bf16.msra.mxu0 %v9237_v24  ;;  %v2461_v24 = vshll.u32 %v9249_v61, 16  ;;  %v2471_v9 = vrot.slane %v2469_v43, 1  ;;  %v2477_v11 = vshll.u32 %v9256_v29, 16 }
  0xdb   : > { %8541 = vmatprep.subr.bf16.mxu0 %v9242_v34  ;;  %8588 = vmatpush3.bf16.msra.mxu1 %v9257_v45  ;;  %v12127_v45 = vcombine.low %v9980_v62, %v9987_v15  ;;  %v2481_v15 = vshrl.u32 %v9256_v29, 16  ;;  %v12105_v29 = vshrl.u32 %v10240_v19, 16 }
  0xdc   : > { %8589 = vmatprep.subr.bf16.mxu1 %v9258_v46  ;;  %v2463_v57 = vrot.slane %v2461_v24, 1  ;;  %v2479_v18 = vrot.slane %v2477_v11, 1  ;;  %v2475_v20 = vor.u32 %v2473_v54, %v2471_v9  ;;  %v12132_v24 = vcombine.low %v10059_v1, %v10070_v6  ;;  %v10247_v6 = vld [vmem:[%s9567_s11 + $0x30] sm:$0xff]   ;;  %v10268_v54 = vld [vmem:[%s9567_s11 + $0x40] sm:$0xff]  }
  0xde   : > { %8542 = vmatpush3.bf16.msra.mxu0 %v9242_v34  ;;  %v2467_v34 = vor.u32 %v2465_v40, %v2463_v57  ;;  %v2464_v36 = vsel %vm12111_vm3, %v2459_v26, %v2463_v57  ;;  %v2483_v13 = vor.u32 %v2481_v15, %v2479_v18  ;;  %v2480_v51 = vsel %vm12111_vm3, %v2475_v20, %v2479_v18  ;;  %v9280_v18 = vld [vmem:[%s9551_s9 + $0x230] sm:$0xff]  }
  0xdf   : > { %8543 = vmatprep.subr.bf16.mxu0 %v9247_v4  ;;  %8590 = vmatpush3.bf16.msra.mxu1 %v9258_v46  ;;  %v2485_v46 = vshll.u32 %v9262_v32, 16  ;;  %v12102_v26 = vshll.u32 %v10247_v6, 16  ;;  %v3323_v15 = vrot.slane %v10247_v6, 1  ;;  %v12094_v20 = vshll.u32 %v10268_v54, 16 }
  0xe0   : > { %8464 = vmatmul.mubr.bf16.gmra.mxu0 %v12124_v37  ;;  %8591 = vmatprep.subr.bf16.mxu1 %v9264_v59  ;;  %v2472_v62 = vsel %vm12111_vm3, %v2467_v34, %v2471_v9  ;;  %v2495_v37 = vrot.slane %v2493_v22, 1  ;;  %v12134_v34 = vcombine.low %v10085_v28, %v10097_v8  ;;  %v10260_v9 = vld [vmem:[%s9567_s11 + $0x38] sm:$0xff]  }
  0xe1   : > { %8512 = vmatmul.mubr.bf16.gmra.mxu1 %v2432_v2  ;;  %8467 = vmatprep.mubr.bf16.mxu0 %v12125_v47  ;;  %v2489_v2 = vshrl.u32 %v9262_v32, 16  ;;  %v10225_v47 = vld [vmem:[%s9567_s11 + $0x20] sm:$0xff]   ;;  %v2931_v8 = vrot.slane %v12102_v26, 1  ;;  %v12101_v55 = vshrl.u32 %v10260_v9, 16 }
  0xe2   : > { %8515 = vmatprep.mubr.bf16.mxu1 %v2440_v23  ;;  %8544 = vmatpush3.bf16.msra.mxu0 %v9247_v4  ;;  %v2487_v4 = vrot.slane %v2485_v46, 1  ;;  %v2501_v23 = vshll.u32 %v9269_v44, 16  ;;  %v2499_v61 = vor.u32 %v2497_v39, %v2495_v37  ;;  %v2913_v25 = vshll.u32 %v10225_v47, 16 }
  0xe3   : > { %8545 = vmatprep.subr.bf16.mxu0 %v9254_v56  ;;  %8592 = vmatpush3.bf16.msra.mxu1 %v9264_v59  ;;  %v2770_v59 = vld [vmem:[%s9567_s11 + $0x18] sm:$0xf]  ;;  %v3319_v1 = vrot.slane %v10225_v47, 1 }
  0xe4   : > { %8593 = vmatprep.subr.bf16.mxu1 %v9265_v49  ;;  %v7400_v48 = vcombine.low %v2770_v59, %v2771_v35  ;;  %v2488_v52 = vsel %vm12111_vm3, %v2483_v13, %v2487_v4  ;;  %v2503_v60 = vrot.slane %v2501_v23, 1  ;;  %v2947_v23 = vrot.slane %v12094_v20, 1 }
  0xe6   : > { %8546 = vmatpush3.bf16.msra.mxu0 %v9254_v56  ;;  %v2491_v56 = vor.u32 %v2489_v2, %v2487_v4  ;;  %v2908_v14 = vshll.u32 %v7400_v48, 16  ;;  %v2906_v58 = vshrl.u32 %v7400_v48, 16  ;;  %v2504_v5 = vsel %vm12111_vm3, %v2499_v61, %v2503_v60 }
  0xe7   : > { %8547 = vmatprep.subr.bf16.mxu0 %v9261_v7  ;;  %8594 = vmatpush3.bf16.msra.mxu1 %v9265_v49  ;;  %v9270_v49 = vld [vmem:[%s9567_s11 + $0x90] ss:$0 sps:$4 sm:$0x11]  }
  0xe8   : > { %8468 = vmatmul.mubr.bf16.gmra.mxu0 %v12126_v21  ;;  %8595 = vmatprep.subr.bf16.mxu1 %v9271_v16  ;;  %v2496_v50 = vsel %vm12111_vm3, %v2491_v56, %v2495_v37  ;;  %v2509_v10 = vshll.u32 %v9270_v49, 16  ;;  %v3327_v56 = vrot.slane %v10268_v54, 1 }
  0xe9   : > { %8516 = vmatmul.mubr.bf16.gmra.mxu1 %v2448_v38  ;;  %8471 = vmatprep.mubr.bf16.mxu0 %v12127_v45  ;;  %v12133_v38 = vcombine.low %v10076_v31, %v10079_v0  ;;  %v2917_v0 = vshrl.u32 %v10225_v47, 16  ;;  %v12104_v31 = vshll.u32 %v10240_v19, 16 }
  0xea   : > { %8519 = vmatprep.mubr.bf16.mxu1 %v2456_v30  ;;  %8548 = vmatpush3.bf16.msra.mxu0 %v9261_v7  ;;  %v2910_v7 = vrot.slane %v2908_v14, 1  ;;  %v2507_v30 = vor.u32 %v2505_v17, %v2503_v60  ;;  %v2511_v40 = vrot.slane %v2509_v10, 1 }
  0xeb   : > { %8549 = vmatprep.subr.bf16.mxu0 %v9268_v53  ;;  %8596 = vmatpush3.bf16.msra.mxu1 %v9271_v16  ;;  %v10231_v16 = vcombine.low %v3294_v27, %v2771_v35  ;;  %v2923_v11 = vrot.slane %v12104_v31, 1  ;;  %v10287_v35 = vld [vmem:[%s9567_s11 + $0x48] sm:$0xff]  }
  0xec   : > { %8597 = vmatprep.subr.bf16.mxu1 %v9272_v41  ;;  %v2911_v43 = vor.u32 %v2910_v7, %v2906_v58  ;;  %v12092_v14 = vshll.u32 %v10287_v35, 16  ;;  %v12093_v7 = vshrl.u32 %v10287_v35, 16 }
  0xed   : > { %v3318_v21 = vrot.slane %v10231_v16, 1  ;;  %v2927_v28 = vor.u32 %v12105_v29, %v2923_v11 }
  0xee   : > { %8550 = vmatpush3.bf16.msra.mxu0 %v9268_v53  ;;  %v2915_v53 = vrot.slane %v2913_v25, 1 }
  0xef   : > { %8598 = vmatpush3.bf16.msra.mxu1 %v9272_v41  ;;  %8631 = vmatprep.subr.bf16.mxu0 %v10200_v63  ;;  %v2512_v41 = vsel %vm12111_vm3, %v2507_v30, %v2511_v40  ;;  %v3320_v57 = vsel %vm12112_vm4, %v3318_v21, %v3319_v1  ;;  %v2932_v13 = vsel %vm12111_vm3, %v2927_v28, %v2931_v8  ;;  %v9286_v30 = vld [vmem:[%s9551_s9 + $0x220] sm:$0xff]   ;;  %v10322_v21 = vld [vmem:[%s9567_s11 + $0x58] sm:$0xff]  }
  0xf0   : > { %8472 = vmatmul.mubr.bf16.gmra.mxu0 %v12128_v33  ;;  %v2916_v45 = vsel %vm12111_vm3, %v2911_v43, %v2915_v53  ;;  %v2919_v32 = vor.u32 %v2917_v0, %v2915_v53  ;;  %v12103_v33 = vshrl.u32 %v10247_v6, 16  ;;  %v2955_v53 = vrot.slane %v12092_v14, 1 }
  0xf1   : > { %8520 = vmatmul.mubr.bf16.gmra.mxu1 %v2464_v36  ;;  %8475 = vmatprep.mubr.bf16.mxu0 %v12129_v3  ;;  %v3321_v36 = vrot.slane %v10240_v19, 1 }
  0xf2   : > { %8523 = vmatprep.mubr.bf16.mxu1 %v2472_v62  ;;  %v12097_v62 = vshll.u32 %v10260_v9, 16  ;;  %v2924_v46 = vsel %vm12111_vm3, %v2919_v32, %v2923_v11  ;;  %v2935_v22 = vor.u32 %v12103_v33, %v2931_v8  ;;  %v2959_v32 = vor.u32 %v12093_v7, %v2955_v53 }
  0xf3   : > { %v3322_v3 = vsel %vm12112_vm4, %v3319_v1, %v3321_v36  ;;  %v3324_v59 = vsel %vm12112_vm4, %v3321_v36, %v3323_v15  ;;  %v10334_v36 = vld [vmem:[%s9567_s11 + $0x60] sm:$0xff]  }
  0xf4   : > { %v2939_v44 = vrot.slane %v12097_v62, 1 }
  0xf6   : > { %v2943_v39 = vor.u32 %v12101_v55, %v2939_v44  ;;  %v2940_v60 = vsel %vm12111_vm3, %v2935_v22, %v2939_v44 }
  0xf8   : > { %8476 = vmatmul.mubr.bf16.gmra.mxu0 %v12130_v12  ;;  %v9283_v12 = vld [vmem:[%s9551_s9 + $0x228] sm:$0xff]   ;;  %v2948_v58 = vsel %vm12111_vm3, %v2943_v39, %v2947_v23  ;;  %v12082_v39 = vshll.u32 %v10334_v36, 16 }
  0xf9   : > { %8524 = vmatmul.mubr.bf16.gmra.mxu1 %v2480_v51  ;;  %8479 = vmatprep.mubr.bf16.mxu0 %v12131_v42  ;;  %v3325_v51 = vrot.slane %v10260_v9, 1  ;;  %v10301_v42 = vld [vmem:[%s9567_s11 + $0x50] sm:$0xff]  }
  0xfa   : > { %8527 = vmatprep.mubr.bf16.mxu1 %v2488_v52  ;;  %v3331_v8 = vrot.slane %v10301_v42, 1 }
  0xfb   : > { %v3326_v27 = vsel %vm12112_vm4, %v3323_v15, %v3325_v51  ;;  %v9289_v15 = vld [vmem:[%s9551_s9 + $0x218] sm:$0xff]  }
 0x100   : > { %8480 = vmatmul.mubr.bf16.gmra.mxu0 %v12132_v24 }
 0x101   : > { %8528 = vmatmul.mubr.bf16.gmra.mxu1 %v2496_v50  ;;  %8483 = vmatprep.mubr.bf16.mxu0 %v12133_v38  ;;  %v12095_v50 = vshrl.u32 %v10268_v54, 16  ;;  %v3328_v38 = vsel %vm12112_vm4, %v3325_v51, %v3327_v56 }
 0x102   : > { %8531 = vmatprep.mubr.bf16.mxu1 %v2504_v5  ;;  %v12088_v5 = vshll.u32 %v10301_v42, 16 }
 0x104   : > { %v2963_v11 = vrot.slane %v12088_v5, 1 }
 0x106   : > { %v2964_v51 = vsel %vm12111_vm3, %v2959_v32, %v2963_v11 }
 0x108   : > { %8484 = vmatmul.mubr.bf16.gmra.mxu0 %v12134_v34 }
 0x109   : > { %8532 = vmatmul.mubr.bf16.gmra.mxu1 %v2512_v41  ;;  %8551 = vmatprep.mubr.bf16.mxu0 %v2916_v45  ;;  %v2951_v41 = vor.u32 %v12095_v50, %v2947_v23  ;;  %v3329_v45 = vrot.slane %v10287_v35, 1 }
 0x10a   : > { %8599 = vmatprep.mubr.bf16.mxu1 %v3320_v57 }
 0x10b   : > { %v3330_v44 = vsel %vm12112_vm4, %v3327_v56, %v3329_v45 }
 0x110   : > { %v8265_v4 = vpop.f32.mrf.mxu0  ;;  %8552 = vmatmul.mubr.bf16.vlgmr.msra.gmra.mxu0 %v2924_v46 }
 0x111   : > { %v8313_v2 = vpop.f32.mrf.mxu1  ;;  %8632 = vmatpush3.bf16.msra.mxu0 %v10200_v63  ;;  %8600 = vmatmul.mubr.bf16.vlgmr.msra.gmra.mxu1 %v3322_v3 }
 0x112   : > { %v10293_v48 = vadd.f32 %v8313_v2, %v8265_v4  ;;  %v543_v52 = vpop.f32.mrf.mxu0  ;;  %8555 = vmatprep.mubr.bf16.mxu0 %v2932_v13  ;;  %8633 = vmatprep.subr.bf16.mxu0 %v9280_v18  ;;  %v2956_v4 = vsel %vm12111_vm3, %v2951_v41, %v2955_v53  ;;  %v10368_v53 = vld [vmem:[%s9567_s11 + $0x70] sm:$0xff]   ;;  %v3335_v41 = vrot.slane %v10334_v36, 1 }
 0x113   : > { %v924_v63 = vpop.f32.mrf.mxu1  ;;  %8603 = vmatprep.mubr.bf16.mxu1 %v3324_v59  ;;  %v12090_v59 = vshrl.u32 %v10301_v42, 16 }
 0x114   : > { %v10304_v37 = vadd.f32 %v924_v63, %v543_v52  ;;  %v8266_v49 = vpop.f32.mrf.mxu0  ;;  %v12085_v52 = vshrl.u32 %v10322_v21, 16  ;;  %v9292_v63 = vld [vmem:[%s9551_s9 + $0x210] sm:$0xff]  }
 0x115   : > { %v8314_v61 = vpop.f32.mrf.mxu1  ;;  %8634 = vmatpush3.bf16.msra.mxu0 %v9280_v18  ;;  %v12084_v18 = vshll.u32 %v10322_v21, 16 }
 0x116   : > { %v10310_v17 = vadd.f32 %v8314_v61, %v8266_v49  ;;  %v546_v10 = vpop.f32.mrf.mxu0  ;;  %8635 = vmatprep.subr.bf16.mxu0 %v9283_v12 }
 0x117   : > { %v927_v24 = vpop.f32.mrf.mxu1  ;;  %v2971_v61 = vrot.slane %v12084_v18, 1 }
 0x118   : > { %v10317_v40 = vadd.f32 %v927_v24, %v546_v10  ;;  %v8269_v43 = vpop.f32.mrf.mxu0  ;;  %8556 = vmatmul.mubr.bf16.gmra.mxu0 %v2940_v60  ;;  %v10356_v60 = vld [vmem:[%s9567_s11 + $0x68] sm:$0xff]   ;;  %v2967_v10 = vor.u32 %v12090_v59, %v2963_v11 }
 0x119   : > { %v8317_v1 = vpop.f32.mrf.mxu1  ;;  %8604 = vmatmul.mubr.bf16.gmra.mxu1 %v3326_v27  ;;  %8559 = vmatprep.mubr.bf16.mxu0 %v2948_v58  ;;  %v3333_v58 = vrot.slane %v10322_v21, 1  ;;  %v12079_v11 = vshll.u32 %v10356_v60, 16 }
 0x11a   : > { %v10327_v57 = vadd.f32 %v8317_v1, %v8269_v43  ;;  %v559_v34 = vpop.f32.mrf.mxu0  ;;  %8607 = vmatprep.mubr.bf16.mxu1 %v3328_v38  ;;  %8636 = vmatpush3.bf16.msra.mxu0 %v9283_v12  ;;  %v3332_v12 = vsel %vm12112_vm4, %v3329_v45, %v3331_v8  ;;  %v2979_v43 = vrot.slane %v12082_v39, 1  ;;  %v9295_v45 = vld [vmem:[%s9551_s9 + $0x208] sm:$0xff]  }
 0x11b   : > { %v940_v28 = vpop.f32.mrf.mxu1  ;;  %8637 = vmatprep.subr.bf16.mxu0 %v9286_v30 }
 0x11c   : > { %v10338_v46 = vadd.f32 %v940_v28, %v559_v34  ;;  %v8270_v3 = vpop.f32.mrf.mxu0 }
 0x11d   : > { %v8318_v13 = vpop.f32.mrf.mxu1 }
 0x11e   : > { %v10344_v2 = vadd.f32 %v8318_v13, %v8270_v3  ;;  %v562_v22 = vpop.f32.mrf.mxu0  ;;  %8638 = vmatpush3.bf16.msra.mxu0 %v9286_v30  ;;  %v2975_v30 = vor.u32 %v12085_v52, %v2971_v61  ;;  %v2972_v3 = vsel %vm12111_vm3, %v2967_v10, %v2971_v61  ;;  %v3334_v13 = vsel %vm12112_vm4, %v3331_v8, %v3333_v58  ;;  %v9298_v61 = vld [vmem:[%s9551_s9 + $0x200] sm:$0xff]   ;;  %v10418_v52 = vld [vmem:[%s9567_s11 + $0x88] sm:$0xff]  }
 0x11f   : > { %v943_v23 = vpop.f32.mrf.mxu1  ;;  %8639 = vmatprep.subr.bf16.mxu0 %v9289_v15  ;;  %v2987_v10 = vrot.slane %v12079_v11, 1  ;;  %v12098_v5 = vshrl.u32 %v10418_v52, 16  ;;  %v3345_v50 = vrot.slane %v10418_v52, 1 }
 0x120   : > { %v10351_v49 = vadd.f32 %v943_v23, %v562_v22  ;;  %v8273_v56 = vpop.f32.mrf.mxu0  ;;  %8560 = vmatmul.mubr.bf16.gmra.mxu0 %v2956_v4  ;;  %v2980_v22 = vsel %vm12111_vm3, %v2975_v30, %v2979_v43  ;;  %v12080_v23 = vshll.u32 %v10368_v53, 16 }
 0x121   : > { %v8321_v27 = vpop.f32.mrf.mxu1  ;;  %8608 = vmatmul.mubr.bf16.gmra.mxu1 %v3330_v44  ;;  %8563 = vmatprep.mubr.bf16.mxu0 %v2964_v51  ;;  %v12081_v51 = vshrl.u32 %v10356_v60, 16 }
 0x122   : > { %v10361_v24 = vadd.f32 %v8321_v27, %v8273_v56  ;;  %v575_v38 = vpop.f32.mrf.mxu0  ;;  %8611 = vmatprep.mubr.bf16.mxu1 %v3332_v12  ;;  %8640 = vmatpush3.bf16.msra.mxu0 %v9289_v15  ;;  %v12083_v15 = vshrl.u32 %v10334_v36, 16  ;;  %v3336_v56 = vsel %vm12112_vm4, %v3333_v58, %v3335_v41  ;;  %v3337_v58 = vrot.slane %v10356_v60, 1 }
 0x123   : > { %v956_v1 = vpop.f32.mrf.mxu1  ;;  %8641 = vmatprep.subr.bf16.mxu0 %v9292_v63 }
 0x124   : > { %v10372_v34 = vadd.f32 %v956_v1, %v575_v38  ;;  %v8274_v32 = vpop.f32.mrf.mxu0  ;;  %v10390_v38 = vld [vmem:[%s9567_s11 + $0x78] sm:$0xff]   ;;  %v3338_v11 = vsel %vm12112_vm4, %v3335_v41, %v3337_v58 }
 0x125   : > { %v8322_v28 = vpop.f32.mrf.mxu1 }
 0x126   : > { %v10378_v4 = vadd.f32 %v8322_v28, %v8274_v32  ;;  %v578_v44 = vpop.f32.mrf.mxu0  ;;  %8642 = vmatpush3.bf16.msra.mxu0 %v9292_v63  ;;  %v2983_v63 = vor.u32 %v12083_v15, %v2979_v43  ;;  %v2991_v28 = vor.u32 %v12081_v51, %v2987_v10  ;;  %v12089_v15 = vshrl.u32 %v10390_v38, 16 }
 0x127   : > { %v959_v12 = vpop.f32.mrf.mxu1  ;;  %8643 = vmatprep.subr.bf16.mxu0 %v9295_v45 }
 0x128   : > { %v10385_v8 = vadd.f32 %v959_v12, %v578_v44  ;;  %v8277_v27 = vpop.f32.mrf.mxu0  ;;  %8564 = vmatmul.mubr.bf16.gmra.mxu0 %v2972_v3  ;;  %v2995_v3 = vrot.slane %v12080_v23, 1  ;;  %v10402_v44 = vld [vmem:[%s9567_s11 + $0x80] sm:$0xff]   ;;  %v12087_v23 = vshrl.u32 %v10368_v53, 16 }
 0x129   : > { %v8325_v30 = vpop.f32.mrf.mxu1  ;;  %8612 = vmatmul.mubr.bf16.gmra.mxu1 %v3334_v13  ;;  %8567 = vmatprep.mubr.bf16.mxu0 %v2980_v22  ;;  %v3339_v22 = vrot.slane %v10368_v53, 1 }
 0x12a   : > { %v10395_v1 = vadd.f32 %v8325_v30, %v8277_v27  ;;  %v591_v32 = vpop.f32.mrf.mxu0  ;;  %8615 = vmatprep.mubr.bf16.mxu1 %v3336_v56  ;;  %8644 = vmatpush3.bf16.msra.mxu0 %v9295_v45  ;;  %v12086_v27 = vshll.u32 %v10390_v38, 16  ;;  %v2988_v30 = vsel %vm12111_vm3, %v2983_v63, %v2987_v10  ;;  %v2996_v39 = vsel %vm12111_vm3, %v2991_v28, %v2995_v3 }
 0x12b   : > { %v972_v13 = vpop.f32.mrf.mxu1  ;;  %8645 = vmatprep.subr.bf16.mxu0 %v9298_v61  ;;  %v3340_v18 = vsel %vm12112_vm4, %v3337_v58, %v3339_v22  ;;  %v2999_v28 = vor.u32 %v12087_v23, %v2995_v3 }
 0x12c   : > { %v10405_v43 = vadd.f32 %v972_v13, %v591_v32  ;;  %v8278_v12 = vpop.f32.mrf.mxu0  ;;  %v12091_v32 = vshll.u32 %v10402_v44, 16  ;;  %v3003_v63 = vrot.slane %v12086_v27, 1 }
 0x12d   : > { %v8326_v56 = vpop.f32.mrf.mxu1 }
 0x12e   : > { %v10411_v51 = vadd.f32 %v8326_v56, %v8278_v12  ;;  %v594_v45 = vpop.f32.mrf.mxu0  ;;  %8646 = vmatpush3.bf16.msra.mxu0 %v9298_v61  ;;  %v10427_v56 = vld [vmem:[%s9567_s11 + $0x90] sm:$0xff]  }
 0x12f   : > { %v975_v13 = vpop.f32.mrf.mxu1 }
 0x130   : > { %v10420_v10 = vadd.f32 %v975_v13, %v594_v45  ;;  %v8281_v41 = vpop.f32.mrf.mxu0  ;;  %8568 = vmatmul.mubr.bf16.gmra.mxu0 %v2988_v30  ;;  %v3341_v45 = vrot.slane %v10390_v38, 1  ;;  %v3007_v30 = vor.u32 %v12089_v15, %v3003_v63  ;;  %v3011_v13 = vrot.slane %v12091_v32, 1 }
 0x131   : > { %v8329_v12 = vpop.f32.mrf.mxu1  ;;  %8616 = vmatmul.mubr.bf16.gmra.mxu1 %v3338_v11  ;;  %8571 = vmatprep.mubr.bf16.mxu0 %v2996_v39  ;;  %v12096_v39 = vshll.u32 %v10418_v52, 16  ;;  %v3343_v11 = vrot.slane %v10402_v44, 1  ;;  %v12100_v15 = vshll.u32 %v10427_v56, 16 }
 0x132   : > { %v10429_v61 = vadd.f32 %v8329_v12, %v8281_v41  ;;  %v607_v58 = vpop.f32.mrf.mxu0  ;;  %8619 = vmatprep.mubr.bf16.mxu1 %v3340_v18  ;;  %v3004_v12 = vsel %vm12111_vm3, %v2999_v28, %v3003_v63  ;;  %v12099_v18 = vshrl.u32 %v10402_v44, 16  ;;  %v3342_v14 = vsel %vm12112_vm4, %v3339_v22, %v3341_v45 }
 0x133   : > { %v988_v27 = vpop.f32.mrf.mxu1  ;;  %v3012_v7 = vsel %vm12111_vm3, %v3007_v30, %v3011_v13  ;;  %v3344_v63 = vsel %vm12112_vm4, %v3341_v45, %v3343_v11 }
 0x134   : > { %v10438_v3 = vadd.f32 %v988_v27, %v607_v58  ;;  %v8282_v23 = vpop.f32.mrf.mxu0  ;;  %v3019_v58 = vrot.slane %v12096_v39, 1  ;;  %v3015_v22 = vor.u32 %v12099_v18, %v3011_v13  ;;  %v9297_v39 = vld [vmem:[%s9567_s11 + $0x98] ss:$0 sps:$4 sm:$0x11]   ;;  %v3029_v18 = vshrl.u32 %v10427_v56, 16 }
 0x135   : > { %v8330_v41 = vpop.f32.mrf.mxu1 }
 0x136   : > { %v10444_v59 = vadd.f32 %v8330_v41, %v8282_v23  ;;  %v610_v32 = vpop.f32.mrf.mxu0  ;;  %v3023_v30 = vor.u32 %v12098_v5, %v3019_v58  ;;  %v3027_v41 = vrot.slane %v12100_v15, 1  ;;  %v3346_v5 = vsel %vm12112_vm4, %v3343_v11, %v3345_v50 }
 0x137   : > { %v991_v27 = vpop.f32.mrf.mxu1  ;;  %v3020_v55 = vsel %vm12111_vm3, %v3015_v22, %v3019_v58 }
 0x138   : > { %v10451_v28 = vadd.f32 %v991_v27, %v610_v32  ;;  %v8285_v20 = vpop.f32.mrf.mxu0  ;;  %8572 = vmatmul.mubr.bf16.gmra.mxu0 %v3004_v12  ;;  %v3633_v32 = vshrl.u32 %v10231_v16, 16  ;;  %v3636_v27 = vshll.u32 %v10231_v16, 16 }
 0x139   : > { %v8333_v23 = vpop.f32.mrf.mxu1  ;;  %8620 = vmatmul.mubr.bf16.gmra.mxu1 %v3342_v14  ;;  %8575 = vmatprep.mubr.bf16.mxu0 %v3012_v7  ;;  %v3347_v7 = vrot.slane %v10427_v56, 1 }
 0x13a   : > { %v10462_v45 = vadd.f32 %v8333_v23, %v8285_v20  ;;  %v623_v12 = vpop.f32.mrf.mxu0  ;;  %8623 = vmatprep.mubr.bf16.mxu1 %v3344_v63  ;;  %v3028_v20 = vsel %vm12111_vm3, %v3023_v30, %v3027_v41  ;;  %v3033_v23 = vshll.u32 %v9297_v39, 16  ;;  %v3635_v26 = vrot.slane %v3633_v32, 1 }
 0x13b   : > { %v1004_v14 = vpop.f32.mrf.mxu1  ;;  %v3638_v33 = vrot.slane %v3636_v27, 2  ;;  %v3348_v31 = vsel %vm12112_vm4, %v3345_v50, %v3347_v7  ;;  %v3349_v32 = vrot.slane %v9297_v39, 1 }
 0x13c   : > { %v10466_v62 = vadd.f32 %v1004_v14, %v623_v12  ;;  %v8286_v13 = vpop.f32.mrf.mxu0  ;;  %v3640_v12 = vrot.slane %v2917_v0, 1  ;;  %v3641_v14 = vrot.slane %v2913_v25, 2  ;;  %v3035_v30 = vrot.slane %v3033_v23, 1 }
 0x13d   : > { %v8334_v15 = vpop.f32.mrf.mxu1  ;;  %v3639_v47 = vor.u32 %v3638_v33, %v3635_v26  ;;  %v3350_v23 = vsel %vm12112_vm4, %v3347_v7, %v3349_v32  ;;  %v12137_v33 = vshrl.u32 %v10247_v6, 16 }
 0x13e   : > { %v10472_v63 = vadd.f32 %v8334_v15, %v8286_v13  ;;  %v626_v16 = vpop.f32.mrf.mxu0  ;;  %v3031_v15 = vor.u32 %v3029_v18, %v3027_v41  ;;  %v3642_v25 = vor.u32 %v3641_v14, %v3640_v12  ;;  %v12138_v14 = vshll.u32 %v10247_v6, 16 }
 0x13f   : > { %v1007_v11 = vpop.f32.mrf.mxu1  ;;  %v3648_v12 = vrot.slane %v12137_v33, 1 }
 0x140   : > { %v10479_v29 = vadd.f32 %v1007_v11, %v626_v16  ;;  %v8289_v58 = vpop.f32.mrf.mxu0  ;;  %8576 = vmatmul.mubr.bf16.gmra.mxu0 %v3020_v55  ;;  %v12135_v55 = vshrl.u32 %v10240_v19, 16  ;;  %v3036_v39 = vsel %vm12111_vm3, %v3031_v15, %v3035_v30  ;;  %v3643_v26 = vsel %vm12110_vm5, %v3639_v47, %v3642_v25 }
 0x141   : > { %v8337_v22 = vpop.f32.mrf.mxu1  ;;  %8624 = vmatmul.mubr.bf16.gmra.mxu1 %v3346_v5  ;;  %8579 = vmatprep.mubr.bf16.mxu0 %v3028_v20  ;;  %v12136_v20 = vshll.u32 %v10240_v19, 16 }
 0x142   : > { %v10483_v27 = vadd.f32 %v8337_v22, %v8289_v58  ;;  %v639_v0 = vpop.f32.mrf.mxu0  ;;  %8627 = vmatprep.mubr.bf16.mxu1 %v3348_v31  ;;  %v3644_v5 = vrot.slane %v12135_v55, 1  ;;  %v3649_v22 = vrot.slane %v12138_v14, 2 }
 0x143   : > { %v1020_v13 = vpop.f32.mrf.mxu1  ;;  %v3645_v11 = vrot.slane %v12136_v20, 2 }
 0x144   : > { %v10485_v50 = vadd.f32 %v1020_v13, %v639_v0  ;;  %v8290_v16 = vpop.f32.mrf.mxu0  ;;  %v3650_v32 = vor.u32 %v3649_v22, %v3648_v12  ;;  %v12141_v12 = vshrl.u32 %v10268_v54, 16  ;;  %v12142_v22 = vshll.u32 %v10268_v54, 16 }
 0x145   : > { %v8338_v41 = vpop.f32.mrf.mxu1  ;;  %v3646_v55 = vor.u32 %v3645_v11, %v3644_v5  ;;  %v12143_v54 = vshrl.u32 %v10287_v35, 16 }
 0x146   : > { %v10493_v58 = vadd.f32 %v8338_v41, %v8290_v16  ;;  %v642_v31 = vpop.f32.mrf.mxu0  ;;  %v3656_v14 = vrot.slane %v12141_v12, 1 }
 0x147   : > { %v1023_v0 = vpop.f32.mrf.mxu1  ;;  %v3647_v6 = vsel %vm12110_vm5, %v3642_v25, %v3646_v55 }
 0x148   : > { %v10500_v13 = vadd.f32 %v1023_v0, %v642_v31  ;;  %v8293_v19 = vpop.f32.mrf.mxu0  ;;  %8580 = vmatmul.mubr.bf16.gmra.mxu0 %v3036_v39  ;;  %v12139_v31 = vshrl.u32 %v10260_v9, 16  ;;  %v12140_v39 = vshll.u32 %v10260_v9, 16  ;;  %v3657_v0 = vrot.slane %v12142_v22, 2 }
 0x149   : > { %v8341_v15 = vpop.f32.mrf.mxu1  ;;  %8628 = vmatmul.mubr.bf16.gmra.mxu1 %v3350_v23  ;;  %8647 = vmatprep.mubr.bf16.mxu0 %v3643_v26  ;;  %v3651_v26 = vsel %vm12110_vm5, %v3646_v55, %v3650_v32  ;;  %v3660_v22 = vrot.slane %v12143_v54, 1 }
 0x14a   : > { %v10502_v7 = vadd.f32 %v8341_v15, %v8293_v19  ;;  %v655_v30 = vpop.f32.mrf.mxu0  ;;  %v3652_v33 = vrot.slane %v12139_v31, 1  ;;  %v3653_v5 = vrot.slane %v12140_v39, 2 }
 0x14b   : > { %v1036_v47 = vpop.f32.mrf.mxu1 }
 0x14c   : > { %v10504_v16 = vadd.f32 %v1036_v47, %v655_v30  ;;  %v8294_v20 = vpop.f32.mrf.mxu0  ;;  %v3654_v47 = vor.u32 %v3653_v5, %v3652_v33 }
 0x14d   : > { %v8342_v41 = vpop.f32.mrf.mxu1 }
 0x14e   : > { %v10511_v11 = vadd.f32 %v8342_v41, %v8294_v20  ;;  %v658_v23 = vpop.f32.mrf.mxu0  ;;  %v3658_v41 = vor.u32 %v3657_v0, %v3656_v14  ;;  %v3655_v33 = vsel %vm12110_vm5, %v3650_v32, %v3654_v47  ;;  %v12145_v14 = vshrl.u32 %v10301_v42, 16 }
 0x14f   : > { %v1039_v19 = vpop.f32.mrf.mxu1 }
 0x150   : > { %v10518_v15 = vadd.f32 %v1039_v19, %v658_v23  ;;  %v8361_v25 = vpop.f32.mrf.mxu0  ;;  %8648 = vmatmul.mubr.bf16.vlgmr.msra.gmra.mxu0 %v3647_v6  ;;  %v12144_v23 = vshll.u32 %v10287_v35, 16  ;;  %v3664_v0 = vrot.slane %v12145_v14, 1 }
 0x151   : > { %v1379_v30 = vadd.f32 %v8361_v25, %v10293_v48  ;;  %v8409_v9 = vpop.f32.mrf.mxu1  ;;  %8651 = vmatprep.mubr.bf16.mxu0 %v3651_v26  ;;  %v12146_v25 = vshll.u32 %v10301_v42, 16 }
 0x152   : > { %v1250_v20 = vpop.f32.mrf.mxu0  ;;  %v3661_v19 = vrot.slane %v12144_v23, 2 }
 0x153   : > { %v1377_v55 = vadd.f32 %v1250_v20, %v10304_v37  ;;  %v10522_v31 = vadd.f32 %v8409_v9, %v1379_v30  ;;  %v1794_v39 = vpop.f32.mrf.mxu1  ;;  %v3659_v37 = vsel %vm12110_vm5, %v3654_v47, %v3658_v41  ;;  %v3665_v30 = vrot.slane %v12146_v25, 2 }
 0x154   : > { %v8362_v12 = vpop.f32.mrf.mxu0  ;;  %v12149_v25 = vshrl.u32 %v10334_v36, 16 }
 0x155   : > { %v1380_v6 = vadd.f32 %v8362_v12, %v10310_v17  ;;  %v10529_v48 = vadd.f32 %v1794_v39, %v1377_v55  ;;  %v8410_v26 = vpop.f32.mrf.mxu1  ;;  %v3662_v55 = vor.u32 %v3661_v19, %v3660_v22  ;;  %v3666_v54 = vor.u32 %v3665_v30, %v3664_v0 }
 0x156   : > { %v1253_v5 = vpop.f32.mrf.mxu0  ;;  %v3672_v30 = vrot.slane %v12149_v25, 1  ;;  %v12153_v25 = vshrl.u32 %v10368_v53, 16 }
 0x157   : > { %v1378_v9 = vadd.f32 %v1253_v5, %v10317_v40  ;;  %v10538_v35 = vadd.f32 %v8410_v26, %v1380_v6  ;;  %v1797_v20 = vpop.f32.mrf.mxu1  ;;  %v3663_v6 = vsel %vm12110_vm5, %v3658_v41, %v3662_v55  ;;  %v12148_v5 = vshll.u32 %v10322_v21, 16 }
 0x158   : > { %v8365_v17 = vpop.f32.mrf.mxu0  ;;  %8652 = vmatmul.mubr.bf16.gmra.mxu0 %v3655_v33 }
 0x159   : > { %v1383_v39 = vadd.f32 %v8365_v17, %v10327_v57  ;;  %v10541_v32 = vadd.f32 %v1797_v20, %v1378_v9  ;;  %v8413_v12 = vpop.f32.mrf.mxu1  ;;  %8655 = vmatprep.mubr.bf16.mxu0 %v3659_v37  ;;  %v12147_v57 = vshrl.u32 %v10322_v21, 16  ;;  %v3669_v37 = vrot.slane %v12148_v5, 2 }
 0x15a   : > { %v1266_v47 = vpop.f32.mrf.mxu0  ;;  %v12150_v9 = vshll.u32 %v10334_v36, 16 }
 0x15b   : > { %v1381_v23 = vadd.f32 %v1266_v47, %v10338_v46  ;;  %v10544_v42 = vadd.f32 %v8413_v12, %v1383_v39  ;;  %v1810_v14 = vpop.f32.mrf.mxu1  ;;  %v3668_v19 = vrot.slane %v12147_v57, 1  ;;  %v3667_v46 = vsel %vm12110_vm5, %v3662_v55, %v3666_v54 }
 0x15c   : > { %v8366_v40 = vpop.f32.mrf.mxu0  ;;  %v3673_v41 = vrot.slane %v12150_v9, 2  ;;  %v12154_v9 = vshll.u32 %v10368_v53, 16 }
 0x15d   : > { %v1384_v26 = vadd.f32 %v8366_v40, %v10344_v2  ;;  %v10548_v33 = vadd.f32 %v1810_v14, %v1381_v23  ;;  %v8414_v22 = vpop.f32.mrf.mxu1  ;;  %v3670_v55 = vor.u32 %v3669_v37, %v3668_v19 }
 0x15e   : > { %v1269_v0 = vpop.f32.mrf.mxu0  ;;  %v3674_v14 = vor.u32 %v3673_v41, %v3672_v30  ;;  %v3680_v30 = vrot.slane %v12153_v25, 1  ;;  %v3681_v41 = vrot.slane %v12154_v9, 2  ;;  %v12158_v25 = vshll.u32 %v10402_v44, 16 }
 0x15f   : > { %v1382_v2 = vadd.f32 %v1269_v0, %v10351_v49  ;;  %v10560_v20 = vadd.f32 %v8414_v22, %v1384_v26  ;;  %v1813_v17 = vpop.f32.mrf.mxu1  ;;  %v12151_v26 = vshrl.u32 %v10356_v60, 16  ;;  %v3671_v19 = vsel %vm12110_vm5, %v3666_v54, %v3670_v55 }
 0x160   : > { %v8369_v39 = vpop.f32.mrf.mxu0  ;;  %8656 = vmatmul.mubr.bf16.gmra.mxu0 %v3663_v6  ;;  %v12152_v6 = vshll.u32 %v10356_v60, 16 }
 0x161   : > { %v1387_v12 = vadd.f32 %v8369_v39, %v10361_v24  ;;  %v10563_v21 = vadd.f32 %v1813_v17, %v1382_v2  ;;  %v8417_v47 = vpop.f32.mrf.mxu1  ;;  %8659 = vmatprep.mubr.bf16.mxu0 %v3667_v46  ;;  %v3676_v22 = vrot.slane %v12151_v26, 1 }
 0x162   : > { %v1282_v23 = vpop.f32.mrf.mxu0  ;;  %v3677_v5 = vrot.slane %v12152_v6, 2 }
 0x163   : > { %v1385_v40 = vadd.f32 %v1282_v23, %v10372_v34  ;;  %v10566_v36 = vadd.f32 %v8417_v47, %v1387_v12  ;;  %v1826_v57 = vpop.f32.mrf.mxu1  ;;  %v3675_v34 = vsel %vm12110_vm5, %v3670_v55, %v3674_v14  ;;  %v3682_v23 = vor.u32 %v3681_v41, %v3680_v30 }
 0x164   : > { %v8370_v49 = vpop.f32.mrf.mxu0  ;;  %v3678_v39 = vor.u32 %v3677_v5, %v3676_v22 }
 0x165   : > { %v1388_v24 = vadd.f32 %v8370_v49, %v10378_v4  ;;  %v10573_v0 = vadd.f32 %v1826_v57, %v1385_v40  ;;  %v8418_v46 = vpop.f32.mrf.mxu1 }
 0x166   : > { %v1285_v37 = vpop.f32.mrf.mxu0  ;;  %v3679_v49 = vsel %vm12110_vm5, %v3674_v14, %v3678_v39  ;;  %v3689_v14 = vrot.slane %v12158_v25, 2 }
 0x167   : > { %v1386_v2 = vadd.f32 %v1285_v37, %v10385_v8  ;;  %v10582_v60 = vadd.f32 %v8418_v46, %v1388_v24  ;;  %v1829_v17 = vpop.f32.mrf.mxu1  ;;  %v12156_v24 = vshll.u32 %v10390_v38, 16  ;;  %v12157_v37 = vshrl.u32 %v10402_v44, 16 }
 0x168   : > { %v8373_v4 = vpop.f32.mrf.mxu0  ;;  %8660 = vmatmul.mubr.bf16.gmra.mxu0 %v3671_v19 }
 0x169   : > { %v1391_v12 = vadd.f32 %v8373_v4, %v10395_v1  ;;  %v10585_v54 = vadd.f32 %v1829_v17, %v1386_v2  ;;  %v8421_v47 = vpop.f32.mrf.mxu1  ;;  %8663 = vmatprep.mubr.bf16.mxu0 %v3675_v34  ;;  %v12155_v1 = vshrl.u32 %v10390_v38, 16  ;;  %v3685_v46 = vrot.slane %v12156_v24, 2 }
 0x16a   : > { %v1298_v55 = vpop.f32.mrf.mxu0  ;;  %v3688_v34 = vrot.slane %v12157_v37, 1 }
 0x16b   : > { %v1389_v40 = vadd.f32 %v1298_v55, %v10405_v43  ;;  %v10588_v53 = vadd.f32 %v8421_v47, %v1391_v12  ;;  %v1842_v57 = vpop.f32.mrf.mxu1  ;;  %v3684_v5 = vrot.slane %v12155_v1, 1  ;;  %v3683_v43 = vsel %vm12110_vm5, %v3678_v39, %v3682_v23 }
 0x16c   : > { %v8374_v8 = vpop.f32.mrf.mxu0  ;;  %v3690_v12 = vor.u32 %v3689_v14, %v3688_v34 }
 0x16d   : > { %v1392_v26 = vadd.f32 %v8374_v8, %v10411_v51  ;;  %v10592_v6 = vadd.f32 %v1842_v57, %v1389_v40  ;;  %v8422_v22 = vpop.f32.mrf.mxu1  ;;  %v3686_v4 = vor.u32 %v3685_v46, %v3684_v5  ;;  %v12159_v40 = vshrl.u32 %v10418_v52, 16  ;;  %v9299_v5 = vld [vmem:[%s9567_s11 + $0x98] ss:$0 sps:$4 sm:$0x33]  }
 0x16e   : > { %v1301_v19 = vpop.f32.mrf.mxu0  ;;  %v12160_v8 = vshll.u32 %v10418_v52, 16  ;;  %v3696_v46 = vrot.slane %v3029_v18, 1 }
 0x16f   : > { %v1390_v51 = vadd.f32 %v1301_v19, %v10420_v10  ;;  %v10604_v30 = vadd.f32 %v8422_v22, %v1392_v26  ;;  %v1845_v9 = vpop.f32.mrf.mxu1  ;;  %v3692_v57 = vrot.slane %v12159_v40, 1  ;;  %v3687_v1 = vsel %vm12110_vm5, %v3682_v23, %v3686_v4 }
 0x170   : > { %v8377_v41 = vpop.f32.mrf.mxu0  ;;  %8664 = vmatmul.mubr.bf16.gmra.mxu0 %v3679_v49  ;;  %v12161_v19 = vshll.u32 %v10427_v56, 16 }
 0x171   : > { %v1395_v2 = vadd.f32 %v8377_v41, %v10429_v61  ;;  %v10607_v38 = vadd.f32 %v1845_v9, %v1390_v51  ;;  %v8425_v17 = vpop.f32.mrf.mxu1  ;;  %8667 = vmatprep.mubr.bf16.mxu0 %v3683_v43  ;;  %v3693_v61 = vrot.slane %v12160_v8, 2  ;;  %v3701_v9 = vshrl.u32 %v9299_v5, 16 }
 0x172   : > { %v1314_v39 = vpop.f32.mrf.mxu0  ;;  %v3697_v43 = vrot.slane %v12161_v19, 2  ;;  %v3704_v41 = vshll.u32 %v9299_v5, 16 }
 0x173   : > { %v1393_v44 = vadd.f32 %v1314_v39, %v10438_v3  ;;  %v10610_v47 = vadd.f32 %v8425_v17, %v1395_v2  ;;  %v1858_v10 = vpop.f32.mrf.mxu1  ;;  %v3691_v3 = vsel %vm12110_vm5, %v3686_v4, %v3690_v12  ;;  %v3694_v25 = vor.u32 %v3693_v61, %v3692_v57 }
 0x174   : > { %v8378_v55 = vpop.f32.mrf.mxu0  ;;  %v3698_v2 = vor.u32 %v3697_v43, %v3696_v46  ;;  %v3706_v40 = vrot.slane %v3704_v41, 2 }
 0x175   : > { %v1396_v49 = vadd.f32 %v8378_v55, %v10444_v59  ;;  %v10617_v26 = vadd.f32 %v1858_v10, %v1393_v44  ;;  %v8426_v22 = vpop.f32.mrf.mxu1  ;;  %v3695_v39 = vsel %vm12110_vm5, %v3690_v12, %v3694_v25  ;;  %v3703_v55 = vrot.slane %v3701_v9, 1 }
 0x176   : > { %v1317_v24 = vpop.f32.mrf.mxu0  ;;  %v3699_v8 = vsel %vm12110_vm5, %v3694_v25, %v3698_v2 }
 0x177   : > { %v1394_v52 = vadd.f32 %v1317_v24, %v10451_v28  ;;  %v10627_v37 = vadd.f32 %v8426_v22, %v1396_v49  ;;  %v1861_v59 = vpop.f32.mrf.mxu1  ;;  %v3707_v5 = vor.u32 %v3706_v40, %v3703_v55 }
 0x178   : > { %v8381_v34 = vpop.f32.mrf.mxu0  ;;  %8668 = vmatmul.mubr.bf16.gmra.mxu0 %v3687_v1 }
 0x179   : > { %v1399_v23 = vadd.f32 %v8381_v34, %v10462_v45  ;;  %v10630_v14 = vadd.f32 %v1861_v59, %v1394_v52  ;;  %v8429_v51 = vpop.f32.mrf.mxu1  ;;  %8671 = vmatprep.mubr.bf16.mxu0 %v3691_v3  ;;  %v3708_v34 = vsel %vm12110_vm5, %v3698_v2, %v3707_v5 }
 0x17a   : > { %v1330_v18 = vpop.f32.mrf.mxu0 }
 0x17b   : > { %v1397_v56 = vadd.f32 %v1330_v18, %v10466_v62  ;;  %v10633_v17 = vadd.f32 %v8429_v51, %v1399_v23  ;;  %v1874_v28 = vpop.f32.mrf.mxu1 }
 0x17c   : > { %v8382_v4 = vpop.f32.mrf.mxu0 }
 0x17d   : > { %v1400_v44 = vadd.f32 %v8382_v4, %v10472_v63  ;;  %v10637_v10 = vadd.f32 %v1874_v28, %v1397_v56  ;;  %v8430_v45 = vpop.f32.mrf.mxu1 }
 0x17e   : > { %v1333_v57 = vpop.f32.mrf.mxu0 }
 0x17f   : > { %v1398_v61 = vadd.f32 %v1333_v57, %v10479_v29  ;;  %v10641_v49 = vadd.f32 %v8430_v45, %v1400_v44  ;;  %v1877_v62 = vpop.f32.mrf.mxu1 }
 0x180   : > { %v8385_v22 = vpop.f32.mrf.mxu0  ;;  %8672 = vmatmul.mubr.bf16.gmra.mxu0 %v3695_v39 }
 0x181   : > { %v1403_v1 = vadd.f32 %v8385_v22, %v10483_v27  ;;  %v10644_v12 = vadd.f32 %v1877_v62, %v1398_v61  ;;  %v8433_v63 = vpop.f32.mrf.mxu1  ;;  %8675 = vmatprep.mubr.bf16.mxu0 %v3699_v8 }
 0x182   : > { %v1346_v24 = vpop.f32.mrf.mxu0 }
 0x183   : > { %v1401_v3 = vadd.f32 %v1346_v24, %v10485_v50  ;;  %v10647_v46 = vadd.f32 %v8433_v63, %v1403_v1  ;;  %v1890_v19 = vpop.f32.mrf.mxu1 }
 0x184   : > { %v8386_v43 = vpop.f32.mrf.mxu0 }
 0x185   : > { %v1404_v29 = vadd.f32 %v8386_v43, %v10493_v58  ;;  %v10650_v52 = vadd.f32 %v1890_v19, %v1401_v3  ;;  %v8434_v59 = vpop.f32.mrf.mxu1 }
 0x186   : > { %v1349_v27 = vpop.f32.mrf.mxu0 }
 0x187   : > { %v1402_v25 = vadd.f32 %v1349_v27, %v10500_v13  ;;  %v10654_v23 = vadd.f32 %v8434_v59, %v1404_v29  ;;  %v1893_v51 = vpop.f32.mrf.mxu1 }
 0x188   : > { %v8389_v9 = vpop.f32.mrf.mxu0  ;;  %8676 = vmatmul.mubr.bf16.gmra.mxu0 %v3708_v34 }
 0x189   : > { %v1407_v50 = vadd.f32 %v8389_v9, %v10502_v7  ;;  %v10657_v41 = vadd.f32 %v1893_v51, %v1402_v25  ;;  %v8437_v18 = vpop.f32.mrf.mxu1 }
 0x18a   : > { %v1362_v56 = vpop.f32.mrf.mxu0 }
 0x18b   : > { %v1405_v58 = vadd.f32 %v1362_v56, %v10504_v16  ;;  %v10660_v28 = vadd.f32 %v8437_v18, %v1407_v50  ;;  %v1906_v4 = vpop.f32.mrf.mxu1 }
 0x18c   : > { %v8390_v2 = vpop.f32.mrf.mxu0 }
 0x18d   : > { %v1408_v39 = vadd.f32 %v8390_v2, %v10511_v11  ;;  %v10663_v13 = vadd.f32 %v1906_v4, %v1405_v58  ;;  %v8438_v44 = vpop.f32.mrf.mxu1 }
 0x18e   : > { %v1365_v45 = vpop.f32.mrf.mxu0 }
 0x18f   : > { %v1406_v55 = vadd.f32 %v1365_v45, %v10518_v15  ;;  %v10666_v40 = vadd.f32 %v8438_v44, %v1408_v39  ;;  %v1909_v7 = vpop.f32.mrf.mxu1 }
 0x190   : > { %v8457_v57 = vpop.f32.mrf.mxu0 }
 0x191   : > { %v10668_v8 = vadd.f32 %v1909_v7, %v1406_v55  ;;  %v2215_v16 = vadd.f32 %v8457_v57, %v10522_v31  ;;  %v8505_v61 = vpop.f32.mrf.mxu1 }
 0x192   : > { %v2086_v62 = vpop.f32.mrf.mxu0 }
 0x193   : > { %v2213_v22 = vadd.f32 %v2086_v62, %v10529_v48  ;;  %v10672_v1 = vadd.f32 %v8505_v61, %v2215_v16  ;;  %v2611_v11 = vpop.f32.mrf.mxu1 }
 0x194   : > { %v8458_v63 = vpop.f32.mrf.mxu0 }
 0x195   : > { %v2216_v5 = vadd.f32 %v8458_v63, %v10538_v35  ;;  %v10675_v24 = vadd.f32 %v2611_v11, %v2213_v22  ;;  %v8506_v15 = vpop.f32.mrf.mxu1 }
 0x196   : > { %v2089_v3 = vpop.f32.mrf.mxu0 }
 0x197   : > { %v2214_v19 = vadd.f32 %v2089_v3, %v10541_v32  ;;  %v10678_v43 = vadd.f32 %v8506_v15, %v2216_v5  ;;  %v2614_v29 = vpop.f32.mrf.mxu1 }
 0x198   : > { %v8461_v31 = vpop.f32.mrf.mxu0 }
 0x199   : > { %v2219_v59 = vadd.f32 %v8461_v31, %v10544_v42  ;;  %v10681_v34 = vadd.f32 %v2614_v29, %v2214_v19  ;;  %v8509_v48 = vpop.f32.mrf.mxu1 }
 0x19a   : > { %v2102_v27 = vpop.f32.mrf.mxu0 }
 0x19b   : > { %v2217_v25 = vadd.f32 %v2102_v27, %v10548_v33  ;;  %v10684_v51 = vadd.f32 %v8509_v48, %v2219_v59  ;;  %v2627_v35 = vpop.f32.mrf.mxu1 }
 0x19c   : > { %v8462_v9 = vpop.f32.mrf.mxu0 }
 0x19d   : > { %v2220_v50 = vadd.f32 %v8462_v9, %v10560_v20  ;;  %v10687_v18 = vadd.f32 %v2627_v35, %v2217_v25  ;;  %v8510_v32 = vpop.f32.mrf.mxu1 }
 0x19e   : > { %v2105_v56 = vpop.f32.mrf.mxu0 }
 0x19f   : > { %v2218_v58 = vadd.f32 %v2105_v56, %v10563_v21  ;;  %v10690_v4 = vadd.f32 %v8510_v32, %v2220_v50  ;;  %v2630_v42 = vpop.f32.mrf.mxu1 }
 0x1a0   : > { %v8465_v2 = vpop.f32.mrf.mxu0 }
 0x1a1   : > { %v2223_v39 = vadd.f32 %v8465_v2, %v10566_v36  ;;  %v10693_v44 = vadd.f32 %v2630_v42, %v2218_v58  ;;  %v8513_v33 = vpop.f32.mrf.mxu1 }
 0x1a2   : > { %v2118_v45 = vpop.f32.mrf.mxu0 }
 0x1a3   : > { %v2221_v55 = vadd.f32 %v2118_v45, %v10573_v0  ;;  %v10696_v7 = vadd.f32 %v8513_v33, %v2223_v39  ;;  %v2643_v20 = vpop.f32.mrf.mxu1 }
 0x1a4   : > { %v8466_v57 = vpop.f32.mrf.mxu0 }
 0x1a5   : > { %v2224_v16 = vadd.f32 %v8466_v57, %v10582_v60  ;;  %v10699_v61 = vadd.f32 %v2643_v20, %v2221_v55  ;;  %v8514_v21 = vpop.f32.mrf.mxu1 }
 0x1a6   : > { %v2121_v62 = vpop.f32.mrf.mxu0 }
 0x1a7   : > { %v2222_v22 = vadd.f32 %v2121_v62, %v10585_v54  ;;  %v10702_v11 = vadd.f32 %v8514_v21, %v2224_v16  ;;  %v2646_v36 = vpop.f32.mrf.mxu1 }
 0x1a8   : > { %v8469_v63 = vpop.f32.mrf.mxu0 }
 0x1a9   : > { %v2227_v5 = vadd.f32 %v8469_v63, %v10588_v53  ;;  %v10705_v15 = vadd.f32 %v2646_v36, %v2222_v22  ;;  %v8517_v0 = vpop.f32.mrf.mxu1 }
 0x1aa   : > { %v2134_v3 = vpop.f32.mrf.mxu0 }
 0x1ab   : > { %v2225_v19 = vadd.f32 %v2134_v3, %v10592_v6  ;;  %v10708_v29 = vadd.f32 %v8517_v0, %v2227_v5  ;;  %v2659_v60 = vpop.f32.mrf.mxu1 }
 0x1ac   : > { %v8470_v31 = vpop.f32.mrf.mxu0 }
 0x1ad   : > { %v2228_v59 = vadd.f32 %v8470_v31, %v10604_v30  ;;  %v10711_v48 = vadd.f32 %v2659_v60, %v2225_v19  ;;  %v8518_v54 = vpop.f32.mrf.mxu1 }
 0x1ae   : > { %v2137_v27 = vpop.f32.mrf.mxu0 }
 0x1af   : > { %v2226_v25 = vadd.f32 %v2137_v27, %v10607_v38  ;;  %v10714_v35 = vadd.f32 %v8518_v54, %v2228_v59  ;;  %v2662_v53 = vpop.f32.mrf.mxu1 }
 0x1b0   : > { %v8473_v9 = vpop.f32.mrf.mxu0 }
 0x1b1   : > { %v2231_v50 = vadd.f32 %v8473_v9, %v10610_v47  ;;  %v10717_v32 = vadd.f32 %v2662_v53, %v2226_v25  ;;  %v8521_v6 = vpop.f32.mrf.mxu1 }
 0x1b2   : > { %v2150_v56 = vpop.f32.mrf.mxu0 }
 0x1b3   : > { %v2229_v58 = vadd.f32 %v2150_v56, %v10617_v26  ;;  %v10720_v42 = vadd.f32 %v8521_v6, %v2231_v50  ;;  %v2675_v30 = vpop.f32.mrf.mxu1 }
 0x1b4   : > { %v8474_v2 = vpop.f32.mrf.mxu0 }
 0x1b5   : > { %v2232_v39 = vadd.f32 %v8474_v2, %v10627_v37  ;;  %v10723_v33 = vadd.f32 %v2675_v30, %v2229_v58  ;;  %v8522_v38 = vpop.f32.mrf.mxu1 }
 0x1b6   : > { %v2153_v45 = vpop.f32.mrf.mxu0 }
 0x1b7   : > { %v2230_v55 = vadd.f32 %v2153_v45, %v10630_v14  ;;  %v10726_v20 = vadd.f32 %v8522_v38, %v2232_v39  ;;  %v2678_v47 = vpop.f32.mrf.mxu1 }
 0x1b8   : > { %v8477_v57 = vpop.f32.mrf.mxu0 }
 0x1b9   : > { %v2235_v16 = vadd.f32 %v8477_v57, %v10633_v17  ;;  %v10729_v21 = vadd.f32 %v2678_v47, %v2230_v55  ;;  %v8525_v26 = vpop.f32.mrf.mxu1 }
 0x1ba   : > { %v2166_v62 = vpop.f32.mrf.mxu0 }
 0x1bb   : > { %v2233_v22 = vadd.f32 %v2166_v62, %v10637_v10  ;;  %v10732_v36 = vadd.f32 %v8525_v26, %v2235_v16  ;;  %v2691_v37 = vpop.f32.mrf.mxu1 }
 0x1bc   : > { %v8478_v63 = vpop.f32.mrf.mxu0 }
 0x1bd   : > { %v2236_v5 = vadd.f32 %v8478_v63, %v10641_v49  ;;  %v10735_v0 = vadd.f32 %v2691_v37, %v2233_v22  ;;  %v8526_v14 = vpop.f32.mrf.mxu1 }
 0x1be   : > { %v2169_v3 = vpop.f32.mrf.mxu0 }
 0x1bf   : > { %v2234_v19 = vadd.f32 %v2169_v3, %v10644_v12  ;;  %v10738_v60 = vadd.f32 %v8526_v14, %v2236_v5  ;;  %v2694_v17 = vpop.f32.mrf.mxu1 }
 0x1c0   : > { %v8481_v31 = vpop.f32.mrf.mxu0 }
 0x1c1   : > { %v2239_v59 = vadd.f32 %v8481_v31, %v10647_v46  ;;  %v10741_v54 = vadd.f32 %v2694_v17, %v2234_v19  ;;  %v8529_v10 = vpop.f32.mrf.mxu1 }
 0x1c2   : > { %v2182_v27 = vpop.f32.mrf.mxu0 }
 0x1c3   : > { %v2237_v25 = vadd.f32 %v2182_v27, %v10650_v52  ;;  %v10744_v53 = vadd.f32 %v8529_v10, %v2239_v59  ;;  %v2707_v49 = vpop.f32.mrf.mxu1 }
 0x1c4   : > { %v8482_v9 = vpop.f32.mrf.mxu0 }
 0x1c5   : > { %v2240_v50 = vadd.f32 %v8482_v9, %v10654_v23  ;;  %v10747_v6 = vadd.f32 %v2707_v49, %v2237_v25  ;;  %v8530_v12 = vpop.f32.mrf.mxu1 }
 0x1c6   : > { %v2185_v56 = vpop.f32.mrf.mxu0 }
 0x1c7   : > { %v2238_v58 = vadd.f32 %v2185_v56, %v10657_v41  ;;  %v10750_v30 = vadd.f32 %v8530_v12, %v2240_v50  ;;  %v2710_v46 = vpop.f32.mrf.mxu1 }
 0x1c8   : > { %v8485_v2 = vpop.f32.mrf.mxu0 }
 0x1c9   : > { %v2243_v39 = vadd.f32 %v8485_v2, %v10660_v28  ;;  %v10753_v38 = vadd.f32 %v2710_v46, %v2238_v58  ;;  %v8533_v52 = vpop.f32.mrf.mxu1 }
 0x1ca   : > { %v2198_v45 = vpop.f32.mrf.mxu0 }
 0x1cb   : > { %v2241_v55 = vadd.f32 %v2198_v45, %v10663_v13  ;;  %v10756_v47 = vadd.f32 %v8533_v52, %v2243_v39  ;;  %v2723_v23 = vpop.f32.mrf.mxu1 }
 0x1cc   : > { %v8486_v57 = vpop.f32.mrf.mxu0 }
 0x1cd   : > { %v10759_v16 = vadd.f32 %v8486_v57, %v10666_v40  ;;  %v10761_v41 = vadd.f32 %v2723_v23, %v2241_v55  ;;  %v10763_v26 = vpop.f32.mrf.mxu1 }
 0x1ce   : > { %v2201_v62 = vpop.f32.mrf.mxu0 }
 0x1cf   : > { %v10766_v28 = vadd.f32 %v2201_v62, %v10668_v8  ;;  %v10768_v22 = vpop.f32.mrf.mxu1 }
 0x1d0   : > { %v8553_v37 = vpop.f32.mrf.mxu0 }
 0x1d1   : > { %v10771_v13 = vadd.f32 %v8553_v37, %v10672_v1  ;;  %v10773_v63 = vpop.f32.mrf.mxu1 }
 0x1d2   : > { %v3135_v5 = vpop.f32.mrf.mxu0 }
 0x1d3   : > { %v10776_v40 = vadd.f32 %v3135_v5, %v10675_v24  ;;  %v10778_v14 = vpop.f32.mrf.mxu1 }
 0x1d4   : > { %v8554_v3 = vpop.f32.mrf.mxu0 }
 0x1d5   : > { %v10781_v19 = vadd.f32 %v8554_v3, %v10678_v43  ;;  %v10783_v17 = vpop.f32.mrf.mxu1 }
 0x1d6   : > { %v3138_v8 = vpop.f32.mrf.mxu0 }
 0x1d7   : > { %v10786_v31 = vadd.f32 %v3138_v8, %v10681_v34  ;;  %v10791_v10 = vpop.f32.mrf.mxu1 }
 0x1d8   : > { %v8557_v1 = vpop.f32.mrf.mxu0 }
 0x1d9   : > { %v10789_v59 = vadd.f32 %v8557_v1, %v10684_v51  ;;  %v10799_v49 = vpop.f32.mrf.mxu1 }
 0x1da   : > { %v3151_v24 = vpop.f32.mrf.mxu0 }
 0x1db   : > { %v10794_v27 = vadd.f32 %v3151_v24, %v10687_v18  ;;  %v10807_v12 = vpop.f32.mrf.mxu1 }
 0x1dc   : > { %v8558_v25 = vpop.f32.mrf.mxu0 }
 0x1dd   : > { %v10797_v43 = vadd.f32 %v8558_v25, %v10690_v4  ;;  %v10815_v46 = vpop.f32.mrf.mxu1 }
 0x1de   : > { %v3154_v9 = vpop.f32.mrf.mxu0 }
 0x1df   : > { %v10802_v34 = vadd.f32 %v3154_v9, %v10693_v44  ;;  %v10823_v52 = vpop.f32.mrf.mxu1 }
 0x1e0   : > { %v8561_v50 = vpop.f32.mrf.mxu0 }
 0x1e1   : > { %v10805_v51 = vadd.f32 %v8561_v50, %v10696_v7  ;;  %v10831_v23 = vpop.f32.mrf.mxu1 }
 0x1e2   : > { %v3167_v56 = vpop.f32.mrf.mxu0 }
 0x1e3   : > { %v10810_v18 = vadd.f32 %v3167_v56, %v10699_v61  ;;  %v10839_v37 = vpop.f32.mrf.mxu1 }
 0x1e4   : > { %v8562_v58 = vpop.f32.mrf.mxu0 }
 0x1e5   : > { %v10813_v4 = vadd.f32 %v8562_v58, %v10702_v11  ;;  %v10847_v8 = vpop.f32.mrf.mxu1 }
 0x1e6   : > { %v3170_v2 = vpop.f32.mrf.mxu0 }
 0x1e7   : > { %v10818_v44 = vadd.f32 %v3170_v2, %v10705_v15  ;;  %v10855_v25 = vpop.f32.mrf.mxu1 }
 0x1e8   : > { %v8565_v39 = vpop.f32.mrf.mxu0 }
 0x1e9   : > { %v10821_v7 = vadd.f32 %v8565_v39, %v10708_v29  ;;  %v10863_v56 = vpop.f32.mrf.mxu1 }
 0x1ea   : > { %v3183_v45 = vpop.f32.mrf.mxu0 }
 0x1eb   : > { %v10826_v61 = vadd.f32 %v3183_v45, %v10711_v48  ;;  %v10871_v39 = vpop.f32.mrf.mxu1 }
 0x1ec   : > { %v8566_v55 = vpop.f32.mrf.mxu0 }
 0x1ed   : > { %v10829_v11 = vadd.f32 %v8566_v55, %v10714_v35 }
 0x1ee   : > { %v3186_v57 = vpop.f32.mrf.mxu0 }
 0x1ef   : > { %v10834_v15 = vadd.f32 %v3186_v57, %v10717_v32  ;;  %v10879_v57 = vpop.f32.mrf.mxu1 }
 0x1f0   : > { %v8569_v62 = vpop.f32.mrf.mxu0 }
 0x1f1   : > { %v10837_v29 = vadd.f32 %v8569_v62, %v10720_v42 }
 0x1f2   : > { %v3199_v5 = vpop.f32.mrf.mxu0 }
 0x1f3   : > { %v10842_v48 = vadd.f32 %v3199_v5, %v10723_v33 }
 0x1f4   : > { %v8570_v3 = vpop.f32.mrf.mxu0 }
 0x1f5   : > { %v10845_v35 = vadd.f32 %v8570_v3, %v10726_v20  ;;  %v10887_v3 = vpop.f32.mrf.mxu1 }
 0x1f6   : > { %v3202_v1 = vpop.f32.mrf.mxu0 }
 0x1f7   : > { %v10850_v32 = vadd.f32 %v3202_v1, %v10729_v21 }
 0x1f8   : > { %v8573_v24 = vpop.f32.mrf.mxu0 }
 0x1f9   : > { %v10853_v42 = vadd.f32 %v8573_v24, %v10732_v36 }
 0x1fa   : > { %v3215_v9 = vpop.f32.mrf.mxu0 }
 0x1fb   : > { %v10858_v33 = vadd.f32 %v3215_v9, %v10735_v0 }
 0x1fc   : > { %v8574_v50 = vpop.f32.mrf.mxu0 }
 0x1fd   : > { %v10861_v20 = vadd.f32 %v8574_v50, %v10738_v60  ;;  %v10907_v50 = vld [vmem:[%s10898_s20] ss:$0 sm:$0xff] }
 0x1fe   : > { %v3218_v58 = vpop.f32.mrf.mxu0 }
 0x1ff   : > { %v10866_v21 = vadd.f32 %v3218_v58, %v10741_v54 }
 0x200   : > { %v8577_v2 = vpop.f32.mrf.mxu0 }
 0x201   : > { %v10869_v36 = vadd.f32 %v8577_v2, %v10744_v53 }
 0x202   : > { %v3231_v45 = vpop.f32.mrf.mxu0 }
 0x203   : > { %v10874_v0 = vadd.f32 %v3231_v45, %v10747_v6 }
 0x204   : > { %v8578_v55 = vpop.f32.mrf.mxu0 }
 0x205   : > { %v10877_v60 = vadd.f32 %v8578_v55, %v10750_v30  ;;  %v10900_v30 = vpop.f32.mrf.mxu1  ;;  %v3579_v55 = vadd.f32 %v10783_v17, %v10781_v19 }
 0x206   : > { %v3234_v62 = vpop.f32.mrf.mxu0 }
 0x207   : > { %v10882_v54 = vadd.f32 %v3234_v62, %v10753_v38  ;;  %v10911_v2 = vpop.f32.mrf.mxu1 }
 0x208   : > { %v8581_v5 = vpop.f32.mrf.mxu0 }
 0x209   : > { %v10885_v53 = vadd.f32 %v8581_v5, %v10756_v47  ;;  %v3578_v47 = vadd.f32 %v10773_v63, %v10771_v13  ;;  %v3577_v13 = vadd.f32 %v10791_v10, %v10786_v31 }
 0x20a   : > { %v3247_v1 = vpop.f32.mrf.mxu0 }
 0x20b   : > { %v10890_v6 = vadd.f32 %v3247_v1, %v10761_v41  ;;  %v3576_v41 = vadd.f32 %v10778_v14, %v10776_v40  ;;  %v10923_v40 = vpop.f32.mrf.mxu1 }
 0x20c   : > { %v10892_v24 = vpop.f32.mrf.mxu0 }
 0x20e   : > { %v10902_v38 = vpop.f32.mrf.mxu0 }
 0x20f   : > { %12162 = vst [vmem:[#allocation6_spill] sm:$0xff] %v10902_v38 }
 0x210   : > { %v8649_v9 = vpop.f32.mrf.mxu0 }
 0x211   : > { %v3936_v58 = vadd.f32 %v8649_v9, %v3578_v47  ;;  %v3582_v47 = vadd.f32 %v10799_v49, %v10789_v59 }
 0x212   : > { %v3807_v45 = vpop.f32.mrf.mxu0 }
 0x213   : > { %v10916_v62 = vadd.f32 %v10907_v50, %v3936_v58  ;;  %v3934_v5 = vadd.f32 %v3807_v45, %v3576_v41  ;;  %v3580_v41 = vadd.f32 %v10807_v12, %v10794_v27  ;;  %v3516_v58 = vpop.f32.mrf.mxu1 }
 0x214   : > { %v8650_v1 = vpop.f32.mrf.mxu0 }
 0x215   : > { %v10921_v63 = vadd.f32 %v10907_v50, %v3934_v5  ;;  %v3937_v38 = vadd.f32 %v8650_v1, %v3579_v55  ;;  %v3583_v55 = vadd.f32 %v10815_v46, %v10797_v43  ;;  %v8621_v12 = vpop.f32.mrf.mxu1 }
 0x216   : > { %v3810_v14 = vpop.f32.mrf.mxu0 }
 0x217   : > { %v10928_v19 = vadd.f32 %v10907_v50, %v3937_v38  ;;  %v3935_v17 = vadd.f32 %v3810_v14, %v3577_v13  ;;  %v3581_v38 = vadd.f32 %v10823_v52, %v10802_v34  ;;  %v3586_v14 = vadd.f32 %v10831_v23, %v10805_v51  ;;  %v3529_v52 = vpop.f32.mrf.mxu1 }
 0x218   : > { %v8653_v9 = vpop.f32.mrf.mxu0 }
 0x219   : > { %v10933_v31 = vadd.f32 %v10907_v50, %v3935_v17  ;;  %v3940_v10 = vadd.f32 %v8653_v9, %v3582_v47  ;;  %v3584_v17 = vadd.f32 %v10839_v37, %v10810_v18  ;;  %v8622_v37 = vpop.f32.mrf.mxu1 }
 0x21a   : > { %v3823_v45 = vpop.f32.mrf.mxu0 }
 0x21b   : > { %v10938_v5 = vadd.f32 %v10907_v50, %v3940_v10  ;;  %v3938_v59 = vadd.f32 %v3823_v45, %v3580_v41  ;;  %v3587_v10 = vadd.f32 %v10847_v8, %v10813_v4 }
 0x21c   : > { %v8654_v49 = vpop.f32.mrf.mxu0 }
 0x21d   : > { %12163 = vst [vmem:[#allocation7_spill] sm:$0xff] %v10938_v5  ;;  %v10943_v1 = vadd.f32 %v10907_v50, %v3938_v59  ;;  %v3941_v27 = vadd.f32 %v8654_v49, %v3583_v55  ;;  %v3585_v55 = vadd.f32 %v10855_v25, %v10818_v44  ;;  %v3532_v25 = vpop.f32.mrf.mxu1 }
 0x21e   : > { %v3826_v13 = vpop.f32.mrf.mxu0 }
 0x21f   : > { %12164 = vst [vmem:[#allocation8_spill] sm:$0xff] %v10943_v1  ;;  %v10948_v47 = vadd.f32 %v10907_v50, %v3941_v27  ;;  %v3939_v43 = vadd.f32 %v3826_v13, %v3581_v38  ;;  %v3590_v38 = vadd.f32 %v10863_v56, %v10821_v7  ;;  %v3588_v13 = vadd.f32 %v10871_v39, %v10826_v61  ;;  %v8625_v39 = vpop.f32.mrf.mxu1 }
 0x220   : > { %v8657_v46 = vpop.f32.mrf.mxu0 }
 0x221   : > { %12165 = vst [vmem:[#allocation9_spill] sm:$0xff] %v10948_v47  ;;  %v10953_v9 = vadd.f32 %v10907_v50, %v3939_v43  ;;  %v3944_v34 = vadd.f32 %v8657_v46, %v3586_v14  ;;  %v3591_v46 = vadd.f32 %v10879_v57, %v10829_v11 }
 0x222   : > { %v3839_v41 = vpop.f32.mrf.mxu0 }
 0x223   : > { %12166 = vst [vmem:[#allocation10_spill] sm:$0xff] %v10953_v9  ;;  %v10958_v45 = vadd.f32 %v10907_v50, %v3944_v34  ;;  %v3942_v51 = vadd.f32 %v3839_v41, %v3584_v17  ;;  %v3589_v34 = vadd.f32 %v10887_v3, %v10834_v15  ;;  %v3545_v3 = vpop.f32.mrf.mxu1 }
 0x224   : > { %v8658_v23 = vpop.f32.mrf.mxu0 }
 0x225   : > { %v10963_v59 = vadd.f32 %v10907_v50, %v3942_v51  ;;  %v3945_v18 = vadd.f32 %v8658_v23, %v3587_v10  ;;  %v3594_v51 = vadd.f32 %v10900_v30, %v10837_v29 }
 0x226   : > { %v3842_v49 = vpop.f32.mrf.mxu0 }
 0x227   : > { %v10968_v27 = vadd.f32 %v10907_v50, %v3945_v18  ;;  %v3943_v4 = vadd.f32 %v3842_v49, %v3585_v55  ;;  %v3592_v55 = vadd.f32 %v10911_v2, %v10842_v48  ;;  %v8626_v2 = vpop.f32.mrf.mxu1 }
 0x228   : > { %v8661_v8 = vpop.f32.mrf.mxu0 }
 0x229   : > { %v10973_v14 = vadd.f32 %v10907_v50, %v3943_v4  ;;  %v3948_v44 = vadd.f32 %v8661_v8, %v3590_v38  ;;  %v3595_v38 = vadd.f32 %v10923_v40, %v10845_v35  ;;  %v3593_v8 = vadd.f32 %v3516_v58, %v10850_v32  ;;  %v3548_v32 = vpop.f32.mrf.mxu1 }
 0x22a   : > { %v3855_v43 = vpop.f32.mrf.mxu0  ;;  %v3596_v40 = vadd.f32 %v3529_v52, %v10858_v33 }
 0x22b   : > { %v10978_v17 = vadd.f32 %v10907_v50, %v3948_v44  ;;  %v3946_v7 = vadd.f32 %v3855_v43, %v3588_v13  ;;  %v3598_v43 = vadd.f32 %v8621_v12, %v10853_v42  ;;  %v3597_v12 = vadd.f32 %v3532_v25, %v10866_v21  ;;  %v8629_v33 = vpop.f32.mrf.mxu1 }
 0x22c   : > { %v8662_v56 = vpop.f32.mrf.mxu0 }
 0x22d   : > { %v10983_v41 = vadd.f32 %v10907_v50, %v3946_v7  ;;  %v3949_v61 = vadd.f32 %v8662_v56, %v3591_v46  ;;  %v3561_v21 = vpop.f32.mrf.mxu1 }
 0x22e   : > { %v3858_v10 = vpop.f32.mrf.mxu0 }
 0x22f   : > { %v10988_v23 = vadd.f32 %v10907_v50, %v3949_v61  ;;  %v3947_v11 = vadd.f32 %v3858_v10, %v3589_v34  ;;  %v3599_v61 = vadd.f32 %v8622_v37, %v10861_v20  ;;  %v3600_v37 = vadd.f32 %v3545_v3, %v10874_v0 }
 0x230   : > { %v8665_v57 = vpop.f32.mrf.mxu0 }
 0x231   : > { %v10993_v18 = vadd.f32 %v10907_v50, %v3947_v11  ;;  %v3952_v15 = vadd.f32 %v8665_v57, %v3594_v51 }
 0x232   : > { %v3871_v49 = vpop.f32.mrf.mxu0 }
 0x233   : > { %v10998_v4 = vadd.f32 %v10907_v50, %v3952_v15  ;;  %v3950_v29 = vadd.f32 %v3871_v49, %v3592_v55  ;;  %v3602_v55 = vadd.f32 %v8625_v39, %v10869_v36  ;;  %v2769_v39 = vadd.f32 %v10763_v26, %v10759_v16 }
 0x234   : > { %v8666_v30 = vpop.f32.mrf.mxu0  ;;  %v3604_v26 = vadd.f32 %v3561_v21, %v10890_v6 }
 0x235   : > { %v11002_v13 = vadd.f32 %v10907_v50, %v3950_v29  ;;  %v3953_v48 = vadd.f32 %v8666_v30, %v3595_v38  ;;  %v3603_v30 = vadd.f32 %v8626_v2, %v10877_v60  ;;  %v3606_v60 = vadd.f32 %v8629_v33, %v10885_v53 }
 0x236   : > { %v3874_v44 = vpop.f32.mrf.mxu0  ;;  %v3293_v2 = vadd.f32 %v10892_v24, %v2769_v39 }
 0x237   : > { %v11006_v46 = vadd.f32 %v10907_v50, %v3953_v48  ;;  %v3951_v7 = vadd.f32 %v3874_v44, %v3593_v8  ;;  %v3601_v44 = vadd.f32 %v3548_v32, %v10882_v54  ;;  %v12167_v54 = vld [vmem:[#allocation6_spill] sm:$0xff] }
 0x238   : > { %v8669_v35 = vpop.f32.mrf.mxu0 }
 0x239   : > { %v11010_v56 = vadd.f32 %v10907_v50, %v3951_v7  ;;  %v3956_v34 = vadd.f32 %v8669_v35, %v3598_v43  ;;  %v2767_v43 = vadd.f32 %v10768_v22, %v10766_v28  ;;  %v8630_v7 = vpop.f32.mrf.mxu1 }
 0x23a   : > { %v3887_v58 = vpop.f32.mrf.mxu0 }
 0x23b   : > { %v11014_v10 = vadd.f32 %v10907_v50, %v3956_v34  ;;  %v3954_v51 = vadd.f32 %v3887_v58, %v3596_v40  ;;  %v3291_v32 = vadd.f32 %v12167_v54, %v2767_v43  ;;  %v3564_v28 = vpop.f32.mrf.mxu1 }
 0x23c   : > { %v8670_v42 = vpop.f32.mrf.mxu0 }
 0x23d   : > { %v11018_v11 = vadd.f32 %v10907_v50, %v3954_v51  ;;  %v3957_v57 = vadd.f32 %v8670_v42, %v3599_v61  ;;  %v3607_v51 = vadd.f32 %v8630_v7, %v3293_v2 }
 0x23e   : > { %v3890_v52 = vpop.f32.mrf.mxu0 }
 0x23f   : > { %v11022_v15 = vadd.f32 %v10907_v50, %v3957_v57  ;;  %v3955_v49 = vadd.f32 %v3890_v52, %v3597_v12  ;;  %v3605_v12 = vadd.f32 %v3564_v28, %v3291_v32 }
 0x240   : > { %v8673_v20 = vpop.f32.mrf.mxu0 }
 0x241   : > { %v11026_v38 = vadd.f32 %v10907_v50, %v3955_v49  ;;  %v3960_v29 = vadd.f32 %v8673_v20, %v3602_v55 }
 0x242   : > { %v3903_v25 = vpop.f32.mrf.mxu0 }
 0x243   : > { %v11030_v8 = vadd.f32 %v10907_v50, %v3960_v29  ;;  %v3958_v48 = vadd.f32 %v3903_v25, %v3600_v37 }
 0x244   : > { %v8674_v36 = vpop.f32.mrf.mxu0 }
 0x245   : > { %v11036_v0 = vadd.f32 %v10907_v50, %v3958_v48  ;;  %v3961_v3 = vadd.f32 %v8674_v36, %v3603_v30 }
 0x246   : > { %v3906_v35 = vpop.f32.mrf.mxu0 }
 0x247   : > { %v11043_v40 = vadd.f32 %v10907_v50, %v3961_v3  ;;  %v3959_v34 = vadd.f32 %v3906_v35, %v3601_v44 }
 0x248   : > { %v8677_v16 = vpop.f32.mrf.mxu0 }
 0x249   : > { %v11048_v58 = vadd.f32 %v10907_v50, %v3959_v34  ;;  %v3964_v61 = vadd.f32 %v8677_v16, %v3606_v60 }
 0x24a   : > { %v3919_v22 = vpop.f32.mrf.mxu0 }
 0x24b   : > { %v11051_v53 = vadd.f32 %v10907_v50, %v3964_v61  ;;  %v3962_v24 = vadd.f32 %v3919_v22, %v3604_v26 }
 0x24c   : > { %v8678_v42 = vpop.f32.mrf.mxu0 }
 0x24d   : > { %v11054_v57 = vadd.f32 %v10907_v50, %v3962_v24  ;;  %v3965_v33 = vadd.f32 %v8678_v42, %v3607_v51  ;;  %4009 = sbr.rel (%p7478_p8) target bundleno = 696 (0x2b8), region = 70 }
 0x24e   : > { %v3922_v6 = vpop.f32.mrf.mxu0 }
 0x24f   : > { %v11057_v52 = vadd.f32 %v10907_v50, %v3965_v33  ;;  %v3963_v55 = vadd.f32 %v3922_v6, %v3605_v12 }
 0x251   : > { %v11060_v49 = vadd.f32 %v10907_v50, %v3963_v55 }
 0x252   : > { %v4010_v20 = vlaneseq  ;;  %vm4621_vm6 = vcmp.gt.f32.partialorder %v10916_v62, 0.0  ;;  %vm4622_vm7 = vcmp.gt.f32.partialorder %v10928_v19, 0.0  ;;  %v9444_v37 = vmov 0.0|0.0  }
 0x253   : > { %v7479_v29 = vcombine.low %v9444_v37, %v9444_v37  ;;  %v7480_v21 = vcombine.high %v9444_v37, %v9444_v37  ;;  %v4653_v25 = vmul.f32 0.2, %v10916_v62  ;;  %v4654_v50 = vmul.f32 0.2, %v10928_v19 }
 0x254   : > { %v11070_v30 = vshrl.u32 %v4010_v20, 7  ;;  %vm4623_vm8 = vcmp.gt.f32.partialorder %v10943_v1, 0.0  ;;  %vm4624_vm9 = vcmp.gt.f32.partialorder %v10953_v9, 0.0  ;;  %v4655_v48 = vmul.f32 0.2, %v10943_v1 }
 0x255   : > { %4942 = vst [vmem:[%s11075_s22 + $0x10] sm:$0xf] %v7479_v29  ;;  %4943 = vst [vmem:[%s11075_s22 + $0x14] sm:$0xf] %v7480_v21  ;;  %v11080_v36 = vsel %vm4621_vm6, %v10916_v62, %v4653_v25  ;;  %v11083_v39 = vsel %vm4622_vm7, %v10928_v19, %v4654_v50  ;;  %v4656_v44 = vmul.f32 0.2, %v10953_v9 }
 0x256   : > { %vm4625_vm10 = vcmp.gt.f32.partialorder %v10938_v5, 0.0  ;;  %v4013_v3 = vadd.s32 16, %v11070_v30  ;;  %v4014_v43 = vadd.s32 24, %v11070_v30  ;;  %v4015_v7 = vadd.s32 32, %v11070_v30 }
 0x257   : > { %v4016_v35 = vadd.s32 40, %v11070_v30  ;;  %v11092_v60 = vsel %vm4623_vm8, %v10943_v1, %v4655_v48  ;;  %v11095_v2 = vsel %vm4624_vm9, %v10953_v9, %v4656_v44  ;;  %v4017_v34 = vadd.s32 48, %v11070_v30 }
 0x258   : > { %v4018_v16 = vadd.s32 56, %v11070_v30  ;;  %v11099_v26 = vmul.u32.u64.low 3817748708, %v4013_v3  ;;  %v11100_v54 = vmul.u32.u64.high 3817748708, %v4013_v3, %v11099_v26  ;;  %vm4397_vm11 = vcmp.ge.s32.totalorder %v4013_v3, 18 }
 0x259   : > { %v11102_v32 = vmul.u32.u64.low 3817748708, %v4014_v43  ;;  %v11103_v61 = vmul.u32.u64.high 3817748708, %v4014_v43, %v11102_v32  ;;  %v11105_v28 = vmul.u32.u64.low 3817748708, %v4015_v7  ;;  %v11106_v22 = vmul.u32.u64.high 3817748708, %v4015_v7, %v11105_v28 }
 0x25a   : > { %vm4626_vm12 = vcmp.gt.f32.partialorder %v10948_v47, 0.0  ;;  %v11109_v51 = vmul.u32.u64.low 3817748708, %v4016_v35  ;;  %v11110_v24 = vmul.u32.u64.high 3817748708, %v4016_v35, %v11109_v51  ;;  %v4657_v55 = vmul.f32 0.2, %v10938_v5 }
 0x25b   : > { %v11112_v42 = vmul.u32.u64.low 3817748708, %v4017_v34  ;;  %v11113_v12 = vmul.u32.u64.high 3817748708, %v4017_v34, %v11112_v42  ;;  %v11115_v33 = vmul.u32.u64.low 3817748708, %v4018_v16  ;;  %v11116_v6 = vmul.u32.u64.high 3817748708, %v4018_v16, %v11115_v33 }
 0x25c   : > { %v4658_v20 = vmul.f32 0.2, %v10948_v47  ;;  %v4071_v37 = vshrl.u32 %v11100_v54, 4  ;;  %v4082_v29 = vshrl.u32 %v11103_v61, 4  ;;  %v4019_v21 = vadd.s32 64, %v11070_v30 }
 0x25d   : > { %v11124_v25 = vadd.s32 72, %v11070_v30  ;;  %v4093_v50 = vshrl.u32 %v11106_v22, 4  ;;  %v11130_v48 = vsel %vm4625_vm10, %v10938_v5, %v4657_v55  ;;  %vm4627_vm13 = vcmp.gt.f32.partialorder %v10963_v59, 0.0 }
 0x25e   : > { %v11135_v44 = vsel %vm4626_vm12, %v10948_v47, %v4658_v20  ;;  %v4072_v26 = vmul.u32 18, %v4071_v37  ;;  %v4083_v54 = vmul.u32 18, %v4082_v29  ;;  %v4104_v32 = vshrl.u32 %v11110_v24, 4 }
 0x25f   : > { %v4115_v61 = vshrl.u32 %v11113_v12, 4  ;;  %v4094_v28 = vmul.u32 18, %v4093_v50  ;;  %v4126_v22 = vshrl.u32 %v11116_v6, 4  ;;  %vm4628_vm5 = vcmp.gt.f32.partialorder %v10973_v14, 0.0 }
 0x260   : > { %v11141_v51 = vmul.u32.u64.low 3817748708, %v4019_v21  ;;  %v11142_v42 = vmul.u32.u64.high 3817748708, %v4019_v21, %v11141_v51  ;;  %v4073_v33 = vsub.s32 %v4013_v3, %v4072_v26  ;;  %v4084_v55 = vsub.s32 %v4014_v43, %v4083_v54 }
 0x261   : > { %v4105_v5 = vmul.u32 18, %v4104_v32  ;;  %v4116_v9 = vmul.u32 18, %v4115_v61  ;;  %v4095_v20 = vsub.s32 %v4015_v7, %v4094_v28  ;;  %v4659_v7 = vmul.f32 0.2, %v10963_v59 }
 0x262   : > { %v4127_v47 = vmul.u32 18, %v4126_v22  ;;  %v11145_v1 = vmul.u32.u64.low 3817748708, %v11124_v25  ;;  %v11146_v37 = vmul.u32.u64.high 3817748708, %v11124_v25, %v11145_v1  ;;  %vm4493_vm14 = vcmp.ge.s32.totalorder %v4073_v33, 1 }
 0x263   : > { %vm4494_vm15 = vcmp.ge.s32.totalorder %v4084_v55, 1  ;;  %vm4557_vm6 = vcmp.le.s32.totalorder %v4073_v33, 16  ;;  %vm4558_vm7 = vcmp.le.s32.totalorder %v4084_v55, 16  ;;  %vm4525_vm8 = vmand %vm4397_vm11, %vm4493_vm14  ;;  %v4106_v24 = vsub.s32 %v4016_v35, %v4105_v5 }
 0x264   : > { %vm4495_vm9 = vcmp.ge.s32.totalorder %v4095_v20, 1  ;;  %vm4559_vm10 = vcmp.le.s32.totalorder %v4095_v20, 16  ;;  %v4117_v12 = vsub.s32 %v4017_v34, %v4116_v9  ;;  %vm4589_vm12 = vmand %vm4525_vm8, %vm4557_vm6  ;;  %v4128_v43 = vsub.s32 %v4018_v16, %v4127_v47 }
 0x265   : > { %v4137_v6 = vshrl.u32 %v11142_v42, 4  ;;  %vm4590_vm3 = vmand %vm4494_vm15, %vm4558_vm7  ;;  %v4781_v1 = vsel %vm4589_vm12, %v11080_v36, 0.0  ;;  %vm4496_vm4 = vcmp.ge.s32.totalorder %v4106_v24, 1  ;;  %vm4560_vm0 = vcmp.le.s32.totalorder %v4106_v24, 16 }
 0x266   : > { %vm4497_vm2 = vcmp.ge.s32.totalorder %v4117_v12, 1  ;;  %v4782_v5 = vsel %vm4590_vm3, %v11083_v39, 0.0  ;;  %vm4591_vm11 = vmand %vm4495_vm9, %vm4559_vm10  ;;  %vm4498_vm14 = vcmp.ge.s32.totalorder %v4128_v43, 1  ;;  %vm4561_vm6 = vcmp.le.s32.totalorder %v4117_v12, 16 }
 0x267   : > { %vm4562_vm8 = vcmp.le.s32.totalorder %v4128_v43, 16  ;;  %v7804_v47 = vpack.c.bf16 %v4782_v5, %v4781_v1  ;;  %vm4592_vm1 = vmand %vm4496_vm4, %vm4560_vm0  ;;  %v4783_v9 = vsel %vm4591_vm11, %v11092_v60, 0.0  ;;  %v4138_v3 = vmul.u32 18, %v4137_v6 }
 0x268   : > { %v4148_v35 = vshrl.u32 %v11146_v37, 4  ;;  %v4784_v36 = vsel %vm4592_vm1, %v11095_v2, 0.0  ;;  %vm4593_vm15 = vmand %vm4497_vm2, %vm4561_vm6  ;;  %v4660_v34 = vmul.f32 0.2, %v10973_v14  ;;  %v4691_v39 = vsel %vm4627_vm13, %v10963_v59, %v4659_v7 }
 0x269   : > { %v4021_v16 = vadd.s32 80, %v11070_v30  ;;  %7895 = vst [vmem:[%s11075_s22 + $0x18] sm:$0xff] %v7804_v47   ;;  %v7809_v29 = vpack.c.bf16 %v4784_v36, %v4783_v9  ;;  %vm4594_vm0 = vmand %vm4498_vm14, %vm4562_vm8  ;;  %v4785_v60 = vsel %vm4593_vm15, %v11130_v48, 0.0  ;;  %v4139_v50 = vsub.s32 %v4019_v21, %v4138_v3 }
 0x26a   : > { %v4149_v26 = vmul.u32 18, %v4148_v35  ;;  %v4786_v2 = vsel %vm4594_vm0, %v11135_v44, 0.0  ;;  %v4692_v54 = vsel %vm4628_vm5, %v10973_v14, %v4660_v34  ;;  %v4022_v32 = vadd.s32 88, %v11070_v30 }
 0x26b   : > { %vm4629_vm1 = vcmp.gt.f32.partialorder %v10958_v45, 0.0  ;;  %7896 = vst [vmem:[%s11075_s22 + $0x20] sm:$0xff] %v7809_v29   ;;  %v7814_v61 = vpack.c.bf16 %v4786_v2, %v4785_v60  ;;  %vm4499_vm2 = vcmp.ge.s32.totalorder %v4139_v50, 1  ;;  %vm4563_vm3 = vcmp.le.s32.totalorder %v4139_v50, 16 }
 0x26c   : > { %v4150_v28 = vsub.s32 %v11124_v25, %v4149_v26  ;;  %vm11174_vm4 = vmand %vm4499_vm2, %vm4563_vm3  ;;  %v11178_v21 = vmul.u32.u64.low 3817748708, %v4021_v16  ;;  %v11179_v44 = vmul.u32.u64.high 3817748708, %v4021_v16, %v11178_v21  ;;  %vm4630_vm7 = vcmp.gt.f32.partialorder %v10968_v27, 0.0 }
 0x26d   : > { %v11181_v22 = vmul.u32.u64.low 3817748708, %v4022_v32  ;;  %v11182_v51 = vmul.u32.u64.high 3817748708, %v4022_v32, %v11181_v22  ;;  %7897 = vst [vmem:[%s11075_s22 + $0x28] sm:$0xff] %v7814_v61   ;;  %v4787_v42 = vsel %vm11174_vm4, %v4691_v39, 0.0  ;;  %v4661_v25 = vmul.f32 0.2, %v10958_v45 }
 0x26e   : > { %vm4500_vm5 = vcmp.ge.s32.totalorder %v4150_v28, 1  ;;  %vm4564_vm13 = vcmp.le.s32.totalorder %v4150_v28, 16  ;;  %v4662_v33 = vmul.f32 0.2, %v10968_v27  ;;  %v4023_v55 = vadd.s32 96, %v11070_v30 }
 0x26f   : > { %vm4596_vm9 = vmand %vm4500_vm5, %vm4564_vm13  ;;  %v4024_v20 = vadd.s32 104, %v11070_v30  ;;  %vm4631_vm10 = vcmp.gt.f32.partialorder %v10983_v41, 0.0  ;;  %vm4632_vm12 = vcmp.gt.f32.partialorder %v10993_v18, 0.0  ;;  %v4663_v24 = vmul.f32 0.2, %v10983_v41 }
 0x270   : > { %v4788_v37 = vsel %vm4596_vm9, %v4692_v54, 0.0  ;;  %v4159_v43 = vshrl.u32 %v11179_v44, 4  ;;  %v4170_v6 = vshrl.u32 %v11182_v51, 4  ;;  %v4693_v7 = vsel %vm4629_vm1, %v10958_v45, %v4661_v25 }
 0x271   : > { %v7819_v12 = vpack.c.bf16 %v4788_v37, %v4787_v42  ;;  %v4694_v1 = vsel %vm4630_vm7, %v10968_v27, %v4662_v33  ;;  %v11203_v5 = vmul.u32.u64.low 3817748708, %v4023_v55  ;;  %v11204_v47 = vmul.u32.u64.high 3817748708, %v4023_v55, %v11203_v5 }
 0x272   : > { %v4664_v9 = vmul.f32 0.2, %v10993_v18  ;;  %v4160_v3 = vmul.u32 18, %v4159_v43  ;;  %v4171_v35 = vmul.u32 18, %v4170_v6  ;;  %v4695_v36 = vsel %vm4631_vm10, %v10983_v41, %v4663_v24 }
 0x273   : > { %7898 = vst [vmem:[%s11075_s22 + $0x30] sm:$0xff] %v7819_v12   ;;  %v4025_v34 = vadd.s32 112, %v11070_v30  ;;  %v11210_v39 = vmul.u32.u64.low 3817748708, %v4024_v20  ;;  %v11211_v29 = vmul.u32.u64.high 3817748708, %v4024_v20, %v11210_v39  ;;  %v4026_v50 = vadd.s32 120, %v11070_v30 }
 0x274   : > { %v4696_v60 = vsel %vm4632_vm12, %v10993_v18, %v4664_v9  ;;  %v4161_v26 = vsub.s32 %v4021_v16, %v4160_v3  ;;  %v4172_v2 = vsub.s32 %v4022_v32, %v4171_v35  ;;  %v4181_v28 = vshrl.u32 %v11204_v47, 4 }
 0x275   : > { %v11217_v54 = vmul.u32.u64.low 3817748708, %v4025_v34  ;;  %v11218_v61 = vmul.u32.u64.high 3817748708, %v4025_v34, %v11217_v54  ;;  %v11221_v48 = vmul.u32.u64.low 3817748708, %v4026_v50  ;;  %v11222_v21 = vmul.u32.u64.high 3817748708, %v4026_v50, %v11221_v48 }
 0x276   : > { %vm4633_vm11 = vcmp.gt.f32.partialorder %v10978_v17, 0.0  ;;  %vm4501_vm14 = vcmp.ge.s32.totalorder %v4161_v26, 1  ;;  %vm4502_vm6 = vcmp.ge.s32.totalorder %v4172_v2, 1  ;;  %vm4565_vm8 = vcmp.le.s32.totalorder %v4161_v26, 16 }
 0x277   : > { %vm4566_vm15 = vcmp.le.s32.totalorder %v4172_v2, 16  ;;  %vm4597_vm0 = vmand %vm4501_vm14, %vm4565_vm8  ;;  %v4182_v44 = vmul.u32 18, %v4181_v28  ;;  %v4192_v22 = vshrl.u32 %v11211_v29, 4  ;;  %vm4634_vm1 = vcmp.gt.f32.partialorder %v10988_v23, 0.0 }
 0x278   : > { %v4665_v16 = vmul.f32 0.2, %v10978_v17  ;;  %vm4598_vm2 = vmand %vm4502_vm6, %vm4566_vm15  ;;  %v4789_v32 = vsel %vm4597_vm0, %v4693_v7, 0.0  ;;  %v4203_v51 = vshrl.u32 %v11218_v61, 4  ;;  %v4666_v42 = vmul.f32 0.2, %v10988_v23 }
 0x279   : > { %v4027_v25 = vadd.s32 128, %v11070_v30  ;;  %v4790_v33 = vsel %vm4598_vm2, %v4694_v1, 0.0  ;;  %v4183_v37 = vsub.s32 %v4023_v55, %v4182_v44  ;;  %v4193_v24 = vmul.u32 18, %v4192_v22 }
 0x27a   : > { %v4214_v12 = vshrl.u32 %v11222_v21, 4  ;;  %v7824_v43 = vpack.c.bf16 %v4790_v33, %v4789_v32  ;;  %v4204_v6 = vmul.u32 18, %v4203_v51  ;;  %v4697_v5 = vsel %vm4633_vm11, %v10978_v17, %v4665_v16 }
 0x27b   : > { %v4698_v7 = vsel %vm4634_vm1, %v10988_v23, %v4666_v42  ;;  %v4194_v47 = vsub.s32 %v4024_v20, %v4193_v24  ;;  %vm4503_vm3 = vcmp.ge.s32.totalorder %v4183_v37, 1  ;;  %vm4567_vm4 = vcmp.le.s32.totalorder %v4183_v37, 16 }
 0x27c   : > { %v4215_v9 = vmul.u32 18, %v4214_v12  ;;  %7899 = vst [vmem:[%s11075_s22 + $0x38] sm:$0xff] %v7824_v43   ;;  %vm11237_vm5 = vmand %vm4503_vm3, %vm4567_vm4  ;;  %v4205_v55 = vsub.s32 %v4025_v34, %v4204_v6  ;;  %v4028_v1 = vadd.s32 136, %v11070_v30  ;;  %vm4635_vm8 = vcmp.gt.f32.partialorder %v11002_v13, 0.0 }
 0x27d   : > { %v11242_v35 = vmul.u32.u64.low 3817748708, %v4027_v25  ;;  %v11243_v39 = vmul.u32.u64.high 3817748708, %v4027_v25, %v11242_v35  ;;  %vm4504_vm13 = vcmp.ge.s32.totalorder %v4194_v47, 1  ;;  %vm4568_vm7 = vcmp.le.s32.totalorder %v4194_v47, 16 }
 0x27e   : > { %v4791_v29 = vsel %vm11237_vm5, %v4695_v36, 0.0  ;;  %v4216_v20 = vsub.s32 %v4026_v50, %v4215_v9  ;;  %vm4600_vm9 = vmand %vm4504_vm13, %vm4568_vm7  ;;  %vm4505_vm10 = vcmp.ge.s32.totalorder %v4205_v55, 1  ;;  %vm4569_vm12 = vcmp.le.s32.totalorder %v4205_v55, 16 }
 0x27f   : > { %v11247_v26 = vmul.u32.u64.low 3817748708, %v4028_v1  ;;  %v11248_v2 = vmul.u32.u64.high 3817748708, %v4028_v1, %v11247_v26  ;;  %v4792_v54 = vsel %vm4600_vm9, %v4696_v60, 0.0  ;;  %vm4601_vm6 = vmand %vm4505_vm10, %vm4569_vm12  ;;  %v4225_v36 = vshrl.u32 %v11243_v39, 4 }
 0x280   : > { %vm4506_vm11 = vcmp.ge.s32.totalorder %v4216_v20, 1  ;;  %vm4570_vm14 = vcmp.le.s32.totalorder %v4216_v20, 16  ;;  %v7829_v34 = vpack.c.bf16 %v4792_v54, %v4791_v29  ;;  %v4793_v61 = vsel %vm4601_vm6, %v4697_v5, 0.0 }
 0x281   : > { %vm4602_vm15 = vmand %vm4506_vm11, %vm4570_vm14  ;;  %vm4636_vm0 = vcmp.gt.f32.partialorder %v11010_v56, 0.0  ;;  %v4667_v28 = vmul.f32 0.2, %v11002_v13  ;;  %v4668_v48 = vmul.f32 0.2, %v11010_v56  ;;  %v4029_v60 = vadd.s32 144, %v11070_v30 }
 0x282   : > { %v4794_v50 = vsel %vm4602_vm15, %v4698_v7, 0.0  ;;  %7900 = vst [vmem:[%s11075_s22 + $0x40] sm:$0xff] %v7829_v34   ;;  %v4226_v44 = vmul.u32 18, %v4225_v36  ;;  %v4236_v22 = vshrl.u32 %v11248_v2, 4  ;;  %v4030_v16 = vadd.s32 152, %v11070_v30 }
 0x283   : > { %v7834_v21 = vpack.c.bf16 %v4794_v50, %v4793_v61  ;;  %v11259_v32 = vmul.u32.u64.low 3817748708, %v4029_v60  ;;  %v11260_v51 = vmul.u32.u64.high 3817748708, %v4029_v60, %v11259_v32  ;;  %v4699_v12 = vsel %vm4635_vm8, %v11002_v13, %v4667_v28 }
 0x284   : > { %v4227_v42 = vsub.s32 %v4027_v25, %v4226_v44  ;;  %v4237_v33 = vmul.u32 18, %v4236_v22  ;;  %v11263_v37 = vmul.u32.u64.low 3817748708, %v4030_v16  ;;  %v11264_v24 = vmul.u32.u64.high 3817748708, %v4030_v16, %v11263_v37 }
 0x285   : > { %7901 = vst [vmem:[%s11075_s22 + $0x48] sm:$0xff] %v7834_v21   ;;  %v4700_v43 = vsel %vm4636_vm0, %v11010_v56, %v4668_v48  ;;  %vm4637_vm1 = vcmp.gt.f32.partialorder %v10998_v4, 0.0  ;;  %v4669_v6 = vmul.f32 0.2, %v10998_v4  ;;  %v4031_v25 = vadd.s32 160, %v11070_v30 }
 0x286   : > { %v4238_v5 = vsub.s32 %v4028_v1, %v4237_v33  ;;  %vm4507_vm2 = vcmp.ge.s32.totalorder %v4227_v42, 1  ;;  %vm4571_vm3 = vcmp.le.s32.totalorder %v4227_v42, 16  ;;  %v4247_v47 = vshrl.u32 %v11260_v51, 4 }
 0x287   : > { %vm11275_vm4 = vmand %vm4507_vm2, %vm4571_vm3  ;;  %vm4638_vm5 = vcmp.gt.f32.partialorder %v11006_v46, 0.0  ;;  %v4670_v9 = vmul.f32 0.2, %v11006_v46  ;;  %v4032_v3 = vadd.s32 168, %v11070_v30  ;;  %v4258_v1 = vshrl.u32 %v11264_v24, 4 }
 0x288   : > { %vm4508_vm13 = vcmp.ge.s32.totalorder %v4238_v5, 1  ;;  %vm4572_vm7 = vcmp.le.s32.totalorder %v4238_v5, 16  ;;  %v4795_v55 = vsel %vm11275_vm4, %v4699_v12, 0.0  ;;  %v4248_v35 = vmul.u32 18, %v4247_v47 }
 0x289   : > { %vm4604_vm9 = vmand %vm4508_vm13, %vm4572_vm7  ;;  %v4701_v39 = vsel %vm4637_vm1, %v10998_v4, %v4669_v6  ;;  %v11289_v29 = vmul.u32.u64.low 3817748708, %v4031_v25  ;;  %v11290_v20 = vmul.u32.u64.high 3817748708, %v4031_v25, %v11289_v29  ;;  %v4259_v2 = vmul.u32 18, %v4258_v1 }
 0x28a   : > { %v4796_v26 = vsel %vm4604_vm9, %v4700_v43, 0.0  ;;  %v11292_v54 = vmul.u32.u64.low 3817748708, %v4032_v3  ;;  %v11293_v34 = vmul.u32.u64.high 3817748708, %v4032_v3, %v11292_v54  ;;  %v4249_v36 = vsub.s32 %v4029_v60, %v4248_v35 }
 0x28b   : > { %v7839_v61 = vpack.c.bf16 %v4796_v26, %v4795_v55  ;;  %v4702_v50 = vsel %vm4638_vm5, %v11006_v46, %v4670_v9  ;;  %vm4639_vm10 = vcmp.gt.f32.partialorder %v11018_v11, 0.0  ;;  %v4260_v28 = vsub.s32 %v4030_v16, %v4259_v2 }
 0x28c   : > { %v4671_v48 = vmul.f32 0.2, %v11018_v11  ;;  %v4033_v21 = vadd.s32 176, %v11070_v30  ;;  %v4034_v44 = vadd.s32 184, %v11070_v30  ;;  %vm4509_vm12 = vcmp.ge.s32.totalorder %v4249_v36, 1 }
 0x28d   : > { %7902 = vst [vmem:[%s11075_s22 + $0x50] sm:$0xff] %v7839_v61   ;;  %vm4573_vm11 = vcmp.le.s32.totalorder %v4249_v36, 16  ;;  %v4269_v22 = vshrl.u32 %v11290_v20, 4  ;;  %v4672_v60 = vmul.f32 0.2, %v11026_v38  ;;  %vm4510_vm14 = vcmp.ge.s32.totalorder %v4260_v28, 1 }
 0x28e   : > { %vm4574_vm6 = vcmp.le.s32.totalorder %v4260_v28, 16  ;;  %vm4605_vm8 = vmand %vm4509_vm12, %vm4573_vm11  ;;  %v4280_v32 = vshrl.u32 %v11293_v34, 4  ;;  %vm4640_vm15 = vcmp.gt.f32.partialorder %v11026_v38, 0.0  ;;  %v4703_v7 = vsel %vm4639_vm10, %v11018_v11, %v4671_v48 }
 0x28f   : > { %vm4606_vm0 = vmand %vm4510_vm14, %vm4574_vm6  ;;  %v4797_v16 = vsel %vm4605_vm8, %v4701_v39, 0.0  ;;  %v4270_v51 = vmul.u32 18, %v4269_v22  ;;  %v11307_v42 = vmul.u32.u64.low 3817748708, %v4033_v21  ;;  %v11308_v33 = vmul.u32.u64.high 3817748708, %v4033_v21, %v11307_v42 }
 0x290   : > { %v4798_v37 = vsel %vm4606_vm0, %v4702_v50, 0.0  ;;  %v4281_v24 = vmul.u32 18, %v4280_v32  ;;  %v11310_v12 = vmul.u32.u64.low 3817748708, %v4034_v44  ;;  %v11311_v43 = vmul.u32.u64.high 3817748708, %v4034_v44, %v11310_v12 }
 0x291   : > { %v7844_v6 = vpack.c.bf16 %v4798_v37, %v4797_v16  ;;  %v4271_v5 = vsub.s32 %v4031_v25, %v4270_v51  ;;  %v4704_v47 = vsel %vm4640_vm15, %v11026_v38, %v4672_v60  ;;  %vm4641_vm1 = vcmp.gt.f32.partialorder %v11014_v10, 0.0 }
 0x292   : > { %v4282_v9 = vsub.s32 %v4032_v3, %v4281_v24  ;;  %v4673_v55 = vmul.f32 0.2, %v11014_v10  ;;  %v4035_v1 = vadd.s32 192, %v11070_v30  ;;  %v4291_v35 = vshrl.u32 %v11308_v33, 4 }
 0x293   : > { %7903 = vst [vmem:[%s11075_s22 + $0x58] sm:$0xff] %v7844_v6   ;;  %vm4511_vm2 = vcmp.ge.s32.totalorder %v4271_v5, 1  ;;  %vm4575_vm3 = vcmp.le.s32.totalorder %v4271_v5, 16  ;;  %v4036_v25 = vadd.s32 200, %v11070_v30  ;;  %v4302_v39 = vshrl.u32 %v11311_v43, 4 }
 0x294   : > { %vm4512_vm4 = vcmp.ge.s32.totalorder %v4282_v9, 1  ;;  %vm4576_vm5 = vcmp.le.s32.totalorder %v4282_v9, 16  ;;  %vm4607_vm13 = vmand %vm4511_vm2, %vm4575_vm3  ;;  %v4674_v3 = vmul.f32 0.2, %v11022_v15  ;;  %v4292_v20 = vmul.u32 18, %v4291_v35 }
 0x295   : > { %vm4608_vm7 = vmand %vm4512_vm4, %vm4576_vm5  ;;  %v4799_v29 = vsel %vm4607_vm13, %v4703_v7, 0.0  ;;  %vm4642_vm9 = vcmp.gt.f32.partialorder %v11022_v15, 0.0  ;;  %v4705_v26 = vsel %vm4641_vm1, %v11014_v10, %v4673_v55  ;;  %v4303_v54 = vmul.u32 18, %v4302_v39 }
 0x296   : > { %v4800_v2 = vsel %vm4608_vm7, %v4704_v47, 0.0  ;;  %v11329_v34 = vmul.u32.u64.low 3817748708, %v4035_v1  ;;  %v11330_v61 = vmul.u32.u64.high 3817748708, %v4035_v1, %v11329_v34  ;;  %v4293_v50 = vsub.s32 %v4033_v21, %v4292_v20 }
 0x297   : > { %v7849_v36 = vpack.c.bf16 %v4800_v2, %v4799_v29  ;;  %v11332_v28 = vmul.u32.u64.low 3817748708, %v4036_v25  ;;  %v11333_v48 = vmul.u32.u64.high 3817748708, %v4036_v25, %v11332_v28  ;;  %v4304_v22 = vsub.s32 %v4034_v44, %v4303_v54 }
 0x298   : > { %v4706_v60 = vsel %vm4642_vm9, %v11022_v15, %v4674_v3  ;;  %vm4643_vm10 = vcmp.gt.f32.partialorder %v11036_v0, 0.0  ;;  %v4675_v32 = vmul.f32 0.2, %v11036_v0  ;;  %vm4513_vm12 = vcmp.ge.s32.totalorder %v4293_v50, 1 }
 0x299   : > { %7904 = vst [vmem:[%s11075_s22 + $0x60] sm:$0xff] %v7849_v36   ;;  %vm4577_vm11 = vcmp.le.s32.totalorder %v4293_v50, 16  ;;  %v4037_v16 = vadd.s32 208, %v11070_v30  ;;  %v4038_v51 = vadd.s32 216, %v11070_v30  ;;  %vm4514_vm14 = vcmp.ge.s32.totalorder %v4304_v22, 1 }
 0x29a   : > { %vm4578_vm6 = vcmp.le.s32.totalorder %v4304_v22, 16  ;;  %vm4609_vm8 = vmand %vm4513_vm12, %vm4577_vm11  ;;  %v4313_v21 = vshrl.u32 %v11330_v61, 4  ;;  %v4676_v44 = vmul.f32 0.2, %v11048_v58  ;;  %v4324_v33 = vshrl.u32 %v11333_v48, 4 }
 0x29b   : > { %vm4610_vm15 = vmand %vm4514_vm14, %vm4578_vm6  ;;  %v4801_v42 = vsel %vm4609_vm8, %v4705_v26, 0.0  ;;  %vm4644_vm0 = vcmp.gt.f32.partialorder %v11048_v58, 0.0  ;;  %v4707_v37 = vsel %vm4643_vm10, %v11036_v0, %v4675_v32  ;;  %vm4645_vm1 = vcmp.gt.f32.partialorder %v11030_v8, 0.0 }
 0x29c   : > { %v4802_v24 = vsel %vm4610_vm15, %v4706_v60, 0.0  ;;  %v4314_v12 = vmul.u32 18, %v4313_v21  ;;  %v11348_v43 = vmul.u32.u64.low 3817748708, %v4037_v16  ;;  %v11349_v6 = vmul.u32.u64.high 3817748708, %v4037_v16, %v11348_v43 }
 0x29d   : > { %v7854_v5 = vpack.c.bf16 %v4802_v24, %v4801_v42  ;;  %v4325_v7 = vmul.u32 18, %v4324_v33  ;;  %v11351_v47 = vmul.u32.u64.low 3817748708, %v4038_v51  ;;  %v11352_v9 = vmul.u32.u64.high 3817748708, %v4038_v51, %v11351_v47 }
 0x29e   : > { %v4315_v55 = vsub.s32 %v4035_v1, %v4314_v12  ;;  %v4708_v35 = vsel %vm4644_vm0, %v11048_v58, %v4676_v44  ;;  %vm4646_vm2 = vcmp.gt.f32.partialorder %v11043_v40, 0.0  ;;  %v4677_v3 = vmul.f32 0.2, %v11030_v8 }
 0x29f   : > { %7905 = vst [vmem:[%s11075_s22 + $0x68] sm:$0xff] %v7854_v5   ;;  %v4326_v39 = vsub.s32 %v4036_v25, %v4325_v7  ;;  %v4039_v29 = vadd.s32 224, %v11070_v30  ;;  %v4040_v20 = vadd.s32 232, %v11070_v30  ;;  %v4335_v26 = vshrl.u32 %v11349_v6, 4 }
 0x2a0   : > { %vm4515_vm3 = vcmp.ge.s32.totalorder %v4315_v55, 1  ;;  %vm4579_vm4 = vcmp.le.s32.totalorder %v4315_v55, 16  ;;  %v4678_v1 = vmul.f32 0.2, %v11043_v40  ;;  %v4346_v2 = vshrl.u32 %v11352_v9, 4 }
 0x2a1   : > { %vm4516_vm5 = vcmp.ge.s32.totalorder %v4326_v39, 1  ;;  %vm4580_vm13 = vcmp.le.s32.totalorder %v4326_v39, 16  ;;  %vm4611_vm7 = vmand %vm4515_vm3, %vm4579_vm4  ;;  %vm4647_vm9 = vcmp.gt.f32.partialorder %v11054_v57, 0.0  ;;  %v4336_v54 = vmul.u32 18, %v4335_v26 }
 0x2a2   : > { %vm4612_vm10 = vmand %vm4516_vm5, %vm4580_vm13  ;;  %v4803_v25 = vsel %vm4611_vm7, %v4707_v37, 0.0  ;;  %v11365_v34 = vmul.u32.u64.low 3817748708, %v4039_v29  ;;  %v11366_v61 = vmul.u32.u64.high 3817748708, %v4039_v29, %v11365_v34  ;;  %v4347_v50 = vmul.u32 18, %v4346_v2 }
 0x2a3   : > { %v4804_v36 = vsel %vm4612_vm10, %v4708_v35, 0.0  ;;  %v11368_v28 = vmul.u32.u64.low 3817748708, %v4040_v20  ;;  %v11369_v48 = vmul.u32.u64.high 3817748708, %v4040_v20, %v11368_v28  ;;  %v4337_v60 = vsub.s32 %v4037_v16, %v4336_v54 }
 0x2a4   : > { %v7859_v22 = vpack.c.bf16 %v4804_v36, %v4803_v25  ;;  %v4709_v32 = vsel %vm4645_vm1, %v11030_v8, %v4677_v3  ;;  %v4710_v21 = vsel %vm4646_vm2, %v11043_v40, %v4678_v1  ;;  %v4348_v44 = vsub.s32 %v4038_v51, %v4347_v50 }
 0x2a5   : > { %vm4648_vm12 = vcmp.gt.f32.partialorder %v11060_v49, 0.0  ;;  %v4041_v42 = vadd.s32 240, %v11070_v30  ;;  %v4042_v33 = vadd.s32 248, %v11070_v30  ;;  %vm4517_vm11 = vcmp.ge.s32.totalorder %v4337_v60, 1 }
 0x2a6   : > { %7906 = vst [vmem:[%s11075_s22 + $0x70] sm:$0xff] %v7859_v22   ;;  %vm4581_vm14 = vcmp.le.s32.totalorder %v4337_v60, 16  ;;  %v4357_v16 = vshrl.u32 %v11366_v61, 4  ;;  %v4679_v37 = vmul.f32 0.2, %v11054_v57  ;;  %vm4518_vm6 = vcmp.ge.s32.totalorder %v4348_v44, 1 }
 0x2a7   : > { %vm4582_vm8 = vcmp.le.s32.totalorder %v4348_v44, 16  ;;  %vm4613_vm15 = vmand %vm4517_vm11, %vm4581_vm14  ;;  %v4368_v24 = vshrl.u32 %v11369_v48, 4  ;;  %v4680_v51 = vmul.f32 0.2, %v11060_v49  ;;  %vm4649_vm7 = vcmp.gt.f32.partialorder %v11051_v53, 0.0 }
 0x2a8   : > { %vm4614_vm0 = vmand %vm4518_vm6, %vm4582_vm8  ;;  %v4805_v12 = vsel %vm4613_vm15, %v4709_v32, 0.0  ;;  %v4358_v43 = vmul.u32 18, %v4357_v16  ;;  %v11385_v6 = vmul.u32.u64.low 3817748708, %v4041_v42  ;;  %v11386_v30 = vmul.u32.u64.high 3817748708, %v4041_v42, %v11385_v6 }
 0x2a9   : > { %v4806_v5 = vsel %vm4614_vm0, %v4710_v21, 0.0  ;;  %v4369_v7 = vmul.u32 18, %v4368_v24  ;;  %v11388_v47 = vmul.u32.u64.low 3817748708, %v4042_v33  ;;  %v11389_v9 = vmul.u32.u64.high 3817748708, %v4042_v33, %v11388_v47 }
 0x2aa   : > { %v7864_v55 = vpack.c.bf16 %v4806_v5, %v4805_v12  ;;  %v4359_v35 = vsub.s32 %v4039_v29, %v4358_v43  ;;  %v4711_v3 = vsel %vm4647_vm9, %v11054_v57, %v4679_v37  ;;  %v4712_v26 = vsel %vm4648_vm12, %v11060_v49, %v4680_v51 }
 0x2ab   : > { %v4370_v39 = vsub.s32 %v4040_v20, %v4369_v7  ;;  %v4379_v1 = vshrl.u32 %v11386_v30, 4  ;;  %v4390_v29 = vshrl.u32 %v11389_v9, 4  ;;  %v4681_v20 = vmul.f32 0.2, %v11051_v53 }
 0x2ac   : > { %7907 = vst [vmem:[%s11075_s22 + $0x78] sm:$0xff] %v7864_v55   ;;  %vm4519_vm1 = vcmp.ge.s32.totalorder %v4359_v35, 1  ;;  %vm4583_vm2 = vcmp.le.s32.totalorder %v4359_v35, 16  ;;  %v4682_v54 = vmul.f32 0.2, %v11057_v52  ;;  %vm4650_vm9 = vcmp.gt.f32.partialorder %v11057_v52, 0.0 }
 0x2ad   : > { %vm4520_vm3 = vcmp.ge.s32.totalorder %v4370_v39, 1  ;;  %vm4584_vm4 = vcmp.le.s32.totalorder %v4370_v39, 16  ;;  %vm4615_vm5 = vmand %vm4519_vm1, %vm4583_vm2  ;;  %v4380_v25 = vmul.u32 18, %v4379_v1  ;;  %v4391_v61 = vmul.u32 18, %v4390_v29 }
 0x2ae   : > { %vm4616_vm13 = vmand %vm4520_vm3, %vm4584_vm4  ;;  %v4807_v2 = vsel %vm4615_vm5, %v4711_v3, 0.0  ;;  %v4713_v48 = vsel %vm4649_vm7, %v11051_v53, %v4681_v20  ;;  %v4714_v22 = vsel %vm4650_vm9, %v11057_v52, %v4682_v54 }
 0x2af   : > { %v4808_v34 = vsel %vm4616_vm13, %v4712_v26, 0.0  ;;  %v4381_v50 = vsub.s32 %v4041_v42, %v4380_v25  ;;  %v4392_v28 = vsub.s32 %v4042_v33, %v4391_v61 }
 0x2b0   : > { %v7869_v36 = vpack.c.bf16 %v4808_v34, %v4807_v2 }
 0x2b1   : > { %vm4521_vm10 = vcmp.ge.s32.totalorder %v4381_v50, 1  ;;  %vm4585_vm12 = vcmp.le.s32.totalorder %v4381_v50, 16  ;;  %vm4522_vm11 = vcmp.ge.s32.totalorder %v4392_v28, 1  ;;  %vm4586_vm14 = vcmp.le.s32.totalorder %v4392_v28, 16 }
 0x2b2   : > { %7908 = vst [vmem:[%s11075_s22 + $0x80] sm:$0xff] %v7869_v36   ;;  %vm4617_vm6 = vmand %vm4521_vm10, %vm4585_vm12 }
 0x2b3   : > { %vm4618_vm8 = vmand %vm4522_vm11, %vm4586_vm14  ;;  %v4809_v60 = vsel %vm4617_vm6, %v4713_v48, 0.0 }
 0x2b4   : > { %v4810_v32 = vsel %vm4618_vm8, %v4714_v22, 0.0 }
 0x2b5   : > { %v7874_v21 = vpack.c.bf16 %v4810_v32, %v4809_v60 }
 0x2b7   : > { %7909 = vst [vmem:[%s11075_s22 + $0x88] sm:$0xff] %v7874_v21  }
 0x2b8 PF: > { %p7512_p9 = scmp.ne.s32.totalorder %s9425_s12, 4 }
 0x2ba   : > { %4977 = sbr.rel (%p7512_p9) target bundleno = 719 (0x2cf), region = 74 }
 0x2bf   : > { %4978 = vst [vmem:[%s9511_s27] sm:$0xff] %v10921_v63  ;;  %4979 = vst [vmem:[%s9511_s27 + $0x8] sm:$0xff] %v10933_v31  ;;  %v12174_v44 = vld [vmem:[#allocation8_spill] sm:$0xff]  ;;  %v12175_v42 = vld [vmem:[#allocation10_spill] sm:$0xff] }
 0x2c0   : > { %4980 = vst [vmem:[%s9511_s27 + $0x10] sm:$0xff] %v10916_v62  ;;  %4981 = vst [vmem:[%s9511_s27 + $0x18] sm:$0xff] %v10928_v19  ;;  %v12176_v33 = vld [vmem:[#allocation7_spill] sm:$0xff]  ;;  %v12177_v16 = vld [vmem:[#allocation9_spill] sm:$0xff] }
 0x2c1   : > { %4982 = vst [vmem:[%s9511_s27 + $0x20] sm:$0xff] %v12174_v44  ;;  %4983 = vst [vmem:[%s9511_s27 + $0x28] sm:$0xff] %v12175_v42 }
 0x2c2   : > { %4984 = vst [vmem:[%s9511_s27 + $0x30] sm:$0xff] %v12176_v33  ;;  %4985 = vst [vmem:[%s9511_s27 + $0x38] sm:$0xff] %v12177_v16 }
 0x2c3   : > { %4986 = vst [vmem:[%s9511_s27 + $0x40] sm:$0xff] %v10963_v59  ;;  %4987 = vst [vmem:[%s9511_s27 + $0x48] sm:$0xff] %v10973_v14 }
 0x2c4   : > { %4988 = vst [vmem:[%s9511_s27 + $0x50] sm:$0xff] %v10958_v45  ;;  %4989 = vst [vmem:[%s9511_s27 + $0x58] sm:$0xff] %v10968_v27 }
 0x2c5   : > { %4990 = vst [vmem:[%s9511_s27 + $0x60] sm:$0xff] %v10983_v41  ;;  %4991 = vst [vmem:[%s9511_s27 + $0x68] sm:$0xff] %v10993_v18 }
 0x2c6   : > { %4992 = vst [vmem:[%s9511_s27 + $0x70] sm:$0xff] %v10978_v17  ;;  %4993 = vst [vmem:[%s9511_s27 + $0x78] sm:$0xff] %v10988_v23 }
 0x2c7   : > { %4994 = vst [vmem:[%s9511_s27 + $0x80] sm:$0xff] %v11002_v13  ;;  %4995 = vst [vmem:[%s9511_s27 + $0x88] sm:$0xff] %v11010_v56 }
 0x2c8   : > { %4996 = vst [vmem:[%s9511_s27 + $0x90] sm:$0xff] %v10998_v4  ;;  %4997 = vst [vmem:[%s9511_s27 + $0x98] sm:$0xff] %v11006_v46 }
 0x2c9   : > { %4998 = vst [vmem:[%s9511_s27 + $0xa0] sm:$0xff] %v11018_v11  ;;  %4999 = vst [vmem:[%s9511_s27 + $0xa8] sm:$0xff] %v11026_v38 }
 0x2ca   : > { %5000 = vst [vmem:[%s9511_s27 + $0xb0] sm:$0xff] %v11014_v10  ;;  %5001 = vst [vmem:[%s9511_s27 + $0xb8] sm:$0xff] %v11022_v15 }
 0x2cb   : > { %5002 = vst [vmem:[%s9511_s27 + $0xc0] sm:$0xff] %v11036_v0  ;;  %5003 = vst [vmem:[%s9511_s27 + $0xc8] sm:$0xff] %v11048_v58 }
 0x2cc   : > { %5004 = vst [vmem:[%s9511_s27 + $0xd0] sm:$0xff] %v11030_v8  ;;  %5005 = vst [vmem:[%s9511_s27 + $0xd8] sm:$0xff] %v11043_v40 }
 0x2cd   : > { %5006 = vst [vmem:[%s9511_s27 + $0xe0] sm:$0xff] %v11054_v57  ;;  %5007 = vst [vmem:[%s9511_s27 + $0xe8] sm:$0xff] %v11060_v49 }
 0x2ce   : > { %5008 = vst [vmem:[%s9511_s27 + $0xf0] sm:$0xff] %v11051_v53  ;;  %5009 = vst [vmem:[%s9511_s27 + $0xf8] sm:$0xff] %v11057_v52 }
 0x2cf PF: > { %v9300_v62 = vld [vmem:[%s9551_s9 + $0x78] sm:$0xff]   ;;  %v9445_v63 = vmov 0.0   ;;  %v9301_v19 = vld [vmem:[%s9551_s9 + $0x70] sm:$0xff]   ;;  %vm9446_vm15 = vmmov 0   ;;  %v9302_v31 = vld [vmem:[%s9551_s9 + $0x68] sm:$0xff]   ;;  %vm12178_vm0 = vcmask 1044480  }
 0x2d0   : > { %8679 = vmatprep.subr.bf16.mxu1 %v9445_v63  ;;  %8751 = vmatprep.subr.bf16.mxu0 %v9445_v63  ;;  %v9303_v45 = vld [vmem:[%s9551_s9 + $0x60] sm:$0xff]   ;;  %v9304_v59 = vld [vmem:[%s9551_s9 + $0x58] sm:$0xff]   ;;  %v9316_v14 = vld [vmem:[%s9551_s9 + $0xb0] sm:$0xff]   ;;  %vm12180_vm2 = vsmask.f32 4352  ;;  %vm12190_vm14 = vcmask 1046528  }
 0x2d1   : > { %8680 = vmatpush3.bf16.msra.mxu1 %v9300_v62  ;;  %8695 = vmatprep.mubr.msk.bf16.mxu1 %vm9446_vm15, %v9445_v63  ;;  %v9315_v27 = vld [vmem:[%s9551_s9 + $0xb8] sm:$0xff]   ;;  %v9305_v17 = vld [vmem:[%s9551_s9 + $0x50] sm:$0xff]   ;;  %v11495_v41 = vld [vmem:[%s9567_s11 + $0x88] sm:$0xf]  ;;  %vm12186_vm9 = vsmask.f32 5376 }
 0x2d2   : > { %8681 = vmatprep.subr.bf16.mxu1 %v9445_v63  ;;  %8767 = vmatprep.mubr.msk.bf16.mxu0 %vm9446_vm15, %v9445_v63  ;;  %v5036_v23 = vld [vmem:[%s9567_s11 + $0x84] sm:$0x8]  ;;  %v9319_v18 = vld [vmem:[%s9551_s9 + $0xa8] sm:$0xff]   ;;  %v9324_v38 = vld [vmem:[%s9551_s9 + $0x98] sm:$0xff]   ;;  %s7800_s23 = smul.u32 (!%p7478_p8), 192, %s12223_s24 }
 0x2d3   : > { %8752 = vmatpush3.bf16.msra.mxu0 %v9315_v27  ;;  %v9306_v4 = vld [vmem:[%s9551_s9 + $0x48] sm:$0xff]   ;;  %v7529_v13 = vcombine.low %v5036_v23, %v11495_v41  ;;  %v9321_v56 = vld [vmem:[%s9551_s9 + $0xa0] sm:$0xff]   ;;  %v11514_v8 = vld [vmem:[%s9567_s11 + $0x94] sm:$0xff]  }
 0x2d4   : > { %8753 = vmatprep.subr.bf16.mxu0 %v9445_v63  ;;  %v11504_v46 = vld [vmem:[%s9567_s11 + $0x8c] sm:$0xff]   ;;  %v9307_v10 = vld [vmem:[%s9551_s9 + $0x40] sm:$0xff]   ;;  %v9311_v40 = vld [vmem:[%s9551_s9 + $0x38] sm:$0xff]   ;;  %v5081_v49 = vrot.slane %v11514_v8, 3  ;;  %v5233_v1 = vshrl.u32 %v11514_v8, 16  ;;  %v5236_v29 = vshll.u32 %v11514_v8, 16 }
 0x2d5   : > { %8682 = vmatpush3.bf16.msra.mxu1 %v9301_v19  ;;  %v5078_v11 = vrot.slane %v7529_v13, 3  ;;  %v5079_v15 = vrot.slane %v11504_v46, 3  ;;  %v9326_v58 = vld [vmem:[%s9551_s9 + $0x90] sm:$0xff]   ;;  %v5405_v53 = vshrl.u32 %v7529_v13, 16  ;;  %v5408_v57 = vshll.u32 %v7529_v13, 16  ;;  %v11527_v37 = vld [vmem:[%s9567_s11 + $0x9c] sm:$0xff]   ;;  %vm12179_vm1 = vmmov %vm12178_vm0 }
 0x2d6   : > { %8683 = vmatprep.subr.bf16.mxu1 %v9445_v63  ;;  %v9312_v52 = vld [vmem:[%s9551_s9 + $0x30] sm:$0xff]   ;;  %v5224_v24 = vshrl.u32 %v11504_v46, 16  ;;  %v5227_v51 = vshll.u32 %v11504_v46, 16  ;;  %v9327_v12 = vld [vmem:[%s9551_s9 + $0x88] sm:$0xff]   ;;  %v5083_v9 = vrot.slane %v11527_v37, 3  ;;  %v9318_v55 = vld [vmem:[%s9551_s9 + $0x20] sm:$0xff]  }
 0x2d7   : > { %8754 = vmatpush3.bf16.msra.mxu0 %v9316_v14  ;;  %v5080_v0 = vsel %vm12178_vm0, %v5078_v11, %v5079_v15  ;;  %v5407_v43 = vrot.slane %v5405_v53, 3  ;;  %v5410_v6 = vrot.slane %v5408_v57, 4  ;;  %v5082_v7 = vsel %vm12179_vm1, %v5079_v15, %v5081_v49  ;;  %v9314_v47 = vld [vmem:[%s9551_s9 + $0x28] sm:$0xff]   ;;  %v9329_v35 = vld [vmem:[%s9551_s9 + $0x80] sm:$0xff]   ;;  %v9333_v54 = vld [vmem:[%s9551_s9 + $0x138] sm:$0xff]   ;;  %s12015_s25 = scalar_lea.vmem (!%p7478_p8), [#allocation2], %s7800_s23 }
 0x2d8   : > { %8755 = vmatprep.subr.bf16.mxu0 %v9445_v63  ;;  %v5412_v30 = vrot.slane %v5224_v24, 3  ;;  %v5413_v5 = vrot.slane %v5227_v51, 4  ;;  %v5018_v26 = vld [vmem:[%s9567_s11 + $0xa4] sm:$0xf]  ;;  %v5019_v20 = vld [vmem:[%s9567_s11 + $0xa8] sm:$0x7]  ;;  %vm12181_vm3 = vmmov %vm12178_vm0 }
 0x2d9   : > { %8684 = vmatpush3.bf16.msra.mxu1 %v9302_v31  ;;  %v5411_v39 = vor.u32 %v5410_v6, %v5407_v43  ;;  %v5416_v2 = vrot.slane %v5233_v1, 3  ;;  %v5417_v25 = vrot.slane %v5236_v29, 4  ;;  %v5084_v61 = vsel %vm12181_vm3, %v5081_v49, %v5083_v9  ;;  %v9320_v36 = vld [vmem:[%s9551_s9 + $0x18] sm:$0xff]   ;;  %v9334_v48 = vld [vmem:[%s9551_s9 + $0x130] sm:$0xff]   ;;  %v5384_v60 = vld [vmem:[%s9567_s11 + $0xa8] sm:$0xf] }
 0x2da   : > { %8685 = vmatprep.subr.bf16.mxu1 %v9445_v63  ;;  %v5414_v3 = vor.u32 %v5413_v5, %v5412_v30  ;;  %v11561_v50 = vcombine.low %v5018_v26, %v5019_v20  ;;  %v5242_v22 = vshrl.u32 %v11527_v37, 16  ;;  %v5010_v32 = vld [vmem:[%s9567_s11 + $0x84] sm:$0xc]  ;;  %v9323_v44 = vld [vmem:[%s9551_s9 + $0x10] sm:$0xff]   ;;  %v5245_v42 = vshll.u32 %v11527_v37, 16  ;;  %vm12182_vm4 = vmmov %vm12180_vm2 }
 0x2db   : > { %8756 = vmatpush3.bf16.msra.mxu0 %v9319_v18  ;;  %v5418_v28 = vor.u32 %v5417_v25, %v5416_v2  ;;  %v9336_v19 = vld [vmem:[%s9551_s9 + $0x128] sm:$0xff]   ;;  %v7567_v31 = vcombine.low %v5018_v26, %v5384_v60  ;;  %vm12183_vm5 = vmmov %vm12178_vm0  ;;  %v9338_v14 = vld [vmem:[%s9551_s9 + $0x120] sm:$0xff]   ;;  %v5235_v43 = vrot.slane %v5233_v1, 2  ;;  %v5238_v6 = vrot.slane %v5236_v29, 3 }
 0x2dc   : > { %8757 = vmatprep.subr.bf16.mxu0 %v9445_v63  ;;  %v5415_v34 = vsel %vm12180_vm2, %v5411_v39, %v5414_v3  ;;  %v5085_v21 = vrot.slane %v11561_v50, 3  ;;  %v5420_v33 = vrot.slane %v5242_v22, 3  ;;  %v5421_v62 = vrot.slane %v5245_v42, 4  ;;  %v9325_v27 = vld [vmem:[%s9551_s9 + $0x8] sm:$0xff]   ;;  %vm12184_vm13 = vmmov %vm12180_vm2  ;;  %v9343_v57 = vld [vmem:[%s9551_s9 + $0x110] sm:$0xff]  }
 0x2dd   : > { %8686 = vmatpush3.bf16.msra.mxu1 %v9303_v45  ;;  %v5419_v16 = vsel %vm12182_vm4, %v5414_v3, %v5418_v28  ;;  %v7542_v45 = vcombine.low %v5010_v32, %v11495_v41  ;;  %v5425_v23 = vshrl.u32 %v7567_v31, 16  ;;  %v5428_v18 = vshll.u32 %v7567_v31, 16  ;;  %v9328_v41 = vld [vmem:[%s9551_s9] sm:$0xff]   ;;  %vm12185_vm7 = vmmov %vm12180_vm2  ;;  %v9331_v5 = vld [vmem:[%s9551_s9 + $0xf0] sm:$0xff]  }
 0x2de   : > { %8687 = vmatprep.subr.bf16.mxu1 %v9445_v63  ;;  %v9346_v30 = vld [vmem:[%s9551_s9 + $0x100] sm:$0xff]   ;;  %v9332_v8 = vld [vmem:[%s9551_s9 + $0xe8] sm:$0xff]   ;;  %vm12187_vm10 = vmmov %vm12186_vm9  ;;  %v5251_v39 = vshrl.u32 %v11561_v50, 16  ;;  %v5254_v3 = vshll.u32 %v11561_v50, 16 }
 0x2df   : > { %8758 = vmatpush3.bf16.msra.mxu0 %v9321_v56  ;;  %v5219_v13 = vshll.u32 %v7542_v45, 16  ;;  %v9341_v56 = vld [vmem:[%s9551_s9 + $0x118] sm:$0xff]   ;;  %v5427_v11 = vrot.slane %v5425_v23, 3  ;;  %v5430_v15 = vrot.slane %v5428_v18, 4  ;;  %v5568_v26 = vld [vmem:[%s9567_s11 + $0x90] sm:$0xf]  ;;  %vm12188_vm12 = vmmov %vm12186_vm9 }
 0x2e0   : > { %8759 = vmatprep.subr.bf16.mxu0 %v9445_v63  ;;  %v5569_v1 = vld [vmem:[%s9567_s11 + $0x94] sm:$0xf]  ;;  %v9355_v20 = vld [vmem:[%s9551_s9 + $0x1b8] sm:$0xff]   ;;  %v9360_v60 = vld [vmem:[%s9551_s9 + $0x1a8] sm:$0xff]  }
 0x2e1   : > { %8688 = vmatpush3.bf16.msra.mxu1 %v9304_v59  ;;  %v5086_v59 = vsel %vm12183_vm5, %v5083_v9, %v5085_v21  ;;  %v5431_v53 = vor.u32 %v5430_v15, %v5427_v11  ;;  %v5244_v9 = vrot.slane %v5242_v22, 2  ;;  %v7621_v29 = vcombine.low %v5568_v26, %v5569_v1  ;;  %v9337_v25 = vld [vmem:[%s9551_s9 + $0xd8] sm:$0xff]   ;;  %v9356_v50 = vld [vmem:[%s9551_s9 + $0x1b0] sm:$0xff]   ;;  %vm12189_vm11 = vmmov %vm12186_vm9 }
 0x2e2   : > { %8689 = vmatprep.subr.bf16.mxu1 %v9445_v63  ;;  %v5571_v22 = vld [vmem:[%s9567_s11 + $0x9c] sm:$0xf]  ;;  %v9342_v31 = vld [vmem:[%s9551_s9 + $0xc8] sm:$0xff]   ;;  %v9345_v18 = vld [vmem:[%s9551_s9 + $0xc0] sm:$0xff]  }
 0x2e3   : > { %8760 = vmatpush3.bf16.msra.mxu0 %v9324_v38  ;;  %v5572_v11 = vld [vmem:[%s9567_s11 + $0xa0] sm:$0xf]  ;;  %v5573_v15 = vld [vmem:[%s9567_s11 + $0xa4] sm:$0xf]  ;;  %vm12191_vm6 = vmmov %vm12190_vm14 }
 0x2e4   : > { %8761 = vmatprep.subr.bf16.mxu0 %v9445_v63  ;;  %vm12192_vm8 = vmmov %vm12191_vm6 }
 0x2e5   : > { %8690 = vmatpush3.bf16.msra.mxu1 %v9305_v17  ;;  %v5422_v17 = vor.u32 %v5421_v62, %v5420_v33  ;;  %v6184_v33 = vld [vmem:[%s9567_s11 + $0xbc] sm:$0x1]  ;;  %vm12193_vm0 = vmmov %vm12180_vm2  ;;  %vm12195_vm2 = vsmask.f32 7424 }
 0x2e6   : > { %8691 = vmatprep.subr.bf16.mxu1 %v9445_v63  ;;  %vm12194_vm1 = vmmov %vm12193_vm0 }
 0x2e7   : > { %8762 = vmatpush3.bf16.msra.mxu0 %v9326_v58  ;;  %v5229_v58 = vrot.slane %v5227_v51, 3  ;;  %v5432_v49 = vsel %vm12185_vm7, %v5422_v17, %v5431_v53  ;;  %vm12196_vm3 = vmmov %vm12193_vm0 }
 0x2e8   : > { %8763 = vmatprep.subr.bf16.mxu0 %v9445_v63  ;;  %vm12197_vm4 = vmmov %vm12195_vm2 }
 0x2e9   : > { %8692 = vmatpush3.bf16.msra.mxu1 %v9306_v4  ;;  %v5216_v4 = vshrl.u32 %v7542_v45, 16  ;;  %v11675_v45 = vld [vmem:[%s9567_s11 + $0xb0] sm:$0xff]   ;;  %vm12198_vm5 = vmmov %vm12193_vm0 }
 0x2ea   : > { %8693 = vmatprep.subr.bf16.mxu1 %v9445_v63  ;;  %v6424_v23 = vrot.slane %v11675_v45, 1  ;;  %vm12200_vm7 = vmmov %vm12195_vm2 }
 0x2eb   : > { %8764 = vmatpush3.bf16.msra.mxu0 %v9327_v12  ;;  %v5218_v38 = vrot.slane %v5216_v4, 2  ;;  %v9330_v12 = vld [vmem:[%s9551_s9 + $0xf8] sm:$0xff]  }
 0x2ec   : > { %8765 = vmatprep.subr.bf16.mxu0 %v9445_v63 }
 0x2ed   : > { %8694 = vmatpush3.bf16.msra.mxu1 %v9307_v10  ;;  %v5423_v10 = vsel %vm12184_vm13, %v5418_v28, %v5422_v17  ;;  %v5570_v28 = vld [vmem:[%s9567_s11 + $0x98] sm:$0xf]  ;;  %vm12199_vm13 = vmmov %vm12195_vm2 }
 0x2ee   : > { %8715 = vmatprep.subr.bf16.mxu1 %v9445_v63  ;;  %v7622_v32 = vcombine.low %v5570_v28, %v5571_v22  ;;  %v7593_v62 = vcombine.low %v5569_v1, %v5570_v28 }
 0x2ef   : > { %8766 = vmatpush3.bf16.msra.mxu0 %v9329_v35  ;;  %v9335_v35 = vld [vmem:[%s9551_s9 + $0xe0] sm:$0xff]  }
 0x2f0   : > { %8696 = vmatmul.mubr.bf16.vlgmr.msra.gmra.mxu1 %v5080_v0  ;;  %8823 = vmatprep.subr.bf16.mxu0 %v9445_v63  ;;  %v5221_v0 = vrot.slane %v5219_v13, 3  ;;  %v5627_v13 = vshrl.u32 %v7593_v62, 16 }
 0x2f1   : > { %8716 = vmatpush3.bf16.msra.mxu1 %v9311_v40  ;;  %8699 = vmatprep.mubr.msk.bf16.mxu1 %vm9446_vm15, %v9445_v63  ;;  %v5226_v40 = vrot.slane %v5224_v24, 2  ;;  %v9344_v24 = vld [vmem:[%s9551_s9 + $0x108] sm:$0xff]  }
 0x2f2   : > { %8717 = vmatprep.subr.bf16.mxu1 %v9445_v63  ;;  %8768 = vmatmul.mubr.bf16.vlgmr.msra.gmra.mxu0 %v5415_v34  ;;  %v5256_v34 = vrot.slane %v5254_v3, 3  ;;  %v9349_v3 = vld [vmem:[%s9551_s9 + $0x178] sm:$0xff]  }
 0x2f3   : > { %8771 = vmatprep.mubr.msk.bf16.mxu0 %vm9446_vm15, %v9445_v63  ;;  %8824 = vmatpush3.bf16.msra.mxu0 %v9333_v54  ;;  %v5230_v46 = vor.u32 %v5229_v58, %v5226_v40  ;;  %v5253_v54 = vrot.slane %v5251_v39, 2  ;;  %v7623_v40 = vcombine.low %v5572_v11, %v5573_v15  ;;  %v9366_v58 = vld [vmem:[%s9551_s9 + $0x198] sm:$0xff]  }
 0x2f4   : > { %8825 = vmatprep.subr.bf16.mxu0 %v9445_v63 }
 0x2f5   : > { %8718 = vmatpush3.bf16.msra.mxu1 %v9312_v52  ;;  %v5222_v52 = vor.u32 %v5221_v0, %v5218_v38 }
 0x2f6   : > { %8719 = vmatprep.subr.bf16.mxu1 %v9445_v63 }
 0x2f7   : > { %8826 = vmatpush3.bf16.msra.mxu0 %v9334_v48  ;;  %v5231_v51 = vsel %vm12186_vm9, %v5222_v52, %v5230_v46  ;;  %v5257_v48 = vor.u32 %v5256_v34, %v5253_v54  ;;  %vm12201_vm9 = vmmov %vm12195_vm2 }
 0x2f8   : > { %8700 = vmatmul.mubr.bf16.gmra.mxu1 %v5082_v7  ;;  %8827 = vmatprep.subr.bf16.mxu0 %v9445_v63  ;;  %v5239_v7 = vor.u32 %v5238_v6, %v5235_v43  ;;  %v11717_v43 = vld [vmem:[%s9567_s11 + $0x9c] sm:$0xf] }
 0x2f9   : > { %8720 = vmatpush3.bf16.msra.mxu1 %v9314_v47  ;;  %8703 = vmatprep.mubr.msk.bf16.mxu1 %vm9446_vm15, %v9445_v63 }
 0x2fa   : > { %8721 = vmatprep.subr.bf16.mxu1 %v9445_v63  ;;  %8772 = vmatmul.mubr.bf16.gmra.mxu0 %v5419_v16  ;;  %v5240_v47 = vsel %vm12187_vm10, %v5230_v46, %v5239_v7  ;;  %v5629_v46 = vrot.slane %v5627_v13, 3  ;;  %v11754_v13 = vld [vmem:[%s9551_s9 + $0x238] sm:$0xff]   ;;  %vm12202_vm10 = vmmov %vm12195_vm2 }
 0x2fb   : > { %8775 = vmatprep.mubr.msk.bf16.mxu0 %vm9446_vm15, %v9445_v63  ;;  %8828 = vmatpush3.bf16.msra.mxu0 %v9336_v19 }
 0x2fc   : > { %8829 = vmatprep.subr.bf16.mxu0 %v9445_v63 }
 0x2fd   : > { %8722 = vmatpush3.bf16.msra.mxu1 %v9318_v55  ;;  %v5247_v55 = vrot.slane %v5245_v42, 3  ;;  %v11668_v42 = vld [vmem:[%s9567_s11 + $0xb8] sm:$0xf] }
 0x2fe   : > { %8723 = vmatprep.subr.bf16.mxu1 %v9445_v63  ;;  %v11684_v17 = vcombine.low %v11668_v42, %v6184_v33 }
 0x2ff   : > { %8830 = vmatpush3.bf16.msra.mxu0 %v9338_v14  ;;  %v5248_v37 = vor.u32 %v5247_v55, %v5244_v9  ;;  %v9362_v14 = vld [vmem:[%s9551_s9 + $0x1a0] sm:$0xff]   ;;  %v9370_v55 = vld [vmem:[%s9551_s9 + $0x188] sm:$0xff]  }
 0x300   : > { %8704 = vmatmul.mubr.bf16.gmra.mxu1 %v5084_v61  ;;  %8831 = vmatprep.subr.bf16.mxu0 %v9445_v63  ;;  %v9340_v61 = vld [vmem:[%s9551_s9 + $0xd0] sm:$0xff]   ;;  %v6426_v0 = vrot.slane %v11684_v17, 1 }
 0x301   : > { %8724 = vmatpush3.bf16.msra.mxu1 %v9320_v36  ;;  %8707 = vmatprep.mubr.msk.bf16.mxu1 %vm9446_vm15, %v9445_v63  ;;  %v5249_v2 = vsel %vm12188_vm12, %v5239_v7, %v5248_v37  ;;  %v5567_v36 = vld [vmem:[%s9567_s11 + $0x8c] sm:$0x8]  ;;  %v5258_v19 = vsel %vm12189_vm11, %v5248_v37, %v5257_v48  ;;  %vm12203_vm12 = vsmask.f32 6400  ;;  %vm12204_vm11 = vmmov %vm12195_vm2 }
 0x302   : > { %8725 = vmatprep.subr.bf16.mxu1 %v9445_v63  ;;  %8776 = vmatmul.mubr.bf16.gmra.mxu0 %v5423_v10  ;;  %v7592_v16 = vcombine.low %v5567_v36, %v5568_v26  ;;  %v5630_v10 = vshll.u32 %v7593_v62, 16 }
 0x303   : > { %8779 = vmatprep.mubr.msk.bf16.mxu0 %vm9446_vm15, %v9445_v63  ;;  %8832 = vmatpush3.bf16.msra.mxu0 %v9341_v56 }
 0x304   : > { %8833 = vmatprep.subr.bf16.mxu0 %v9445_v63  ;;  %v5622_v4 = vshll.u32 %v7592_v16, 16 }
 0x305   : > { %8726 = vmatpush3.bf16.msra.mxu1 %v9323_v44  ;;  %v11665_v44 = vld [vmem:[%s9567_s11 + $0xa8] sm:$0xff]  }
 0x306   : > { %8727 = vmatprep.subr.bf16.mxu1 %v9445_v63  ;;  %v5624_v52 = vrot.slane %v5622_v4, 4  ;;  %v6242_v4 = vshll.u32 %v11665_v44, 16 }
 0x307   : > { %8834 = vmatpush3.bf16.msra.mxu0 %v9343_v57 }
 0x308   : > { %8708 = vmatmul.mubr.bf16.gmra.mxu1 %v5086_v59  ;;  %8835 = vmatprep.subr.bf16.mxu0 %v9445_v63 }
 0x309   : > { %8711 = vmatprep.mubr.msk.bf16.mxu1 %vm9446_vm15, %v9445_v63  ;;  %8728 = vmatpush3.bf16.msra.mxu1 %v9325_v27  ;;  %v6422_v27 = vrot.slane %v11665_v44, 1 }
 0x30a   : > { %8729 = vmatprep.subr.bf16.mxu1 %v9445_v63  ;;  %8780 = vmatmul.mubr.bf16.gmra.mxu0 %v5432_v49  ;;  %v5632_v49 = vrot.slane %v5630_v10, 4 }
 0x30b   : > { %8783 = vmatprep.mubr.msk.bf16.mxu0 %vm9446_vm15, %v9445_v63  ;;  %8836 = vmatpush3.bf16.msra.mxu0 %v9344_v24  ;;  %v11699_v38 = vsel %vm12191_vm6, %v6422_v27, %v6424_v23  ;;  %v7594_v24 = vcombine.low %v5571_v22, %v5572_v11  ;;  %v9361_v11 = vld [vmem:[%s9551_s9 + $0x158] sm:$0xff]   ;;  %vm12206_vm6 = vmmov %vm12195_vm2 }
 0x30c   : > { %8837 = vmatprep.subr.bf16.mxu0 %v9445_v63 }
 0x30d   : > { %8730 = vmatpush3.bf16.msra.mxu1 %v9328_v41  ;;  %v5619_v41 = vshrl.u32 %v7592_v16, 16  ;;  %v5639_v7 = vshll.u32 %v7594_v24, 16 }
 0x30e   : > { %8787 = vmatprep.subr.bf16.mxu1 %v9445_v63 }
 0x30f   : > { %8838 = vmatpush3.bf16.msra.mxu0 %v9346_v30  ;;  %v5621_v57 = vrot.slane %v5619_v41, 3  ;;  %v5633_v30 = vor.u32 %v5632_v49, %v5629_v46  ;;  %v5641_v37 = vrot.slane %v5639_v7, 4  ;;  %v9365_v49 = vld [vmem:[%s9551_s9 + $0x150] sm:$0xff]  }
 0x310   : > { %8712 = vmatmul.mubr.bf16.gmra.mxu1 %v5085_v21  ;;  %8895 = vmatprep.subr.bf16.mxu0 %v9445_v63  ;;  %v11662_v21 = vld [vmem:[%s9567_s11 + $0xa0] sm:$0xff]   ;;  %v9373_v7 = vld [vmem:[%s9567_s11 + $0x90] sm:$0xff]  }
 0x311   : > { %8731 = vmatprep.mubr.msk.bf16.mxu1 %vm9446_vm15, %v9445_v63  ;;  %v6420_v59 = vrot.slane %v11662_v21, 1  ;;  %v5625_v6 = vor.u32 %v5624_v52, %v5621_v57  ;;  %v6238_v41 = vshrl.u32 %v11662_v21, 16  ;;  %v6244_v57 = vrot.slane %v6242_v4, 1  ;;  %v11767_v52 = vld [vmem:[%s9551_s9 + $0x230] sm:$0xff]  }
 0x312   : > { %8784 = vmatmul.mubr.bf16.gmra.mxu0 %v5431_v53  ;;  %v11707_v53 = vsel %vm12192_vm8, %v6424_v23, %v6426_v0  ;;  %vm12207_vm8 = vmmov %vm12203_vm12 }
 0x313   : > { %8839 = vmatprep.mubr.msk.bf16.mxu0 %vm9446_vm15, %v9445_v63  ;;  %v11692_v56 = vsel %vm12190_vm14, %v6420_v59, %v6422_v27  ;;  %v5634_v39 = vsel %vm12193_vm0, %v5625_v6, %v5633_v30  ;;  %v9358_v27 = vld [vmem:[%s9551_s9 + $0x160] sm:$0xff]   ;;  %v11779_v6 = vld [vmem:[%s9551_s9 + $0x228] sm:$0xff]   ;;  %vm12205_vm14 = vmmov %vm12203_vm12 }
 0x314   : > { %vm12208_vm0 = vmmov %vm12207_vm8 }
 0x318   : > { %8732 = vmatmul.mubr.bf16.vlgmr.msra.gmra.mxu1 %v5231_v51  ;;  %v9368_v51 = vld [vmem:[%s9551_s9 + $0x190] sm:$0xff]  }
 0x319   : > { %8788 = vmatpush3.bf16.msra.mxu1 %v9330_v12  ;;  %8735 = vmatprep.mubr.msk.bf16.mxu1 %vm9446_vm15, %v9445_v63  ;;  %v6175_v12 = vld [vmem:[%s9567_s11 + $0x98] sm:$0xf] }
 0x31a   : > { %8789 = vmatprep.subr.bf16.mxu1 %v9445_v63  ;;  %8840 = vmatmul.mubr.bf16.vlgmr.msra.gmra.mxu0 %v7621_v29  ;;  %v9372_v29 = vld [vmem:[%s9551_s9 + $0x180] sm:$0xff]  }
 0x31b   : > { %8843 = vmatprep.mubr.msk.bf16.mxu0 %vm9446_vm15, %v9445_v63  ;;  %8896 = vmatpush3.bf16.msra.mxu0 %v9355_v20 }
 0x31c   : > { %8897 = vmatprep.subr.bf16.mxu0 %v9445_v63 }
 0x31d   : > { %8790 = vmatpush3.bf16.msra.mxu1 %v9331_v5  ;;  %v5636_v5 = vshrl.u32 %v7594_v24, 16 }
 0x31e   : > { %8791 = vmatprep.subr.bf16.mxu1 %v9445_v63 }
 0x31f   : > { %8898 = vmatpush3.bf16.msra.mxu0 %v9356_v50  ;;  %v5638_v26 = vrot.slane %v5636_v5, 3  ;;  %v9367_v5 = vld [vmem:[%s9551_s9 + $0x148] sm:$0xff]  }
 0x320   : > { %8736 = vmatmul.mubr.bf16.gmra.mxu1 %v5240_v47  ;;  %8899 = vmatprep.subr.bf16.mxu0 %v9445_v63  ;;  %v5575_v47 = vld [vmem:[%s9567_s11 + $0xac] sm:$0xf] }
 0x321   : > { %8792 = vmatpush3.bf16.msra.mxu1 %v9332_v8  ;;  %8739 = vmatprep.mubr.msk.bf16.mxu1 %vm9446_vm15, %v9445_v63  ;;  %v5574_v8 = vld [vmem:[%s9567_s11 + $0xa8] sm:$0xf] }
 0x322   : > { %8793 = vmatprep.subr.bf16.mxu1 %v9445_v63  ;;  %8844 = vmatmul.mubr.bf16.gmra.mxu0 %v7622_v32  ;;  %v7624_v9 = vcombine.low %v5574_v8, %v5575_v47  ;;  %v7595_v1 = vcombine.low %v5573_v15, %v5574_v8 }
 0x323   : > { %8847 = vmatprep.mubr.msk.bf16.mxu0 %vm9446_vm15, %v9445_v63  ;;  %8900 = vmatpush3.bf16.msra.mxu0 %v9360_v60  ;;  %v9354_v60 = vld [vmem:[%s9551_s9 + $0x168] sm:$0xff]  }
 0x324   : > { %8901 = vmatprep.subr.bf16.mxu0 %v9445_v63  ;;  %v5645_v54 = vshrl.u32 %v7595_v1, 16  ;;  %v5648_v34 = vshll.u32 %v7595_v1, 16  ;;  %v11807_v1 = vld [vmem:[%s9551_s9 + $0x218] sm:$0xff]  }
 0x325   : > { %8794 = vmatpush3.bf16.msra.mxu1 %v9335_v35  ;;  %v7679_v35 = vcombine.low %v6175_v12, %v11717_v43  ;;  %v6250_v12 = vshll.u32 %v11675_v45, 16 }
 0x326   : > { %8795 = vmatprep.subr.bf16.mxu1 %v9445_v63  ;;  %v5647_v32 = vrot.slane %v5645_v54, 3  ;;  %v5650_v33 = vrot.slane %v5648_v34, 4  ;;  %v11817_v34 = vld [vmem:[%s9551_s9 + $0x210] sm:$0xff]  }
 0x327   : > { %8902 = vmatpush3.bf16.msra.mxu0 %v9362_v14  ;;  %v6229_v20 = vshll.u32 %v7679_v35, 16  ;;  %v6227_v50 = vshrl.u32 %v7679_v35, 16  ;;  %v9374_v35 = vld [vmem:[%s9567_s11 + $0x98] sm:$0xff]  }
 0x328   : > { %8740 = vmatmul.mubr.bf16.gmra.mxu1 %v5249_v2  ;;  %8903 = vmatprep.subr.bf16.mxu0 %v9445_v63  ;;  %v9351_v2 = vld [vmem:[%s9551_s9 + $0x170] sm:$0xff]  }
 0x329   : > { %8796 = vmatpush3.bf16.msra.mxu1 %v9337_v25  ;;  %8743 = vmatprep.mubr.msk.bf16.mxu1 %vm9446_vm15, %v9445_v63  ;;  %v5642_v25 = vor.u32 %v5641_v37, %v5638_v26  ;;  %v6231_v28 = vrot.slane %v6229_v20, 1  ;;  %v6254_v26 = vshrl.u32 %v11675_v45, 16  ;;  %v6258_v37 = vshll.u32 %v11684_v17, 16 }
 0x32a   : > { %8797 = vmatprep.subr.bf16.mxu1 %v9445_v63  ;;  %8848 = vmatmul.mubr.bf16.gmra.mxu0 %v7623_v40 }
 0x32b   : > { %8851 = vmatprep.mubr.msk.bf16.mxu0 %vm9446_vm15, %v9445_v63  ;;  %8904 = vmatpush3.bf16.msra.mxu0 %v9366_v58  ;;  %v5643_v22 = vsel %vm12194_vm1, %v5633_v30, %v5642_v25  ;;  %v6232_v62 = vor.u32 %v6231_v28, %v6227_v50  ;;  %v6260_v54 = vrot.slane %v6258_v37, 1  ;;  %v9379_v28 = vld [vmem:[%s9567_s11 + $0xa0] sm:$0xff]   ;;  %vm12209_vm1 = vcmask 1046528  }
 0x32c   : > { %8905 = vmatprep.subr.bf16.mxu0 %v9445_v63 }
 0x32d   : > { %8798 = vmatpush3.bf16.msra.mxu1 %v9340_v61  ;;  %v5576_v61 = vld [vmem:[%s9567_s11 + $0xb0] sm:$0xf] }
 0x32e   : > { %8799 = vmatprep.subr.bf16.mxu1 %v9445_v63  ;;  %v7625_v36 = vcombine.low %v5576_v61, %v5576_v61  ;;  %v7596_v16 = vcombine.low %v5575_v47, %v5576_v61  ;;  %v6252_v47 = vrot.slane %v6250_v12, 1  ;;  %v6399_v61 = vld [vmem:[%s9567_s11 + $0x98] sm:$0xe] }
 0x32f   : > { %8906 = vmatpush3.bf16.msra.mxu0 %v9368_v51  ;;  %v6246_v51 = vshrl.u32 %v11665_v44, 16 }
 0x330   : > { %8744 = vmatmul.mubr.bf16.gmra.mxu1 %v5258_v19  ;;  %8907 = vmatprep.subr.bf16.mxu0 %v9445_v63  ;;  %v5654_v14 = vshrl.u32 %v7596_v16, 16  ;;  %v5657_v23 = vshll.u32 %v7596_v16, 16  ;;  %v9375_v16 = vld [vmem:[%s9551_s9 + $0x1f8] sm:$0xff]  }
 0x331   : > { %8747 = vmatprep.mubr.msk.bf16.mxu1 %vm9446_vm15, %v9445_v63  ;;  %8800 = vmatpush3.bf16.msra.mxu1 %v9342_v31  ;;  %v5651_v31 = vor.u32 %v5650_v33, %v5647_v32  ;;  %v6248_v8 = vor.u32 %v6246_v51, %v6244_v57  ;;  %v11830_v32 = vcombine.low %v6399_v61, %v11717_v43 }
 0x332   : > { %8801 = vmatprep.subr.bf16.mxu1 %v9445_v63  ;;  %8852 = vmatmul.mubr.bf16.gmra.mxu0 %v7624_v9  ;;  %v5656_v15 = vrot.slane %v5654_v14, 3  ;;  %v5659_v40 = vrot.slane %v5657_v23, 4  ;;  %v11794_v9 = vld [vmem:[%s9551_s9 + $0x220] sm:$0xff]   ;;  %v9378_v23 = vld [vmem:[%s9551_s9 + $0x1f0] sm:$0xff]  }
 0x333   : > { %8855 = vmatprep.mubr.msk.bf16.mxu0 %vm9446_vm15, %v9445_v63  ;;  %8908 = vmatpush3.bf16.msra.mxu0 %v9370_v55  ;;  %v5652_v10 = vsel %vm12196_vm3, %v5642_v25, %v5651_v31  ;;  %v9371_v55 = vld [vmem:[%s9551_s9 + $0x140] sm:$0xff]   ;;  %v6256_v25 = vor.u32 %v6254_v26, %v6252_v47  ;;  %v6583_v43 = vshrl.u32 %v11830_v32, 16  ;;  %v6586_v14 = vshll.u32 %v11830_v32, 16 }
 0x334   : > { %8909 = vmatprep.subr.bf16.mxu0 %v9445_v63  ;;  %v5660_v46 = vor.u32 %v5659_v40, %v5656_v15  ;;  %v6590_v40 = vrot.slane %v6238_v41, 1 }
 0x335   : > { %8802 = vmatpush3.bf16.msra.mxu1 %v9345_v18 }
 0x336   : > { %8859 = vmatprep.subr.bf16.mxu1 %v9445_v63  ;;  %v5661_v30 = vsel %vm12198_vm5, %v5651_v31, %v5660_v46  ;;  %v6262_v31 = vshrl.u32 %v11684_v17, 16 }
 0x337   : > { %8910 = vmatpush3.bf16.msra.mxu0 %v9372_v29  ;;  %v6003_v29 = vshrl.u32 %v9373_v7, 16 }
 0x338   : > { %8748 = vmatmul.mubr.bf16.gmra.mxu1 %v5257_v48  ;;  %v6234_v48 = vshll.u32 %v11662_v21, 16  ;;  %8967 = vmatprep.subr.bf16.mxu0 %v9445_v63  ;;  %v6264_v15 = vor.u32 %v6262_v31, %v6260_v54 }
 0x339   : > { %8803 = vmatprep.mubr.msk.bf16.mxu1 %vm9446_vm15, %v9445_v63 }
 0x33a   : > { %8856 = vmatmul.mubr.bf16.gmra.mxu0 %v7625_v36  ;;  %v6236_v19 = vrot.slane %v6234_v48, 1 }
 0x33b   : > { %8911 = vmatprep.mubr.msk.bf16.mxu0 %vm9446_vm15, %v9445_v63 }
 0x33c   : > { %v6237_v18 = vsel %vm12195_vm2, %v6232_v62, %v6236_v19  ;;  %v6240_v58 = vor.u32 %v6238_v41, %v6236_v19  ;;  %v6014_v62 = vshrl.u32 %v9374_v35, 16  ;;  %v6018_v19 = vshll.u32 %v9379_v28, 16 }
 0x33e   : > { %v6245_v24 = vsel %vm12197_vm4, %v6240_v58, %v6244_v57  ;;  %v6585_v58 = vrot.slane %v6583_v43, 1  ;;  %v6588_v57 = vrot.slane %v6586_v14, 2 }
 0x340   : > { %8804 = vmatmul.mubr.bf16.vlgmr.msra.gmra.mxu1 %v5634_v39  ;;  %v6005_v39 = vshll.u32 %v9373_v7, 16  ;;  %v6589_v41 = vor.u32 %v6588_v57, %v6585_v58 }
 0x341   : > { %8860 = vmatpush3.bf16.msra.mxu1 %v9349_v3  ;;  %8807 = vmatprep.mubr.msk.bf16.mxu1 %vm9446_vm15, %v9445_v63  ;;  %v6253_v3 = vsel %vm12199_vm13, %v6248_v8, %v6252_v47  ;;  %v9385_v47 = vld [vmem:[%s9551_s9 + $0x1e0] sm:$0xff]  }
 0x342   : > { %8861 = vmatprep.subr.bf16.mxu1 %v9445_v63  ;;  %8912 = vmatmul.mubr.bf16.vlgmr.msra.gmra.mxu0 %v6237_v18  ;;  %v6007_v20 = vrot.slane %v6005_v39, 1  ;;  %v6594_v39 = vrot.slane %v6246_v51, 1  ;;  %v6562_v51 = vld [vmem:[%s9567_s11 + $0xbc] sm:$0x3] }
 0x343   : > { %8915 = vmatprep.mubr.msk.bf16.mxu0 %vm9446_vm15, %v9445_v63  ;;  %8968 = vmatpush3.bf16.msra.mxu0 %v11754_v13 }
 0x344   : > { %8969 = vmatprep.subr.bf16.mxu0 %v9445_v63  ;;  %v6008_v36 = vor.u32 %v6007_v20, %v6003_v29  ;;  %v9388_v29 = vld [vmem:[%s9551_s9 + $0x1d8] sm:$0xff]  }
 0x345   : > { %8862 = vmatpush3.bf16.msra.mxu1 %v9351_v2  ;;  %v6010_v2 = vshll.u32 %v9374_v35, 16 }
 0x346   : > { %8863 = vmatprep.subr.bf16.mxu1 %v9445_v63 }
 0x347   : > { %8970 = vmatpush3.bf16.msra.mxu0 %v11767_v52  ;;  %v6012_v50 = vrot.slane %v6010_v2, 1 }
 0x348   : > { %8808 = vmatmul.mubr.bf16.gmra.mxu1 %v5643_v22  ;;  %8971 = vmatprep.subr.bf16.mxu0 %v9445_v63  ;;  %v6261_v22 = vsel %vm12200_vm7, %v6256_v25, %v6260_v54  ;;  %v9392_v54 = vld [vmem:[%s9551_s9 + $0x1d0] sm:$0xff]  }
 0x349   : > { %8864 = vmatpush3.bf16.msra.mxu1 %v9354_v60  ;;  %8811 = vmatprep.mubr.msk.bf16.mxu1 %vm9446_vm15, %v9445_v63  ;;  %v11827_v60 = vld [vmem:[%s9551_s9 + $0x208] sm:$0xff]   ;;  %v6013_v33 = vsel %vm12201_vm9, %v6008_v36, %v6012_v50  ;;  %v6016_v18 = vor.u32 %v6014_v62, %v6012_v50  ;;  %v6598_v36 = vrot.slane %v6254_v26, 1  ;;  %v6599_v50 = vrot.slane %v6250_v12, 2 }
 0x34a   : > { %8865 = vmatprep.subr.bf16.mxu1 %v9445_v63  ;;  %8916 = vmatmul.mubr.bf16.gmra.mxu0 %v6245_v24  ;;  %v9381_v24 = vld [vmem:[%s9551_s9 + $0x1e8] sm:$0xff]  }
 0x34b   : > { %8919 = vmatprep.mubr.msk.bf16.mxu0 %vm9446_vm15, %v9445_v63  ;;  %8972 = vmatpush3.bf16.msra.mxu0 %v11779_v6 }
 0x34c   : > { %8973 = vmatprep.subr.bf16.mxu0 %v9445_v63 }
 0x34d   : > { %8866 = vmatpush3.bf16.msra.mxu1 %v9358_v27  ;;  %v11840_v27 = vld [vmem:[%s9551_s9 + $0x200] sm:$0xff]  }
 0x34e   : > { %8867 = vmatprep.subr.bf16.mxu1 %v9445_v63 }
 0x34f   : > { %8974 = vmatpush3.bf16.msra.mxu0 %v11794_v9 }
 0x350   : > { %8812 = vmatmul.mubr.bf16.gmra.mxu1 %v5652_v10  ;;  %8975 = vmatprep.subr.bf16.mxu0 %v9445_v63  ;;  %v6020_v10 = vrot.slane %v6018_v19, 1 }
 0x351   : > { %8868 = vmatpush3.bf16.msra.mxu1 %v9361_v11  ;;  %8815 = vmatprep.mubr.msk.bf16.mxu1 %vm9446_vm15, %v9445_v63  ;;  %v9384_v11 = vld [vmem:[%s9567_s11 + $0xa8] sm:$0xff]  }
 0x352   : > { %8869 = vmatprep.subr.bf16.mxu1 %v9445_v63  ;;  %8920 = vmatmul.mubr.bf16.gmra.mxu0 %v6253_v3  ;;  %v6595_v3 = vrot.slane %v6242_v4, 2  ;;  %v6030_v20 = vshrl.u32 %v9384_v11, 16 }
 0x353   : > { %8923 = vmatprep.mubr.msk.bf16.mxu0 %vm9446_vm15, %v9445_v63  ;;  %8976 = vmatpush3.bf16.msra.mxu0 %v11807_v1 }
 0x354   : > { %8977 = vmatprep.subr.bf16.mxu0 %v9445_v63  ;;  %v6596_v25 = vor.u32 %v6595_v3, %v6594_v39 }
 0x355   : > { %8870 = vmatpush3.bf16.msra.mxu1 %v9365_v49  ;;  %v6021_v49 = vsel %vm12202_vm10, %v6016_v18, %v6020_v10 }
 0x356   : > { %8871 = vmatprep.subr.bf16.mxu1 %v9445_v63 }
 0x357   : > { %8978 = vmatpush3.bf16.msra.mxu0 %v11817_v34 }
 0x358   : > { %8816 = vmatmul.mubr.bf16.gmra.mxu1 %v5661_v30  ;;  %8979 = vmatprep.subr.bf16.mxu0 %v9445_v63  ;;  %v6022_v30 = vshrl.u32 %v9379_v28, 16  ;;  %v7733_v28 = vcombine.low %v11668_v42, %v6562_v51  ;;  %v9397_v42 = vld [vmem:[%s9551_s9 + $0x1c0] sm:$0xff]  }
 0x359   : > { %8819 = vmatprep.mubr.msk.bf16.mxu1 %vm9446_vm15, %v9445_v63  ;;  %8872 = vmatpush3.bf16.msra.mxu1 %v9367_v5  ;;  %v6026_v5 = vshll.u32 %v9384_v11, 16 }
 0x35a   : > { %8873 = vmatprep.subr.bf16.mxu1 %v9445_v63  ;;  %8924 = vmatmul.mubr.bf16.gmra.mxu0 %v6261_v22  ;;  %v6603_v62 = vshrl.u32 %v7733_v28, 16  ;;  %v6606_v19 = vshll.u32 %v7733_v28, 16 }
 0x35b   : > { %8927 = vmatprep.mubr.msk.bf16.mxu0 %vm9446_vm15, %v9445_v63  ;;  %8980 = vmatpush3.bf16.msra.mxu0 %v11827_v60  ;;  %v6028_v8 = vrot.slane %v6026_v5, 1 }
 0x35c   : > { %8981 = vmatprep.subr.bf16.mxu0 %v9445_v63  ;;  %v6605_v12 = vrot.slane %v6603_v62, 1  ;;  %v6608_v31 = vrot.slane %v6606_v19, 2 }
 0x35d   : > { %8874 = vmatpush3.bf16.msra.mxu1 %v9371_v55  ;;  %v9390_v55 = vld [vmem:[%s9567_s11 + $0xb0] sm:$0x1f]   ;;  %v6032_v44 = vor.u32 %v6030_v20, %v6028_v8 }
 0x35e   : > { %8931 = vmatprep.subr.bf16.mxu1 %v9445_v63  ;;  %v6034_v2 = vshll.u32 %v9390_v55, 16  ;;  %v6038_v26 = vshrl.u32 %v9390_v55, 16  ;;  %v6609_v14 = vor.u32 %v6608_v31, %v6605_v12 }
 0x35f   : > { %8982 = vmatpush3.bf16.msra.mxu0 %v11840_v27 }
 0x360   : > { %8820 = vmatmul.mubr.bf16.gmra.mxu1 %v5660_v46  ;;  %v6591_v46 = vrot.slane %v6234_v48, 2  ;;  %v6024_v48 = vor.u32 %v6022_v30, %v6020_v10  ;;  %v6036_v4 = vrot.slane %v6034_v2, 1 }
 0x361   : > { %8875 = vmatprep.mubr.msk.bf16.mxu1 %vm9446_vm15, %v9445_v63 }
 0x362   : > { %8928 = vmatmul.mubr.bf16.gmra.mxu0 %v6264_v15  ;;  %v6592_v7 = vor.u32 %v6591_v46, %v6590_v40  ;;  %v6029_v37 = vsel %vm12204_vm11, %v6024_v48, %v6028_v8  ;;  %v6037_v22 = vsel %vm12206_vm6, %v6032_v44, %v6036_v4  ;;  %v6040_v43 = vor.u32 %v6038_v26, %v6036_v4 }
 0x363   : > { %8983 = vmatprep.mubr.msk.bf16.mxu0 %vm9446_vm15, %v9445_v63 }
 0x364   : > { %v6593_v35 = vsel %vm12203_vm12, %v6589_v41, %v6592_v7  ;;  %v6597_v61 = vsel %vm12205_vm14, %v6592_v7, %v6596_v25 }
 0x368   : > { %8876 = vmatmul.mubr.bf16.vlgmr.msra.gmra.mxu1 %v6013_v33  ;;  %v9394_v33 = vld [vmem:[%s9551_s9 + $0x1c8] sm:$0xff]  }
 0x369   : > { %8932 = vmatpush3.bf16.msra.mxu1 %v9375_v16  ;;  %8879 = vmatprep.mubr.msk.bf16.mxu1 %vm9446_vm15, %v9445_v63  ;;  %v6600_v16 = vor.u32 %v6599_v50, %v6598_v36 }
 0x36a   : > { %8933 = vmatprep.subr.bf16.mxu1 %v9445_v63  ;;  %8984 = vmatmul.mubr.bf16.vlgmr.msra.gmra.mxu0 %v6593_v35 }
 0x36b   : > { %8987 = vmatprep.mubr.msk.bf16.mxu0 %vm9446_vm15, %v9445_v63  ;;  %v6601_v45 = vsel %vm12207_vm8, %v6596_v25, %v6600_v16  ;;  %v6610_v18 = vsel %vm12208_vm0, %v6600_v16, %v6609_v14 }
 0x36d   : > { %8934 = vmatpush3.bf16.msra.mxu1 %v9378_v23  ;;  %v6419_v23 = vrot.slane %v11830_v32, 1 }
 0x36e   : > { %8935 = vmatprep.subr.bf16.mxu1 %v9445_v63 }
 0x36f   : > { %v6421_v10 = vsel %vm12209_vm1, %v6419_v23, %v6420_v59 }
 0x370   : > { %8880 = vmatmul.mubr.bf16.gmra.mxu1 %v6021_v49 }
 0x371   : > { %8936 = vmatpush3.bf16.msra.mxu1 %v9381_v24  ;;  %8883 = vmatprep.mubr.msk.bf16.mxu1 %vm9446_vm15, %v9445_v63 }
 0x372   : > { %8937 = vmatprep.subr.bf16.mxu1 %v9445_v63  ;;  %8988 = vmatmul.mubr.bf16.gmra.mxu0 %v6597_v61 }
 0x373   : > { %8991 = vmatprep.mubr.msk.bf16.mxu0 %vm9446_vm15, %v9445_v63 }
 0x375   : > { %8938 = vmatpush3.bf16.msra.mxu1 %v9385_v47 }
 0x376   : > { %8939 = vmatprep.subr.bf16.mxu1 %v9445_v63 }
 0x378   : > { %8884 = vmatmul.mubr.bf16.gmra.mxu1 %v6029_v37 }
 0x379   : > { %8940 = vmatpush3.bf16.msra.mxu1 %v9388_v29  ;;  %8887 = vmatprep.mubr.msk.bf16.mxu1 %vm9446_vm15, %v9445_v63 }
 0x37a   : > { %8941 = vmatprep.subr.bf16.mxu1 %v9445_v63  ;;  %8992 = vmatmul.mubr.bf16.gmra.mxu0 %v6601_v45 }
 0x37b   : > { %8995 = vmatprep.mubr.msk.bf16.mxu0 %vm9446_vm15, %v9445_v63 }
 0x37d   : > { %8942 = vmatpush3.bf16.msra.mxu1 %v9392_v54 }
 0x37e   : > { %8943 = vmatprep.subr.bf16.mxu1 %v9445_v63 }
 0x380   : > { %8888 = vmatmul.mubr.bf16.gmra.mxu1 %v6037_v22 }
 0x381   : > { %8891 = vmatprep.mubr.msk.bf16.mxu1 %vm9446_vm15, %v9445_v63  ;;  %8944 = vmatpush3.bf16.msra.mxu1 %v9394_v33 }
 0x382   : > { %8945 = vmatprep.subr.bf16.mxu1 %v9445_v63  ;;  %8996 = vmatmul.mubr.bf16.gmra.mxu0 %v6610_v18 }
 0x385   : > { %8946 = vmatpush3.bf16.msra.mxu1 %v9397_v42 }
 0x386   : > { %9003 = vmatprep.subr.bf16.mxu1 %v9445_v63 }
 0x388   : > { %8892 = vmatmul.mubr.bf16.gmra.mxu1 %v6040_v43 }
 0x389   : > { %8947 = vmatprep.mubr.msk.bf16.mxu1 %vm9446_vm15, %v9445_v63 }
 0x390   : > { %8948 = vmatmul.mubr.bf16.vlgmr.msra.gmra.mxu1 %v6421_v10 }
 0x391   : > { %9011 = vmatpush3.bf16.msra.mxu1 %v11754_v13  ;;  %8951 = vmatprep.mubr.msk.bf16.mxu1 %vm9446_vm15, %v9445_v63 }
 0x392   : > { %9004 = vmatprep.subr.bf16.mxu1 %v9445_v63 }
 0x395   : > { %9012 = vmatpush3.bf16.msra.mxu1 %v11767_v52 }
 0x396   : > { %9005 = vmatprep.subr.bf16.mxu1 %v9445_v63 }
 0x398   : > { %8952 = vmatmul.mubr.bf16.gmra.mxu1 %v11692_v56 }
 0x399   : > { %9013 = vmatpush3.bf16.msra.mxu1 %v11779_v6  ;;  %8955 = vmatprep.mubr.msk.bf16.mxu1 %vm9446_vm15, %v9445_v63 }
 0x39a   : > { %9006 = vmatprep.subr.bf16.mxu1 %v9445_v63 }
 0x39d   : > { %9014 = vmatpush3.bf16.msra.mxu1 %v11794_v9 }
 0x39e   : > { %9007 = vmatprep.subr.bf16.mxu1 %v9445_v63 }
 0x3a0   : > { %8956 = vmatmul.mubr.bf16.gmra.mxu1 %v11699_v38 }
 0x3a1   : > { %9015 = vmatpush3.bf16.msra.mxu1 %v11807_v1  ;;  %8959 = vmatprep.mubr.msk.bf16.mxu1 %vm9446_vm15, %v9445_v63 }
 0x3a2   : > { %9008 = vmatprep.subr.bf16.mxu1 %v9445_v63 }
 0x3a5   : > { %9016 = vmatpush3.bf16.msra.mxu1 %v11817_v34 }
 0x3a6   : > { %9009 = vmatprep.subr.bf16.mxu1 %v9445_v63 }
 0x3a8   : > { %8960 = vmatmul.mubr.bf16.gmra.mxu1 %v11707_v53 }
 0x3a9   : > { %8963 = vmatprep.mubr.msk.bf16.mxu1 %vm9446_vm15, %v9445_v63  ;;  %9017 = vmatpush3.bf16.msra.mxu1 %v11827_v60 }
 0x3aa   : > { %9010 = vmatprep.subr.bf16.mxu1 %v9445_v63 }
 0x3ad   : > { %9018 = vmatpush3.bf16.msra.mxu1 %v11840_v27 }
 0x3b0   : > { %v5174_v21 = vpop.f32.mrf.mxu1  ;;  %8964 = vmatmul.mubr.bf16.gmra.mxu1 %v6426_v0 }
 0x3b1   : > { %8999 = vmatprep.mubr.msk.bf16.mxu1 %vm9446_vm15, %v9445_v63 }
 0x3b2   : > { %v8697_v59 = vpop.f32.mrf.mxu1  ;;  %v5520_v9 = vpop.f32.mrf.mxu0 }
 0x3b4   : > { %v5177_v56 = vpop.f32.mrf.mxu1  ;;  %v8769_v34 = vpop.f32.mrf.mxu0 }
 0x3b6   : > { %v8698_v38 = vpop.f32.mrf.mxu1  ;;  %v5523_v32 = vpop.f32.mrf.mxu0 }
 0x3b8   : > { %v5182_v53 = vpop.f32.mrf.mxu1  ;;  %9000 = vmatmul.mubr.bf16.vlgmr.msra.gmra.mxu1 %v6609_v14  ;;  %v8770_v11 = vpop.f32.mrf.mxu0 }
 0x3ba   : > { %v8701_v13 = vpop.f32.mrf.mxu1  ;;  %v5528_v0 = vpop.f32.mrf.mxu0 }
 0x3bc   : > { %v5185_v52 = vpop.f32.mrf.mxu1  ;;  %v8773_v40 = vpop.f32.mrf.mxu0 }
 0x3be   : > { %v8702_v6 = vpop.f32.mrf.mxu1  ;;  %v5531_v58 = vpop.f32.mrf.mxu0 }
 0x3c0   : > { %v5190_v1 = vpop.f32.mrf.mxu1  ;;  %v8774_v46 = vpop.f32.mrf.mxu0 }
 0x3c2   : > { %v8705_v60 = vpop.f32.mrf.mxu1  ;;  %v5536_v24 = vpop.f32.mrf.mxu0 }
 0x3c4   : > { %v5193_v27 = vpop.f32.mrf.mxu1  ;;  %v8777_v5 = vpop.f32.mrf.mxu0 }
 0x3c6   : > { %v8706_v17 = vpop.f32.mrf.mxu1  ;;  %v5539_v7 = vpop.f32.mrf.mxu0 }
 0x3c8   : > { %v5198_v15 = vpop.f32.mrf.mxu1  ;;  %v8778_v8 = vpop.f32.mrf.mxu0 }
 0x3ca   : > { %v8709_v63 = vpop.f32.mrf.mxu1  ;;  %v5544_v55 = vpop.f32.mrf.mxu0 }
 0x3cc   : > { %v5201_v57 = vpop.f32.mrf.mxu1  ;;  %v8781_v39 = vpop.f32.mrf.mxu0 }
 0x3ce   : > { %v8710_v49 = vpop.f32.mrf.mxu1  ;;  %v5547_v29 = vpop.f32.mrf.mxu0 }
 0x3d0   : > { %v5206_v30 = vpop.f32.mrf.mxu1  ;;  %v8782_v25 = vpop.f32.mrf.mxu0 }
 0x3d2   : > { %v8713_v41 = vpop.f32.mrf.mxu1  ;;  %v5552_v4 = vpop.f32.mrf.mxu0 }
 0x3d4   : > { %v5209_v48 = vpop.f32.mrf.mxu1  ;;  %v8785_v36 = vpop.f32.mrf.mxu0 }
 0x3d6   : > { %v8714_v47 = vpop.f32.mrf.mxu1  ;;  %v5555_v22 = vpop.f32.mrf.mxu0 }
 0x3d8   : > { %v5346_v35 = vpop.f32.mrf.mxu1  ;;  %v8786_v62 = vpop.f32.mrf.mxu0 }
 0x3d9   : > { %v5347_v3 = vadd.f32 %v5346_v35, %v5174_v21 }
 0x3da   : > { %v8733_v37 = vpop.f32.mrf.mxu1  ;;  %v5904_v42 = vpop.f32.mrf.mxu0 }
 0x3db   : > { %v5558_v20 = vadd.f32 %v5520_v9, %v5347_v3 }
 0x3dc   : > { %v5349_v2 = vpop.f32.mrf.mxu1  ;;  %v8841_v31 = vpop.f32.mrf.mxu0 }
 0x3dd   : > { %v5350_v51 = vadd.f32 %v5349_v2, %v5177_v56 }
 0x3de   : > { %v8734_v44 = vpop.f32.mrf.mxu1  ;;  %v5907_v23 = vpop.f32.mrf.mxu0 }
 0x3df   : > { %v5559_v54 = vadd.f32 %v5523_v32, %v5350_v51 }
 0x3e0   : > { %v5354_v61 = vpop.f32.mrf.mxu1  ;;  %v8842_v21 = vpop.f32.mrf.mxu0 }
 0x3e1   : > { %v5355_v50 = vadd.f32 %v5354_v61, %v5182_v53 }
 0x3e2   : > { %v8737_v28 = vpop.f32.mrf.mxu1  ;;  %v5912_v38 = vpop.f32.mrf.mxu0 }
 0x3e3   : > { %v5560_v33 = vadd.f32 %v5528_v0, %v5355_v50 }
 0x3e4   : > { %v5357_v16 = vpop.f32.mrf.mxu1  ;;  %v8845_v6 = vpop.f32.mrf.mxu0 }
 0x3e5   : > { %v5358_v19 = vadd.f32 %v5357_v16, %v5185_v52 }
 0x3e6   : > { %v8738_v26 = vpop.f32.mrf.mxu1  ;;  %v5915_v52 = vpop.f32.mrf.mxu0 }
 0x3e7   : > { %v5561_v45 = vadd.f32 %v5531_v58, %v5358_v19 }
 0x3e8   : > { %v5362_v12 = vpop.f32.mrf.mxu1  ;;  %v8846_v11 = vpop.f32.mrf.mxu0 }
 0x3e9   : > { %v5363_v43 = vadd.f32 %v5362_v12, %v5190_v1 }
 0x3ea   : > { %v8741_v14 = vpop.f32.mrf.mxu1  ;;  %v5920_v1 = vpop.f32.mrf.mxu0 }
 0x3eb   : > { %v5562_v18 = vadd.f32 %v5536_v24, %v5363_v43 }
 0x3ec   : > { %v5365_v10 = vpop.f32.mrf.mxu1  ;;  %v8849_v58 = vpop.f32.mrf.mxu0 }
 0x3ed   : > { %v5366_v59 = vadd.f32 %v5365_v10, %v5193_v27 }
 0x3ee   : > { %v8742_v56 = vpop.f32.mrf.mxu1  ;;  %v5923_v27 = vpop.f32.mrf.mxu0 }
 0x3ef   : > { %v5563_v53 = vadd.f32 %v5539_v7, %v5366_v59 }
 0x3f0   : > { %v5370_v13 = vpop.f32.mrf.mxu1  ;;  %v8850_v41 = vpop.f32.mrf.mxu0 }
 0x3f1   : > { %v5371_v9 = vadd.f32 %v5370_v13, %v5198_v15 }
 0x3f2   : > { %v8745_v34 = vpop.f32.mrf.mxu1  ;;  %v5928_v48 = vpop.f32.mrf.mxu0 }
 0x3f3   : > { %v5564_v60 = vadd.f32 %v5544_v55, %v5371_v9 }
 0x3f4   : > { %v5373_v32 = vpop.f32.mrf.mxu1  ;;  %v8853_v8 = vpop.f32.mrf.mxu0 }
 0x3f5   : > { %v5374_v17 = vadd.f32 %v5373_v32, %v5201_v57 }
 0x3f6   : > { %v8746_v0 = vpop.f32.mrf.mxu1  ;;  %v5931_v35 = vpop.f32.mrf.mxu0 }
 0x3f7   : > { %v5565_v40 = vadd.f32 %v5547_v29, %v5374_v17 }
 0x3f8   : > { %v5378_v63 = vpop.f32.mrf.mxu1  ;;  %v8854_v3 = vpop.f32.mrf.mxu0 }
 0x3f9   : > { %v5379_v46 = vadd.f32 %v5378_v63, %v5206_v30 }
 0x3fa   : > { %v8749_v49 = vpop.f32.mrf.mxu1  ;;  %v5936_v2 = vpop.f32.mrf.mxu0 }
 0x3fb   : > { %v5566_v24 = vadd.f32 %v5552_v4, %v5379_v46 }
 0x3fc   : > { %v5381_v5 = vpop.f32.mrf.mxu1  ;;  %v8857_v51 = vpop.f32.mrf.mxu0 }
 0x3fe   : > { %v8750_v7 = vpop.f32.mrf.mxu1  ;;  %v5939_v61 = vpop.f32.mrf.mxu0 }
 0x400   : > { %v5749_v15 = vpop.f32.mrf.mxu1  ;;  %v8858_v28 = vpop.f32.mrf.mxu0 }
 0x401   : > { %v5787_v47 = vadd.f32 %v5749_v15, %v5558_v20 }
 0x402   : > { %v8805_v55 = vpop.f32.mrf.mxu1  ;;  %v6352_v20 = vpop.f32.mrf.mxu0 }
 0x403   : > { %v5942_v39 = vadd.f32 %v5904_v42, %v5787_v47 }
 0x404   : > { %v5752_v57 = vpop.f32.mrf.mxu1  ;;  %v8913_v26 = vpop.f32.mrf.mxu0 }
 0x405   : > { %v5788_v37 = vadd.f32 %v5752_v57, %v5559_v54 }
 0x406   : > { %v8806_v29 = vpop.f32.mrf.mxu1  ;;  %v6355_v54 = vpop.f32.mrf.mxu0 }
 0x407   : > { %v5943_v25 = vadd.f32 %v5907_v23, %v5788_v37 }
 0x408   : > { %v5757_v30 = vpop.f32.mrf.mxu1  ;;  %v8914_v14 = vpop.f32.mrf.mxu0 }
 0x409   : > { %v5789_v44 = vadd.f32 %v5757_v30, %v5560_v33 }
 0x40a   : > { %v8809_v4 = vpop.f32.mrf.mxu1  ;;  %v6360_v33 = vpop.f32.mrf.mxu0 }
 0x40b   : > { %v5944_v36 = vadd.f32 %v5912_v38, %v5789_v44 }
 0x40c   : > { %v5760_v50 = vpop.f32.mrf.mxu1  ;;  %v8917_v56 = vpop.f32.mrf.mxu0 }
 0x40d   : > { %v5790_v22 = vadd.f32 %v5760_v50, %v5561_v45 }
 0x40e   : > { %v8810_v16 = vpop.f32.mrf.mxu1  ;;  %v6363_v45 = vpop.f32.mrf.mxu0 }
 0x40f   : > { %v5945_v62 = vadd.f32 %v5915_v52, %v5790_v22 }
 0x410   : > { %v5765_v19 = vpop.f32.mrf.mxu1  ;;  %v8918_v34 = vpop.f32.mrf.mxu0 }
 0x411   : > { %v5791_v42 = vadd.f32 %v5765_v19, %v5562_v18 }
 0x412   : > { %v8813_v12 = vpop.f32.mrf.mxu1  ;;  %v6368_v18 = vpop.f32.mrf.mxu0 }
 0x413   : > { %v5946_v31 = vadd.f32 %v5920_v1, %v5791_v42 }
 0x414   : > { %v5768_v43 = vpop.f32.mrf.mxu1  ;;  %v8921_v0 = vpop.f32.mrf.mxu0 }
 0x415   : > { %v5792_v23 = vadd.f32 %v5768_v43, %v5563_v53 }
 0x416   : > { %v8814_v10 = vpop.f32.mrf.mxu1  ;;  %v6371_v53 = vpop.f32.mrf.mxu0 }
 0x417   : > { %v5947_v21 = vadd.f32 %v5923_v27, %v5792_v23 }
 0x418   : > { %v5773_v59 = vpop.f32.mrf.mxu1  ;;  %v8922_v49 = vpop.f32.mrf.mxu0 }
 0x419   : > { %v5793_v38 = vadd.f32 %v5773_v59, %v5564_v60 }
 0x41a   : > { %v8817_v13 = vpop.f32.mrf.mxu1  ;;  %v6376_v5 = vpop.f32.mrf.mxu0 }
 0x41b   : > { %v5948_v6 = vadd.f32 %v5928_v48, %v5793_v38 }
 0x41c   : > { %v5776_v9 = vpop.f32.mrf.mxu1  ;;  %v8925_v41 = vpop.f32.mrf.mxu0 }
 0x41d   : > { %v5794_v52 = vadd.f32 %v5776_v9, %v5565_v40 }
 0x41e   : > { %v8818_v32 = vpop.f32.mrf.mxu1  ;;  %v6379_v15 = vpop.f32.mrf.mxu0 }
 0x41f   : > { %v5949_v11 = vadd.f32 %v5931_v35, %v5794_v52 }
 0x420   : > { %v5781_v17 = vpop.f32.mrf.mxu1  ;;  %v8926_v47 = vpop.f32.mrf.mxu0 }
 0x421   : > { %v5795_v1 = vadd.f32 %v5781_v17, %v5566_v24 }
 0x422   : > { %v8821_v63 = vpop.f32.mrf.mxu1  ;;  %v6384_v57 = vpop.f32.mrf.mxu0 }
 0x423   : > { %v5950_v58 = vadd.f32 %v5936_v2, %v5795_v1 }
 0x424   : > { %v5784_v46 = vpop.f32.mrf.mxu1  ;;  %v8929_v37 = vpop.f32.mrf.mxu0 }
 0x426   : > { %v8822_v27 = vpop.f32.mrf.mxu1  ;;  %v6387_v30 = vpop.f32.mrf.mxu0 }
 0x428   : > { %v6128_v60 = vpop.f32.mrf.mxu1  ;;  %v8930_v4 = vpop.f32.mrf.mxu0 }
 0x429   : > { %v6166_v7 = vadd.f32 %v6128_v60, %v5942_v39  ;;  %v7742_v60 = vld [vmem:[%s10898_s20] ss:$0 sm:$0xff] }
 0x42a   : > { %v8877_v48 = vpop.f32.mrf.mxu1  ;;  %v6698_v39 = vpop.f32.mrf.mxu0 }
 0x42b   : > { %v6390_v8 = vadd.f32 %v6352_v20, %v6166_v7 }
 0x42c   : > { %v6131_v40 = vpop.f32.mrf.mxu1  ;;  %v8985_v16 = vpop.f32.mrf.mxu0 }
 0x42d   : > { %v6167_v55 = vadd.f32 %v6131_v40, %v5943_v25 }
 0x42e   : > { %v8878_v35 = vpop.f32.mrf.mxu1  ;;  %v6701_v25 = vpop.f32.mrf.mxu0 }
 0x42f   : > { %v6391_v3 = vadd.f32 %v6355_v54, %v6167_v55 }
 0x430   : > { %v6136_v24 = vpop.f32.mrf.mxu1  ;;  %v8986_v12 = vpop.f32.mrf.mxu0 }
 0x431   : > { %v6168_v29 = vadd.f32 %v6136_v24, %v5944_v36 }
 0x432   : > { %v8881_v2 = vpop.f32.mrf.mxu1  ;;  %v6706_v36 = vpop.f32.mrf.mxu0 }
 0x433   : > { %v6392_v51 = vadd.f32 %v6360_v33, %v6168_v29 }
 0x434   : > { %v6139_v44 = vpop.f32.mrf.mxu1  ;;  %v8989_v10 = vpop.f32.mrf.mxu0 }
 0x435   : > { %v6169_v61 = vadd.f32 %v6139_v44, %v5945_v62 }
 0x436   : > { %v8882_v50 = vpop.f32.mrf.mxu1  ;;  %v6709_v62 = vpop.f32.mrf.mxu0 }
 0x437   : > { %v6393_v28 = vadd.f32 %v6363_v45, %v6169_v61 }
 0x438   : > { %v6144_v22 = vpop.f32.mrf.mxu1  ;;  %v8990_v13 = vpop.f32.mrf.mxu0 }
 0x439   : > { %v6170_v20 = vadd.f32 %v6144_v22, %v5946_v31 }
 0x43a   : > { %v8885_v19 = vpop.f32.mrf.mxu1  ;;  %v6714_v31 = vpop.f32.mrf.mxu0 }
 0x43b   : > { %v6394_v26 = vadd.f32 %v6368_v18, %v6170_v20 }
 0x43c   : > { %v6147_v42 = vpop.f32.mrf.mxu1  ;;  %v8993_v32 = vpop.f32.mrf.mxu0 }
 0x43d   : > { %v6171_v54 = vadd.f32 %v6147_v42, %v5947_v21 }
 0x43e   : > { %v8886_v43 = vpop.f32.mrf.mxu1  ;;  %v6717_v17 = vpop.f32.mrf.mxu0 }
 0x43f   : > { %v6395_v14 = vadd.f32 %v6371_v53, %v6171_v54 }
 0x440   : > { %v6152_v23 = vpop.f32.mrf.mxu1  ;;  %v8994_v63 = vpop.f32.mrf.mxu0 }
 0x441   : > { %v6172_v33 = vadd.f32 %v6152_v23, %v5948_v6 }
 0x442   : > { %v8889_v59 = vpop.f32.mrf.mxu1  ;;  %v6722_v6 = vpop.f32.mrf.mxu0 }
 0x443   : > { %v6396_v56 = vadd.f32 %v6376_v5, %v6172_v33 }
 0x444   : > { %v6155_v38 = vpop.f32.mrf.mxu1  ;;  %v8997_v49 = vpop.f32.mrf.mxu0 }
 0x445   : > { %v6173_v45 = vadd.f32 %v6155_v38, %v5949_v11 }
 0x446   : > { %v8890_v9 = vpop.f32.mrf.mxu1  ;;  %v6725_v11 = vpop.f32.mrf.mxu0 }
 0x447   : > { %v6397_v34 = vadd.f32 %v6379_v15, %v6173_v45 }
 0x448   : > { %v6160_v52 = vpop.f32.mrf.mxu1  ;;  %v8998_v48 = vpop.f32.mrf.mxu0 }
 0x449   : > { %v6174_v18 = vadd.f32 %v6160_v52, %v5950_v58 }
 0x44a   : > { %v8893_v21 = vpop.f32.mrf.mxu1 }
 0x44b   : > { %v6398_v0 = vadd.f32 %v6384_v57, %v6174_v18 }
 0x44c   : > { %v6163_v1 = vpop.f32.mrf.mxu1 }
 0x44e   : > { %v8894_v53 = vpop.f32.mrf.mxu1 }
 0x450   : > { %v6515_v46 = vpop.f32.mrf.mxu1 }
 0x451   : > { %v6553_v27 = vadd.f32 %v6515_v46, %v6390_v8 }
 0x452   : > { %v8949_v5 = vpop.f32.mrf.mxu1 }
 0x453   : > { %v6736_v41 = vadd.f32 %v6698_v39, %v6553_v27 }
 0x454   : > { %v6518_v7 = vpop.f32.mrf.mxu1 }
 0x455   : > { %v11937_v15 = vadd.f32 %v7742_v60, %v6736_v41  ;;  %v6554_v40 = vadd.f32 %v6518_v7, %v6391_v3 }
 0x456   : > { %v8950_v58 = vpop.f32.mrf.mxu1 }
 0x457   : > { %v6737_v47 = vadd.f32 %v6701_v25, %v6554_v40 }
 0x458   : > { %v6523_v55 = vpop.f32.mrf.mxu1 }
 0x459   : > { %v11939_v35 = vadd.f32 %v7742_v60, %v6737_v47  ;;  %v6555_v57 = vadd.f32 %v6523_v55, %v6392_v51 }
 0x45a   : > { %v8953_v24 = vpop.f32.mrf.mxu1 }
 0x45b   : > { %v6738_v37 = vadd.f32 %v6706_v36, %v6555_v57 }
 0x45c   : > { %v6526_v29 = vpop.f32.mrf.mxu1 }
 0x45d   : > { %v11941_v2 = vadd.f32 %v7742_v60, %v6738_v37  ;;  %v6556_v8 = vadd.f32 %v6526_v29, %v6393_v28 }
 0x45e   : > { %v8954_v30 = vpop.f32.mrf.mxu1 }
 0x45f   : > { %v6739_v44 = vadd.f32 %v6709_v62, %v6556_v8 }
 0x460   : > { %v6531_v4 = vpop.f32.mrf.mxu1 }
 0x461   : > { %v11943_v61 = vadd.f32 %v7742_v60, %v6739_v44  ;;  %v6557_v50 = vadd.f32 %v6531_v4, %v6394_v26 }
 0x462   : > { %v8957_v39 = vpop.f32.mrf.mxu1 }
 0x463   : > { %v6740_v3 = vadd.f32 %v6714_v31, %v6557_v50 }
 0x464   : > { %v6534_v22 = vpop.f32.mrf.mxu1 }
 0x465   : > { %v11945_v16 = vadd.f32 %v7742_v60, %v6740_v3  ;;  %v6558_v20 = vadd.f32 %v6534_v22, %v6395_v14 }
 0x466   : > { %v8958_v19 = vpop.f32.mrf.mxu1 }
 0x467   : > { %v6741_v51 = vadd.f32 %v6717_v17, %v6558_v20 }
 0x468   : > { %v6539_v25 = vpop.f32.mrf.mxu1 }
 0x469   : > { %v11947_v42 = vadd.f32 %v7742_v60, %v6741_v51  ;;  %v6559_v12 = vadd.f32 %v6539_v25, %v6396_v56 }
 0x46a   : > { %v8961_v54 = vpop.f32.mrf.mxu1 }
 0x46b   : > { %v6742_v28 = vadd.f32 %v6722_v6, %v6559_v12 }
 0x46c   : > { %v6542_v43 = vpop.f32.mrf.mxu1 }
 0x46d   : > { %v11949_v36 = vadd.f32 %v7742_v60, %v6742_v28  ;;  %v6560_v23 = vadd.f32 %v6542_v43, %v6397_v34 }
 0x46e   : > { %v8962_v10 = vpop.f32.mrf.mxu1 }
 0x46f   : > { %v6743_v26 = vadd.f32 %v6725_v11, %v6560_v23 }
 0x470   : > { %v6547_v33 = vpop.f32.mrf.mxu1 }
 0x471   : > { %v11951_v59 = vadd.f32 %v7742_v60, %v6743_v26  ;;  %v6561_v13 = vadd.f32 %v6547_v33, %v6398_v0 }
 0x472   : > { %v8965_v62 = vpop.f32.mrf.mxu1 }
 0x474   : > { %v6550_v38 = vpop.f32.mrf.mxu1 }
 0x476   : > { %v8966_v14 = vpop.f32.mrf.mxu1 }
 0x478   : > { %v6730_v45 = vpop.f32.mrf.mxu1 }
 0x479   : > { %v6744_v9 = vadd.f32 %v6730_v45, %v6561_v13 }
 0x47a   : > { %v9001_v31 = vpop.f32.mrf.mxu1  ;;  %6763 = sbr.rel (%p7478_p8) target bundleno = 1185 (0x4a1), region = 78 }
 0x47b   : > { %v11953_v52 = vadd.f32 %v7742_v60, %v6744_v9 }
 0x47c   : > { %v6733_v56 = vpop.f32.mrf.mxu1 }
 0x47e   : > { %v9002_v32 = vpop.f32.mrf.mxu1 }
 0x47f   : > { %v6764_v34 = vlaneseq  ;;  %v6954_v18 = vmul.f32 0.2, %v11937_v15  ;;  %vm6945_vm15 = vcmp.gt.f32.partialorder %v11937_v15, 0.0  ;;  %vm6946_vm2 = vcmp.gt.f32.partialorder %v11939_v35, 0.0 }
 0x480   : > { %v6955_v17 = vmul.f32 0.2, %v11939_v35  ;;  %vm6947_vm3 = vcmp.gt.f32.partialorder %v11941_v2, 0.0  ;;  %vm6948_vm4 = vcmp.gt.f32.partialorder %v11943_v61, 0.0  ;;  %v6956_v0 = vmul.f32 0.2, %v11941_v2 }
 0x481   : > { %v6765_v21 = vshrl.u32 %v6764_v34, 7  ;;  %v11965_v46 = vsel %vm6945_vm15, %v11937_v15, %v6954_v18  ;;  %v6957_v49 = vmul.f32 0.2, %v11943_v61  ;;  %vm6949_vm5 = vcmp.gt.f32.partialorder %v11945_v16, 0.0 }
 0x482   : > { %v6964_v4 = vsel %vm6946_vm2, %v11939_v35, %v6955_v17  ;;  %v6965_v3 = vsel %vm6947_vm3, %v11941_v2, %v6956_v0  ;;  %vm6950_vm13 = vcmp.gt.f32.partialorder %v11947_v42, 0.0  ;;  %v6958_v20 = vmul.f32 0.2, %v11945_v16 }
 0x483   : > { %v6766_v1 = vadd.s32 8, %v6765_v21  ;;  %v6774_v63 = vadd.s32 256, %v6765_v21  ;;  %v6767_v53 = vadd.s32 16, %v6765_v21  ;;  %v6768_v6 = vadd.s32 24, %v6765_v21 }
 0x484   : > { %v6769_v27 = vadd.s32 32, %v6765_v21  ;;  %v6770_v5 = vadd.s32 40, %v6765_v21  ;;  %v6966_v22 = vsel %vm6948_vm4, %v11943_v61, %v6957_v49  ;;  %v6959_v28 = vmul.f32 0.2, %v11947_v42 }
 0x485   : > { %v6775_v60 = vadd.s32 256, %v6766_v1  ;;  %v11968_v11 = vmul.u32.u64.low 3817748708, %v6774_v63  ;;  %v11969_v41 = vmul.u32.u64.high 3817748708, %v6774_v63, %v11968_v11  ;;  %v6776_v7 = vadd.s32 256, %v6767_v53 }
 0x486   : > { %v6777_v48 = vadd.s32 256, %v6768_v6  ;;  %v6778_v40 = vadd.s32 256, %v6769_v27  ;;  %v6779_v58 = vadd.s32 256, %v6770_v5  ;;  %v6771_v43 = vadd.s32 48, %v6765_v21 }
 0x487   : > { %v11972_v47 = vmul.u32.u64.low 3817748708, %v6775_v60  ;;  %v11973_v55 = vmul.u32.u64.high 3817748708, %v6775_v60, %v11972_v47  ;;  %v11975_v57 = vmul.u32.u64.low 3817748708, %v6776_v7  ;;  %v11976_v24 = vmul.u32.u64.high 3817748708, %v6776_v7, %v11975_v57 }
 0x488   : > { %v11978_v37 = vmul.u32.u64.low 3817748708, %v6777_v48  ;;  %v11979_v29 = vmul.u32.u64.high 3817748708, %v6777_v48, %v11978_v37  ;;  %v11981_v8 = vmul.u32.u64.low 3817748708, %v6778_v40  ;;  %v11982_v30 = vmul.u32.u64.high 3817748708, %v6778_v40, %v11981_v8 }
 0x489   : > { %v6789_v44 = vshrl.u32 %v11969_v41, 4  ;;  %v11989_v50 = vmul.u32.u64.low 3817748708, %v6779_v58  ;;  %v11990_v39 = vmul.u32.u64.high 3817748708, %v6779_v58, %v11989_v50  ;;  %v6800_v51 = vshrl.u32 %v11973_v55, 4 }
 0x48a   : > { %v6811_v25 = vshrl.u32 %v11976_v24, 4  ;;  %v6822_v12 = vshrl.u32 %v11979_v29, 4  ;;  %v6833_v54 = vshrl.u32 %v11982_v30, 4  ;;  %v6967_v14 = vsel %vm6949_vm5, %v11945_v16, %v6958_v20 }
 0x48b   : > { %v6790_v19 = vmul.u32 18, %v6789_v44  ;;  %v6801_v10 = vmul.u32 18, %v6800_v51  ;;  %v6844_v33 = vshrl.u32 %v11990_v39, 4  ;;  %v9447_v13 = vmov 0.0|0.0  }
 0x48c   : > { %v6812_v26 = vmul.u32 18, %v6811_v25  ;;  %v6823_v62 = vmul.u32 18, %v6822_v12  ;;  %v7752_v45 = vcombine.low %v9447_v13, %v9447_v13  ;;  %v6780_v21 = vadd.s32 256, %v6771_v43 }
 0x48d   : > { %v6791_v23 = vsub.s32 %v6774_v63, %v6790_v19  ;;  %v6834_v38 = vmul.u32 18, %v6833_v54  ;;  %v6802_v9 = vsub.s32 %v6775_v60, %v6801_v10  ;;  %v6845_v18 = vmul.u32 18, %v6844_v33 }
 0x48e   : > { %v6813_v31 = vsub.s32 %v6776_v7, %v6812_v26  ;;  %v6824_v32 = vsub.s32 %v6777_v48, %v6823_v62  ;;  %7047 = vst [vmem:[%s12015_s25 + $0xb0] sm:$0xf] %v7752_v45  ;;  %v6968_v63 = vsel %vm6950_vm13, %v11947_v42, %v6959_v28  ;;  %vm6951_vm13 = vcmp.gt.f32.partialorder %v11949_v36, 0.0 }
 0x48f   : > { %vm6909_vm7 = vcmp.ge.s32.totalorder %v6791_v23, 1  ;;  %vm6927_vm9 = vcmp.le.s32.totalorder %v6791_v23, 16  ;;  %v6835_v34 = vsub.s32 %v6778_v40, %v6834_v38  ;;  %vm6910_vm12 = vcmp.ge.s32.totalorder %v6802_v9, 1 }
 0x490   : > { %vm12009_vm10 = vmand %vm6909_vm7, %vm6927_vm9  ;;  %vm6928_vm11 = vcmp.le.s32.totalorder %v6802_v9, 16  ;;  %vm6911_vm14 = vcmp.ge.s32.totalorder %v6813_v31, 1  ;;  %vm6912_vm8 = vcmp.ge.s32.totalorder %v6824_v32, 1  ;;  %vm6929_vm0 = vcmp.le.s32.totalorder %v6813_v31, 16 }
 0x491   : > { %v6990_v17 = vsel %vm12009_vm10, %v11965_v46, 0.0  ;;  %vm6937_vm6 = vmand %vm6910_vm12, %vm6928_vm11  ;;  %vm6930_vm1 = vcmp.le.s32.totalorder %v6824_v32, 16  ;;  %v6846_v0 = vsub.s32 %v6779_v58, %v6845_v18  ;;  %vm6913_vm2 = vcmp.ge.s32.totalorder %v6835_v34, 1 }
 0x492   : > { %v6991_v1 = vsel %vm6937_vm6, %v6964_v4, 0.0  ;;  %vm6938_vm15 = vmand %vm6911_vm14, %vm6929_vm0  ;;  %vm6931_vm3 = vcmp.le.s32.totalorder %v6835_v34, 16  ;;  %v12024_v49 = vmul.u32.u64.low 3817748708, %v6780_v21  ;;  %v12025_v27 = vmul.u32.u64.high 3817748708, %v6780_v21, %v12024_v49 }
 0x493   : > { %v7879_v53 = vpack.c.bf16 %v6991_v1, %v6990_v17  ;;  %vm6939_vm4 = vmand %vm6912_vm8, %vm6930_vm1  ;;  %v6992_v6 = vsel %vm6938_vm15, %v6965_v3, 0.0  ;;  %vm6914_vm5 = vcmp.ge.s32.totalorder %v6846_v0, 1  ;;  %vm6932_vm7 = vcmp.le.s32.totalorder %v6846_v0, 16 }
 0x494   : > { %v6993_v46 = vsel %vm6939_vm4, %v6966_v22, 0.0  ;;  %vm6940_vm9 = vmand %vm6913_vm2, %vm6931_vm3  ;;  %v6855_v7 = vshrl.u32 %v12025_v27, 4  ;;  %v6960_v40 = vmul.f32 0.2, %v11949_v36  ;;  %vm6897_vm12 = vcmp.lt.s32.totalorder %v6780_v21, 306 }
 0x495   : > { %7910 = vst [vmem:[%s12015_s25 + $0x90] sm:$0xff] %v7879_v53   ;;  %v7884_v5 = vpack.c.bf16 %v6993_v46, %v6992_v6  ;;  %vm6941_vm10 = vmand %vm6914_vm5, %vm6932_vm7  ;;  %v6994_v60 = vsel %vm6940_vm9, %v6967_v14, 0.0  ;;  %v9448_v57 = vmov 0.0  }
 0x496   : > { %v6995_v11 = vsel %vm6941_vm10, %v6968_v63, 0.0  ;;  %v6856_v48 = vmul.u32 18, %v6855_v7  ;;  %v6969_v47 = vsel %vm6951_vm13, %v11949_v36, %v6960_v40 }
 0x497   : > { %7911 = vst [vmem:[%s12015_s25 + $0x98] sm:$0xff] %v7884_v5   ;;  %v7889_v41 = vpack.c.bf16 %v6995_v11, %v6994_v60 }
 0x498   : > { %v6857_v58 = vsub.s32 %v6780_v21, %v6856_v48 }
 0x499   : > { %7912 = vst [vmem:[%s12015_s25 + $0xa0] sm:$0xff] %v7889_v41  }
 0x49a   : > { %vm6915_vm11 = vcmp.ge.s32.totalorder %v6857_v58, 1  ;;  %vm6933_vm14 = vcmp.le.s32.totalorder %v6857_v58, 16 }
 0x49b   : > { %vm6924_vm6 = vmand %vm6897_vm12, %vm6915_vm11 }
 0x49c   : > { %vm6942_vm8 = vmand %vm6924_vm6, %vm6933_vm14 }
 0x49d   : > { %v6996_v55 = vsel %vm6942_vm8, %v6969_v47, 0.0 }
 0x49e   : > { %v7893_v24 = vpack.c.bf16 %v9448_v57, %v6996_v55 }
 0x4a0   : > { %7913 = vst [vmem:[%s12015_s25 + $0xa8] sm:$0xff] %v7893_v24  }
 0x4a1 PF: > { %7050 = sbr.rel (%p7512_p9) target bundleno = 1195 (0x4ab), region = 82 }
 0x4a6   : > { %7051 = vst [vmem:[%s9511_s27 + $0x100] sm:$0xff] %v11937_v15  ;;  %7052 = vst [vmem:[%s9511_s27 + $0x108] sm:$0xff] %v11939_v35 }
 0x4a7   : > { %7053 = vst [vmem:[%s9511_s27 + $0x110] sm:$0xff] %v11941_v2  ;;  %7054 = vst [vmem:[%s9511_s27 + $0x118] sm:$0xff] %v11943_v61 }
 0x4a8   : > { %7055 = vst [vmem:[%s9511_s27 + $0x120] sm:$0xff] %v11945_v16  ;;  %7056 = vst [vmem:[%s9511_s27 + $0x128] sm:$0xff] %v11947_v42 }
 0x4a9   : > { %7057 = vst [vmem:[%s9511_s27 + $0x130] sm:$0xff] %v11949_v36  ;;  %7058 = vst [vmem:[%s9511_s27 + $0x138] sm:$0xff] %v11951_v59 }
 0x4aa   : > { %7059 = vst [vmem:[%s9511_s27 + $0x140] sm:$0xff] %v11953_v52 }
 0x4ab PF: > { %s13_s16 = sadd.s32 1, %s9441_s16   ;;  %s12212_s12 = smov %s9433_s14 }
 0x4ac   : > { %p10_p10 = scmp.ge.s32.totalorder %s13_s16, 12   ;;  %s12213_s13 = smov %s9437_s15 }
 0x4ad   : > { %s12214_s14 = smov %s12217_s17  ;;  %s12215_s15 = smov %s12221_s18 }
 0x4ae   :  { %12 = sbr.rel (!%p10_p10) target bundleno = 3 (0x3), region = 132 }
 0x4b3   :  { %7081 = vsyncmov [#allocation3] }
 0x4b6   :  { %s7082_s24 = vpop.sfrf %7081 }
 0x4b7   :  { %p7757_p11 = scmp.ne.s32.totalorder %s7082_s24, 0 }
 0x4b9   :  { %7086 = shalt.err (%p7757_p11)  }

</bundles_post_ra>
